<compile_context>
chip_gen: v6e
topology: v6e:2x2x1
jax: 0.10.0
libtpu: 0.0.40
codegen_flags: <defaults>
</compile_context>

<pallas_src>
import jax
import jax.numpy as jnp
from jax.experimental import pallas as pl
from jax.experimental.pallas import tpu as pltpu


# ---------------------------------------------------------------------------
# Fused Pallas kernel:  out = max_s(P_s @ W) + b   (s = pool-window phases)
# ---------------------------------------------------------------------------
def _round_up(x, m):
    return (x + m - 1) // m * m


def _make_fused_kernel(n_patches):
    def kernel(*refs):
        p_refs = refs[:n_patches]
        w_ref, b_ref, o_ref = refs[n_patches:n_patches + 3]
        w = w_ref[...]
        acc = jnp.dot(p_refs[0][...], w, preferred_element_type=jnp.float32)
        for p in p_refs[1:]:                      # sequential fold: 2 live accs
            acc = jnp.maximum(
                acc, jnp.dot(p[...], w, preferred_element_type=jnp.float32))
        o_ref[...] = (acc + b_ref[...]).astype(o_ref.dtype)
    return kernel


def fused_matmul_max_bias(patches, w, b, *, out_dtype, tm_target=512):
    """max_s(P_s @ W) + b, tiled over rows.

    patches : list of (M, K) arrays (all identical shape)
    w       : (K, N),  b : (N,)
    Returns (M, N) in `out_dtype`.
    """
    M, K = patches[0].shape
    N = w.shape[1]
    Kp = _round_up(K, 16)            # unmasked sublane loads for bf16 weights
    Np = _round_up(N, 128)           # lane-dense (128-wide) output stores
    tm = min(tm_target, _round_up(M, 16))
    Mp = _round_up(M, tm)

    patches = [
        jnp.pad(p.astype(jnp.bfloat16), ((0, Mp - M), (0, Kp - K)))
        for p in patches
    ]
    w_p = jnp.pad(w.astype(jnp.bfloat16), ((0, Kp - K), (0, Np - N)))
    b_p = jnp.pad(b.astype(jnp.float32), (0, Np - N)).reshape(1, Np)

    n = len(patches)
    out_itemsize = jnp.dtype(out_dtype).itemsize
    cost = pl.CostEstimate(
        flops=2 * n * Mp * Kp * Np,
        transcendentals=0,
        bytes_accessed=n * Mp * Kp * 2 + Kp * Np * 2 + Mp * Np * out_itemsize,
    )

    out = pl.pallas_call(
        _make_fused_kernel(n),
        out_shape=jax.ShapeDtypeStruct((Mp, Np), out_dtype),
        grid=(Mp // tm,),
        in_specs=[pl.BlockSpec((tm, Kp), lambda i: (i, 0))] * n + [
            pl.BlockSpec((Kp, Np), lambda i: (0, 0)),
            pl.BlockSpec((1, Np), lambda i: (0, 0)),
        ],
        out_specs=pl.BlockSpec((tm, Np), lambda i: (i, 0)),
        compiler_params=pltpu.CompilerParams(
            dimension_semantics=("parallel",)),
        cost_estimate=cost,
    )(*patches, w_p, b_p)
    return out[:M, :N]


# ---------------------------------------------------------------------------
# Layer wrappers (glue is reshapes / strided slices only)
# ---------------------------------------------------------------------------
def conv3x3_pool2x2(x, w, b, *, out_dtype=jnp.bfloat16):
    """3x3 valid conv (stride 1) + bias + 2x2/2 max-pool, one fused kernel.

    x: (B,H,W,Cin) NHWC, w: (3,3,Cin,Cout), b: (Cout,)
    Returns (B, (H-2)//2, (W-2)//2, Cout).
    """
    # TODO(synk): full halo fusion (building the 9-tap patches from the raw
    # NHWC tile inside the kernel via shifted slices / manual DMA) would
    # remove the remaining ~9x patch-matrix HBM expansion.
    B, H, W, Cin = x.shape
    Ho, Wo = H - 2, W - 2
    Hp, Wp = Ho // 2, Wo // 2          # MaxPool2d(2,2) floor semantics
    Cout = w.shape[-1]

    def phase_patches(dy, dx):
        # P[b,py,px,(ky,kx,c)] = x[b, 2*py+dy+ky, 2*px+dx+kx, c]
        cols = []
        for ky in range(3):
            for kx in range(3):
                cols.append(x[:, dy + ky:dy + ky + 2 * Hp:2,
                              dx + kx:dx + kx + 2 * Wp:2, :])
        return jnp.concatenate(cols, axis=-1).reshape(B * Hp * Wp, 9 * Cin)

    patches = [phase_patches(dy, dx) for dy in (0, 1) for dx in (0, 1)]
    wmat = w.reshape(9 * Cin, Cout)                  # (ky,kx,cin) order
    out = fused_matmul_max_bias(patches, wmat, b, out_dtype=out_dtype)
    return out.reshape(B, Hp, Wp, Cout)


def linear(x, w, b, *, out_dtype=jnp.float32):
    return fused_matmul_max_bias([x], w, b, out_dtype=out_dtype)


# ---------------------------------------------------------------------------
# Deterministic parameter init (synthetic; PyTorch-style uniform bounds)
# ---------------------------------------------------------------------------
def init_params(key):
    ks = jax.random.split(key, 6)

    def u(k, shape, fan_in):
        bound = 1.0 / jnp.sqrt(jnp.float32(fan_in))
        return jax.random.uniform(k, shape, jnp.float32, -bound, bound)

    return {
        # conv weights stored as (kh, kw, Cin, Cout) to match patch order
        "conv1_w": u(ks[0], (3, 3, 3, 32), 3 * 3 * 3),
        "conv1_b": u(ks[1], (32,), 3 * 3 * 3),
        "conv2_w": u(ks[2], (3, 3, 32, 64), 3 * 3 * 32),
        "conv2_b": u(ks[3], (64,), 3 * 3 * 32),
        # fc stored as (in_features, out_features) with rows in PyTorch's
        # NCHW-flatten (C,H,W) order; permuted to NHWC order in the forward.
        "fc_w": u(ks[4], (2304, 10), 2304),
        "fc_b": u(ks[5], (10,), 2304),
    }


# ---------------------------------------------------------------------------
# Forward pass == CIFAR10CNN.forward  (conv-pool, conv-pool, flatten, fc)
# ---------------------------------------------------------------------------
def cifar10_cnn_forward(params, x_nchw):
    # x_nchw: (B, 3, 32, 32) float32 (PyTorch input layout)
    x = jnp.transpose(x_nchw, (0, 2, 3, 1))                         # NHWC
    x = conv3x3_pool2x2(x, params["conv1_w"], params["conv1_b"])    # (B,15,15,32) bf16
    x = conv3x3_pool2x2(x, params["conv2_w"], params["conv2_b"])    # (B, 6, 6,64) bf16
    B = x.shape[0]
    x = x.reshape(B, 6 * 6 * 64)                                    # NHWC flatten
    # Permute fc_w rows (NCHW-flatten -> NHWC-flatten) instead of transposing
    # the activation tensor; tiny trace-time weight-side op.
    fc_w = params["fc_w"].reshape(64, 6, 6, 10)
    fc_w = jnp.transpose(fc_w, (1, 2, 0, 3)).reshape(2304, 10)
    logits = linear(x, fc_w, params["fc_b"], out_dtype=jnp.float32)  # (B, 10)
    return logits


if __name__ == "__main__":
    key = jax.random.PRNGKey(0)
    pkey, xkey = jax.random.split(key)
    params = init_params(pkey)
    # CIFAR-10 spatial size (32x32) is required so the fc input is 2304.
    x = jax.random.normal(xkey, (2, 3, 32, 32), jnp.float32)
    out = jax.jit(cifar10_cnn_forward)(params, x)
    out = jax.block_until_ready(out)
    assert out.shape == (2, 10) and out.dtype == jnp.float32
    print("KERNEL_OK")
</pallas_src>

<mosaic_0001>
module attributes {stable_mosaic.version = 11 : i64} {
  func.func @kernel(%arg0: i32, %arg1: memref<464x32xbf16, #tpu.memory_space<vmem>>, %arg2: memref<464x32xbf16, #tpu.memory_space<vmem>>, %arg3: memref<464x32xbf16, #tpu.memory_space<vmem>>, %arg4: memref<464x32xbf16, #tpu.memory_space<vmem>>, %arg5: memref<32x128xbf16, #tpu.memory_space<vmem>>, %arg6: memref<1x128xf32, #tpu.memory_space<vmem>>, %arg7: memref<464x128xbf16, #tpu.memory_space<vmem>>) attributes {dimension_semantics = [#tpu.dimension_semantics<parallel>], iteration_bounds = array<i64: 1>, scalar_prefetch = 0 : i64, scratch_operands = 0 : i64, tpu.core_type = #tpu.core_type<tc>, window_params = [{transform_indices = @transform_0, window_bounds = array<i64: 464, 32>}, {transform_indices = @transform_1, window_bounds = array<i64: 464, 32>}, {transform_indices = @transform_2, window_bounds = array<i64: 464, 32>}, {transform_indices = @transform_3, window_bounds = array<i64: 464, 32>}, {pipeline_mode = #tpu.pipeline_mode<synchronous>, transform_indices = @transform_4, window_bounds = array<i64: 32, 128>}, {pipeline_mode = #tpu.pipeline_mode<synchronous>, transform_indices = @transform_5, window_bounds = array<i64: 1, 128>}, {transform_indices = @transform_6, window_bounds = array<i64: 464, 128>}]} {
    %c0 = arith.constant 0 : index
    %c0_0 = arith.constant 0 : index
    %0 = vector.load %arg5[%c0, %c0_0] : memref<32x128xbf16, #tpu.memory_space<vmem>>, vector<32x128xbf16>
    %c0_1 = arith.constant 0 : index
    %c0_2 = arith.constant 0 : index
    %1 = vector.load %arg1[%c0_1, %c0_2] : memref<464x32xbf16, #tpu.memory_space<vmem>>, vector<464x32xbf16>
    %cst = arith.constant dense<0.000000e+00> : vector<464x128xf32>
    %2 = tpu.matmul %1, %0, %cst {dimension_numbers = #tpu.dot_dimension_numbers<[1], [0], [0], [1], [0, 0, 1, 1], [], []>} : vector<464x32xbf16>, vector<32x128xbf16>, vector<464x128xf32> -> vector<464x128xf32>
    %c0_3 = arith.constant 0 : index
    %c0_4 = arith.constant 0 : index
    %3 = vector.load %arg2[%c0_3, %c0_4] : memref<464x32xbf16, #tpu.memory_space<vmem>>, vector<464x32xbf16>
    %cst_5 = arith.constant dense<0.000000e+00> : vector<464x128xf32>
    %4 = tpu.matmul %3, %0, %cst_5 {dimension_numbers = #tpu.dot_dimension_numbers<[1], [0], [0], [1], [0, 0, 1, 1], [], []>} : vector<464x32xbf16>, vector<32x128xbf16>, vector<464x128xf32> -> vector<464x128xf32>
    %5 = arith.maximumf %2, %4 : vector<464x128xf32>
    %c0_6 = arith.constant 0 : index
    %c0_7 = arith.constant 0 : index
    %6 = vector.load %arg3[%c0_6, %c0_7] : memref<464x32xbf16, #tpu.memory_space<vmem>>, vector<464x32xbf16>
    %cst_8 = arith.constant dense<0.000000e+00> : vector<464x128xf32>
    %7 = tpu.matmul %6, %0, %cst_8 {dimension_numbers = #tpu.dot_dimension_numbers<[1], [0], [0], [1], [0, 0, 1, 1], [], []>} : vector<464x32xbf16>, vector<32x128xbf16>, vector<464x128xf32> -> vector<464x128xf32>
    %8 = arith.maximumf %5, %7 : vector<464x128xf32>
    %c0_9 = arith.constant 0 : index
    %c0_10 = arith.constant 0 : index
    %9 = vector.load %arg4[%c0_9, %c0_10] : memref<464x32xbf16, #tpu.memory_space<vmem>>, vector<464x32xbf16>
    %cst_11 = arith.constant dense<0.000000e+00> : vector<464x128xf32>
    %10 = tpu.matmul %9, %0, %cst_11 {dimension_numbers = #tpu.dot_dimension_numbers<[1], [0], [0], [1], [0, 0, 1, 1], [], []>} : vector<464x32xbf16>, vector<32x128xbf16>, vector<464x128xf32> -> vector<464x128xf32>
    %11 = arith.maximumf %8, %10 : vector<464x128xf32>
    %c0_12 = arith.constant 0 : index
    %c0_13 = arith.constant 0 : index
    %12 = vector.load %arg6[%c0_12, %c0_13] : memref<1x128xf32, #tpu.memory_space<vmem>>, vector<1x128xf32>
    %13 = vector.broadcast %12 : vector<1x128xf32> to vector<464x128xf32>
    %14 = arith.addf %11, %13 : vector<464x128xf32>
    %15 = arith.truncf %14 : vector<464x128xf32> to vector<464x128xbf16>
    %c0_14 = arith.constant 0 : index
    %c0_15 = arith.constant 0 : index
    %16 = vector.load %arg7[%c0_14, %c0_15] : memref<464x128xbf16, #tpu.memory_space<vmem>>, vector<464x128xbf16>
    tpu.vector_store %arg7[%c0_14, %c0_15], %15 {strides = array<i32>} : memref<464x128xbf16, #tpu.memory_space<vmem>>, vector<464x128xbf16>,
    return
  }
  func.func @transform_0(%arg0: i32) -> (i32, i32) {
    %c0_i32 = arith.constant 0 : i32
    %c0_i32_0 = arith.constant 0 : i32
    return %arg0, %c0_i32 : i32, i32
  }
  func.func @transform_1(%arg0: i32) -> (i32, i32) {
    %c0_i32 = arith.constant 0 : i32
    %c0_i32_0 = arith.constant 0 : i32
    return %arg0, %c0_i32 : i32, i32
  }
  func.func @transform_2(%arg0: i32) -> (i32, i32) {
    %c0_i32 = arith.constant 0 : i32
    %c0_i32_0 = arith.constant 0 : i32
    return %arg0, %c0_i32 : i32, i32
  }
  func.func @transform_3(%arg0: i32) -> (i32, i32) {
    %c0_i32 = arith.constant 0 : i32
    %c0_i32_0 = arith.constant 0 : i32
    return %arg0, %c0_i32 : i32, i32
  }
  func.func @transform_4(%arg0: i32) -> (i32, i32) {
    %c0_i32 = arith.constant 0 : i32
    %c0_i32_0 = arith.constant 0 : i32
    %c0_i32_1 = arith.constant 0 : i32
    return %c0_i32, %c0_i32_0 : i32, i32
  }
  func.func @transform_5(%arg0: i32) -> (i32, i32) {
    %c0_i32 = arith.constant 0 : i32
    %c0_i32_0 = arith.constant 0 : i32
    %c0_i32_1 = arith.constant 0 : i32
    return %c0_i32, %c0_i32_0 : i32, i32
  }
  func.func @transform_6(%arg0: i32) -> (i32, i32) {
    %c0_i32 = arith.constant 0 : i32
    %c0_i32_0 = arith.constant 0 : i32
    return %arg0, %c0_i32 : i32, i32
  }
}

module attributes {stable_mosaic.version = 11 : i64} {
  func.func @kernel(%arg0: i32, %arg1: memref<80x288xbf16, #tpu.memory_space<vmem>>, %arg2: memref<80x288xbf16, #tpu.memory_space<vmem>>, %arg3: memref<80x288xbf16, #tpu.memory_space<vmem>>, %arg4: memref<80x288xbf16, #tpu.memory_space<vmem>>, %arg5: memref<288x128xbf16, #tpu.memory_space<vmem>>, %arg6: memref<1x128xf32, #tpu.memory_space<vmem>>, %arg7: memref<80x128xbf16, #tpu.memory_space<vmem>>) attributes {dimension_semantics = [#tpu.dimension_semantics<parallel>], iteration_bounds = array<i64: 1>, scalar_prefetch = 0 : i64, scratch_operands = 0 : i64, tpu.core_type = #tpu.core_type<tc>, window_params = [{transform_indices = @transform_0, window_bounds = array<i64: 80, 288>}, {transform_indices = @transform_1, window_bounds = array<i64: 80, 288>}, {transform_indices = @transform_2, window_bounds = array<i64: 80, 288>}, {transform_indices = @transform_3, window_bounds = array<i64: 80, 288>}, {pipeline_mode = #tpu.pipeline_mode<synchronous>, transform_indices = @transform_4, window_bounds = array<i64: 288, 128>}, {pipeline_mode = #tpu.pipeline_mode<synchronous>, transform_indices = @transform_5, window_bounds = array<i64: 1, 128>}, {transform_indices = @transform_6, window_bounds = array<i64: 80, 128>}]} {
    %c0 = arith.constant 0 : index
    %c0_0 = arith.constant 0 : index
    %0 = vector.load %arg5[%c0, %c0_0] : memref<288x128xbf16, #tpu.memory_space<vmem>>, vector<288x128xbf16>
    %c0_1 = arith.constant 0 : index
    %c0_2 = arith.constant 0 : index
    %1 = vector.load %arg1[%c0_1, %c0_2] : memref<80x288xbf16, #tpu.memory_space<vmem>>, vector<80x288xbf16>
    %cst = arith.constant dense<0.000000e+00> : vector<80x128xf32>
    %2 = tpu.matmul %1, %0, %cst {dimension_numbers = #tpu.dot_dimension_numbers<[1], [0], [0], [1], [0, 0, 1, 1], [], []>} : vector<80x288xbf16>, vector<288x128xbf16>, vector<80x128xf32> -> vector<80x128xf32>
    %c0_3 = arith.constant 0 : index
    %c0_4 = arith.constant 0 : index
    %3 = vector.load %arg2[%c0_3, %c0_4] : memref<80x288xbf16, #tpu.memory_space<vmem>>, vector<80x288xbf16>
    %cst_5 = arith.constant dense<0.000000e+00> : vector<80x128xf32>
    %4 = tpu.matmul %3, %0, %cst_5 {dimension_numbers = #tpu.dot_dimension_numbers<[1], [0], [0], [1], [0, 0, 1, 1], [], []>} : vector<80x288xbf16>, vector<288x128xbf16>, vector<80x128xf32> -> vector<80x128xf32>
    %5 = arith.maximumf %2, %4 : vector<80x128xf32>
    %c0_6 = arith.constant 0 : index
    %c0_7 = arith.constant 0 : index
    %6 = vector.load %arg3[%c0_6, %c0_7] : memref<80x288xbf16, #tpu.memory_space<vmem>>, vector<80x288xbf16>
    %cst_8 = arith.constant dense<0.000000e+00> : vector<80x128xf32>
    %7 = tpu.matmul %6, %0, %cst_8 {dimension_numbers = #tpu.dot_dimension_numbers<[1], [0], [0], [1], [0, 0, 1, 1], [], []>} : vector<80x288xbf16>, vector<288x128xbf16>, vector<80x128xf32> -> vector<80x128xf32>
    %8 = arith.maximumf %5, %7 : vector<80x128xf32>
    %c0_9 = arith.constant 0 : index
    %c0_10 = arith.constant 0 : index
    %9 = vector.load %arg4[%c0_9, %c0_10] : memref<80x288xbf16, #tpu.memory_space<vmem>>, vector<80x288xbf16>
    %cst_11 = arith.constant dense<0.000000e+00> : vector<80x128xf32>
    %10 = tpu.matmul %9, %0, %cst_11 {dimension_numbers = #tpu.dot_dimension_numbers<[1], [0], [0], [1], [0, 0, 1, 1], [], []>} : vector<80x288xbf16>, vector<288x128xbf16>, vector<80x128xf32> -> vector<80x128xf32>
    %11 = arith.maximumf %8, %10 : vector<80x128xf32>
    %c0_12 = arith.constant 0 : index
    %c0_13 = arith.constant 0 : index
    %12 = vector.load %arg6[%c0_12, %c0_13] : memref<1x128xf32, #tpu.memory_space<vmem>>, vector<1x128xf32>
    %13 = vector.broadcast %12 : vector<1x128xf32> to vector<80x128xf32>
    %14 = arith.addf %11, %13 : vector<80x128xf32>
    %15 = arith.truncf %14 : vector<80x128xf32> to vector<80x128xbf16>
    %c0_14 = arith.constant 0 : index
    %c0_15 = arith.constant 0 : index
    %16 = vector.load %arg7[%c0_14, %c0_15] : memref<80x128xbf16, #tpu.memory_space<vmem>>, vector<80x128xbf16>
    tpu.vector_store %arg7[%c0_14, %c0_15], %15 {strides = array<i32>} : memref<80x128xbf16, #tpu.memory_space<vmem>>, vector<80x128xbf16>,
    return
  }
  func.func @transform_0(%arg0: i32) -> (i32, i32) {
    %c0_i32 = arith.constant 0 : i32
    %c0_i32_0 = arith.constant 0 : i32
    return %arg0, %c0_i32 : i32, i32
  }
  func.func @transform_1(%arg0: i32) -> (i32, i32) {
    %c0_i32 = arith.constant 0 : i32
    %c0_i32_0 = arith.constant 0 : i32
    return %arg0, %c0_i32 : i32, i32
  }
  func.func @transform_2(%arg0: i32) -> (i32, i32) {
    %c0_i32 = arith.constant 0 : i32
    %c0_i32_0 = arith.constant 0 : i32
    return %arg0, %c0_i32 : i32, i32
  }
  func.func @transform_3(%arg0: i32) -> (i32, i32) {
    %c0_i32 = arith.constant 0 : i32
    %c0_i32_0 = arith.constant 0 : i32
    return %arg0, %c0_i32 : i32, i32
  }
  func.func @transform_4(%arg0: i32) -> (i32, i32) {
    %c0_i32 = arith.constant 0 : i32
    %c0_i32_0 = arith.constant 0 : i32
    %c0_i32_1 = arith.constant 0 : i32
    return %c0_i32, %c0_i32_0 : i32, i32
  }
  func.func @transform_5(%arg0: i32) -> (i32, i32) {
    %c0_i32 = arith.constant 0 : i32
    %c0_i32_0 = arith.constant 0 : i32
    %c0_i32_1 = arith.constant 0 : i32
    return %c0_i32, %c0_i32_0 : i32, i32
  }
  func.func @transform_6(%arg0: i32) -> (i32, i32) {
    %c0_i32 = arith.constant 0 : i32
    %c0_i32_0 = arith.constant 0 : i32
    return %arg0, %c0_i32 : i32, i32
  }
}

module attributes {stable_mosaic.version = 11 : i64} {
  func.func @kernel(%arg0: i32, %arg1: memref<16x2304xbf16, #tpu.memory_space<vmem>>, %arg2: memref<2304x128xbf16, #tpu.memory_space<vmem>>, %arg3: memref<1x128xf32, #tpu.memory_space<vmem>>, %arg4: memref<16x128xf32, #tpu.memory_space<vmem>>) attributes {dimension_semantics = [#tpu.dimension_semantics<parallel>], iteration_bounds = array<i64: 1>, scalar_prefetch = 0 : i64, scratch_operands = 0 : i64, tpu.core_type = #tpu.core_type<tc>, window_params = [{transform_indices = @transform_0, window_bounds = array<i64: 16, 2304>}, {pipeline_mode = #tpu.pipeline_mode<synchronous>, transform_indices = @transform_1, window_bounds = array<i64: 2304, 128>}, {pipeline_mode = #tpu.pipeline_mode<synchronous>, transform_indices = @transform_2, window_bounds = array<i64: 1, 128>}, {transform_indices = @transform_3, window_bounds = array<i64: 16, 128>}]} {
    %c0 = arith.constant 0 : index
    %c0_0 = arith.constant 0 : index
    %0 = vector.load %arg2[%c0, %c0_0] : memref<2304x128xbf16, #tpu.memory_space<vmem>>, vector<2304x128xbf16>
    %c0_1 = arith.constant 0 : index
    %c0_2 = arith.constant 0 : index
    %1 = vector.load %arg1[%c0_1, %c0_2] : memref<16x2304xbf16, #tpu.memory_space<vmem>>, vector<16x2304xbf16>
    %cst = arith.constant dense<0.000000e+00> : vector<16x128xf32>
    %2 = tpu.matmul %1, %0, %cst {dimension_numbers = #tpu.dot_dimension_numbers<[1], [0], [0], [1], [0, 0, 1, 1], [], []>} : vector<16x2304xbf16>, vector<2304x128xbf16>, vector<16x128xf32> -> vector<16x128xf32>
    %c0_3 = arith.constant 0 : index
    %c0_4 = arith.constant 0 : index
    %3 = vector.load %arg3[%c0_3, %c0_4] : memref<1x128xf32, #tpu.memory_space<vmem>>, vector<1x128xf32>
    %4 = vector.broadcast %3 : vector<1x128xf32> to vector<16x128xf32>
    %5 = arith.addf %2, %4 : vector<16x128xf32>
    %c0_5 = arith.constant 0 : index
    %c0_6 = arith.constant 0 : index
    %6 = vector.load %arg4[%c0_5, %c0_6] : memref<16x128xf32, #tpu.memory_space<vmem>>, vector<16x128xf32>
    tpu.vector_store %arg4[%c0_5, %c0_6], %5 {strides = array<i32>} : memref<16x128xf32, #tpu.memory_space<vmem>>, vector<16x128xf32>,
    return
  }
  func.func @transform_0(%arg0: i32) -> (i32, i32) {
    %c0_i32 = arith.constant 0 : i32
    %c0_i32_0 = arith.constant 0 : i32
    return %arg0, %c0_i32 : i32, i32
  }
  func.func @transform_1(%arg0: i32) -> (i32, i32) {
    %c0_i32 = arith.constant 0 : i32
    %c0_i32_0 = arith.constant 0 : i32
    %c0_i32_1 = arith.constant 0 : i32
    return %c0_i32, %c0_i32_0 : i32, i32
  }
  func.func @transform_2(%arg0: i32) -> (i32, i32) {
    %c0_i32 = arith.constant 0 : i32
    %c0_i32_0 = arith.constant 0 : i32
    %c0_i32_1 = arith.constant 0 : i32
    return %c0_i32, %c0_i32_0 : i32, i32
  }
  func.func @transform_3(%arg0: i32) -> (i32, i32) {
    %c0_i32 = arith.constant 0 : i32
    %c0_i32_0 = arith.constant 0 : i32
    return %arg0, %c0_i32 : i32, i32
  }
}

</mosaic_0001>

<bundles_post_ra>
// kernel: cifar10_cnn_forward.3
= control target key start
LH: loop header
LB: loop body
LE: loop exit
PB: predicated region body
PF: predicated region fallthrough
CT: control target
= control target key end

     0   :  { %v5468_v0 = vmov 0.0   ;;  %vm4043_vm0 = vmmov 0   ;;  %vm243_vm1 = vcmask 261120   ;;  %s5461_s4 = inlined_call_operand.vmem [shape: bf16[32,128], index: 4, kind: input, shape index: {}]   ;;  %s5462_s0 = inlined_call_operand.vmem [shape: bf16[464,32], index: 0, kind: input, shape index: {}]   ;;  %s5463_s1 = inlined_call_operand.vmem [shape: bf16[464,32], index: 1, kind: input, shape index: {}]   ;;  %s5464_s2 = inlined_call_operand.vmem [shape: bf16[464,32], index: 2, kind: input, shape index: {}]   ;;  %s5465_s3 = inlined_call_operand.vmem [shape: bf16[464,32], index: 3, kind: input, shape index: {}]   ;;  %s5466_s5 = inlined_call_operand.vmem [shape: f32[1,128], index: 5, kind: input, shape index: {}]   ;;  %s5467_s6 = inlined_call_operand.vmem [shape: bf16[464,128], index: 6, kind: output, shape index: {}]  }
   0x1   :  { %3442 = vmatprep.subr.bf16.mxu0 %v5468_v0  ;;  %3562 = vmatprep.subr.bf16.mxu1 %v5468_v0  ;;  %v3924_v1 = vld [vmem:[%s5461_s4 + $0x8] sm:$0xff]   ;;  %v3925_v2 = vld [vmem:[%s5461_s4] sm:$0xff]   ;;  %v3930_v7 = vld [vmem:[%s5462_s0 + $0x10] sm:$0xff]  }
   0x2   :  { %3446 = vmatprep.mubr.msk.bf16.mxu0 %vm4043_vm0, %v5468_v0  ;;  %3566 = vmatprep.mubr.msk.bf16.mxu1 %vm4043_vm0, %v5468_v0  ;;  %v3926_v3 = vld [vmem:[%s5462_s0] sm:$0xff]   ;;  %v3928_v5 = vld [vmem:[%s5462_s0 + $0x8] sm:$0xff]   ;;  %v3931_v8 = vld [vmem:[%s5463_s1 + $0x10] sm:$0xff]  }
   0x3   :  { %3443 = vmatpush3.bf16.msra.mxu0 %v3924_v1  ;;  %3563 = vmatpush3.bf16.msra.mxu1 %v3924_v1  ;;  %v3927_v4 = vld [vmem:[%s5463_s1] sm:$0xff]   ;;  %v3929_v6 = vld [vmem:[%s5463_s1 + $0x8] sm:$0xff]   ;;  %v3932_v9 = vld [vmem:[%s5462_s0 + $0x18] sm:$0xff]  }
   0x4   :  { %3444 = vmatprep.subr.bf16.mxu0 %v5468_v0  ;;  %3564 = vmatprep.subr.bf16.mxu1 %v5468_v0  ;;  %v3933_v10 = vld [vmem:[%s5463_s1 + $0x18] sm:$0xff]   ;;  %v3934_v11 = vld [vmem:[%s5462_s0 + $0x20] sm:$0xff]   ;;  %v3936_v13 = vld [vmem:[%s5462_s0 + $0x28] sm:$0xff]  }
   0x5   :  { %v3935_v12 = vld [vmem:[%s5463_s1 + $0x20] sm:$0xff]   ;;  %v3937_v14 = vld [vmem:[%s5463_s1 + $0x28] sm:$0xff]   ;;  %v3938_v15 = vld [vmem:[%s5462_s0 + $0x30] sm:$0xff]  }
   0x6   :  { %v3939_v16 = vld [vmem:[%s5463_s1 + $0x30] sm:$0xff]   ;;  %v3940_v17 = vld [vmem:[%s5462_s0 + $0x38] sm:$0xff]   ;;  %v3942_v19 = vld [vmem:[%s5462_s0 + $0x40] sm:$0xff]  }
   0x7   :  { %3445 = vmatpush3.bf16.msra.mxu0 %v3925_v2  ;;  %3565 = vmatpush3.bf16.msra.mxu1 %v3925_v2  ;;  %v3941_v18 = vld [vmem:[%s5463_s1 + $0x38] sm:$0xff]   ;;  %v3943_v20 = vld [vmem:[%s5463_s1 + $0x40] sm:$0xff]   ;;  %v3944_v21 = vld [vmem:[%s5462_s0 + $0x48] sm:$0xff]  }
   0x8   :  { %3682 = vmatprep.subr.bf16.mxu0 %v5468_v0  ;;  %3802 = vmatprep.subr.bf16.mxu1 %v5468_v0  ;;  %v3945_v22 = vld [vmem:[%s5463_s1 + $0x48] sm:$0xff]   ;;  %v3946_v23 = vld [vmem:[%s5462_s0 + $0x50] sm:$0xff]   ;;  %v3948_v25 = vld [vmem:[%s5462_s0 + $0x58] sm:$0xff]  }
   0x9   :  { %v3947_v24 = vld [vmem:[%s5463_s1 + $0x50] sm:$0xff]   ;;  %v3949_v26 = vld [vmem:[%s5463_s1 + $0x58] sm:$0xff]   ;;  %v3950_v27 = vld [vmem:[%s5462_s0 + $0x60] sm:$0xff]  }
   0xa   :  { %3447 = vmatmul.mubr.msk.bf16.vlgmr.msra.gmra.mxu0 %vm243_vm1, %v3926_v3  ;;  %3567 = vmatmul.mubr.msk.bf16.vlgmr.msra.gmra.mxu1 %vm243_vm1, %v3927_v4  ;;  %v3951_v28 = vld [vmem:[%s5463_s1 + $0x60] sm:$0xff]   ;;  %v3952_v29 = vld [vmem:[%s5462_s0 + $0x68] sm:$0xff]   ;;  %v3954_v31 = vld [vmem:[%s5462_s0 + $0x70] sm:$0xff]  }
   0xb   :  { %3683 = vmatpush3.bf16.msra.mxu0 %v3924_v1  ;;  %3803 = vmatpush3.bf16.msra.mxu1 %v3924_v1  ;;  %v3953_v30 = vld [vmem:[%s5463_s1 + $0x68] sm:$0xff]   ;;  %v3955_v32 = vld [vmem:[%s5463_s1 + $0x70] sm:$0xff]   ;;  %v3956_v33 = vld [vmem:[%s5462_s0 + $0x78] sm:$0xff]  }
   0xc   :  { %3450 = vmatprep.mubr.msk.bf16.mxu0 %vm4043_vm0, %v5468_v0  ;;  %3570 = vmatprep.mubr.msk.bf16.mxu1 %vm4043_vm0, %v5468_v0  ;;  %v3957_v34 = vld [vmem:[%s5463_s1 + $0x78] sm:$0xff]   ;;  %v3958_v35 = vld [vmem:[%s5462_s0 + $0x80] sm:$0xff]   ;;  %v3960_v37 = vld [vmem:[%s5462_s0 + $0x88] sm:$0xff]  }
   0xd   :  { %3684 = vmatprep.subr.bf16.mxu0 %v5468_v0  ;;  %3804 = vmatprep.subr.bf16.mxu1 %v5468_v0  ;;  %v3959_v36 = vld [vmem:[%s5463_s1 + $0x80] sm:$0xff]   ;;  %v3961_v38 = vld [vmem:[%s5463_s1 + $0x88] sm:$0xff]   ;;  %v3962_v39 = vld [vmem:[%s5462_s0 + $0x90] sm:$0xff]  }
   0xe   :  { %v3963_v40 = vld [vmem:[%s5463_s1 + $0x90] sm:$0xff]   ;;  %v3964_v41 = vld [vmem:[%s5462_s0 + $0x98] sm:$0xff]   ;;  %v3966_v43 = vld [vmem:[%s5462_s0 + $0xa0] sm:$0xff]  }
   0xf   :  { %3685 = vmatpush3.bf16.msra.mxu0 %v3925_v2  ;;  %3805 = vmatpush3.bf16.msra.mxu1 %v3925_v2  ;;  %v3965_v42 = vld [vmem:[%s5463_s1 + $0x98] sm:$0xff]   ;;  %v3967_v44 = vld [vmem:[%s5463_s1 + $0xa0] sm:$0xff]   ;;  %v3968_v45 = vld [vmem:[%s5462_s0 + $0xa8] sm:$0xff]  }
  0x10   :  { %v3969_v46 = vld [vmem:[%s5463_s1 + $0xa8] sm:$0xff]   ;;  %v3970_v47 = vld [vmem:[%s5462_s0 + $0xb0] sm:$0xff]   ;;  %v3972_v49 = vld [vmem:[%s5462_s0 + $0xb8] sm:$0xff]  }
  0x11   :  { %v3971_v48 = vld [vmem:[%s5463_s1 + $0xb0] sm:$0xff]   ;;  %v3973_v50 = vld [vmem:[%s5463_s1 + $0xb8] sm:$0xff]   ;;  %v3974_v51 = vld [vmem:[%s5462_s0 + $0xc0] sm:$0xff]  }
  0x12   :  { %3451 = vmatmul.mubr.msk.bf16.gmra.mxu0 %vm243_vm1, %v3928_v5  ;;  %3571 = vmatmul.mubr.msk.bf16.gmra.mxu1 %vm243_vm1, %v3929_v6  ;;  %v3975_v52 = vld [vmem:[%s5463_s1 + $0xc0] sm:$0xff]   ;;  %v3976_v60 = vld [vmem:[%s5462_s0 + $0xc8] sm:$0xff]  }
  0x13   :  { %3454 = vmatprep.mubr.msk.bf16.mxu0 %vm4043_vm0, %v5468_v0  ;;  %3574 = vmatprep.mubr.msk.bf16.mxu1 %vm4043_vm0, %v5468_v0  ;;  %v3977_v61 = vld [vmem:[%s5463_s1 + $0xc8] sm:$0xff]  }
  0x1a   :  { %3455 = vmatmul.mubr.msk.bf16.gmra.mxu0 %vm243_vm1, %v3930_v7  ;;  %3575 = vmatmul.mubr.msk.bf16.gmra.mxu1 %vm243_vm1, %v3931_v8 }
  0x1b   :  { %3458 = vmatprep.mubr.msk.bf16.mxu0 %vm4043_vm0, %v5468_v0  ;;  %3578 = vmatprep.mubr.msk.bf16.mxu1 %vm4043_vm0, %v5468_v0 }
  0x22   :  { %3459 = vmatmul.mubr.msk.bf16.gmra.mxu0 %vm243_vm1, %v3932_v9  ;;  %3579 = vmatmul.mubr.msk.bf16.gmra.mxu1 %vm243_vm1, %v3933_v10  ;;  %v3978_v9 = vld [vmem:[%s5462_s0 + $0xd0] sm:$0xff]  }
  0x23   :  { %3462 = vmatprep.mubr.msk.bf16.mxu0 %vm4043_vm0, %v5468_v0  ;;  %3582 = vmatprep.mubr.msk.bf16.mxu1 %vm4043_vm0, %v5468_v0  ;;  %v3979_v10 = vld [vmem:[%s5463_s1 + $0xd0] sm:$0xff]  }
  0x2a   :  { %3463 = vmatmul.mubr.msk.bf16.gmra.mxu0 %vm243_vm1, %v3934_v11  ;;  %3583 = vmatmul.mubr.msk.bf16.gmra.mxu1 %vm243_vm1, %v3935_v12 }
  0x2b   :  { %3466 = vmatprep.mubr.msk.bf16.mxu0 %vm4043_vm0, %v5468_v0  ;;  %3586 = vmatprep.mubr.msk.bf16.mxu1 %vm4043_vm0, %v5468_v0 }
  0x32   :  { %3467 = vmatmul.mubr.msk.bf16.gmra.mxu0 %vm243_vm1, %v3936_v13  ;;  %3587 = vmatmul.mubr.msk.bf16.gmra.mxu1 %vm243_vm1, %v3937_v14 }
  0x33   :  { %3470 = vmatprep.mubr.msk.bf16.mxu0 %vm4043_vm0, %v5468_v0  ;;  %3590 = vmatprep.mubr.msk.bf16.mxu1 %vm4043_vm0, %v5468_v0 }
  0x3a   :  { %3471 = vmatmul.mubr.msk.bf16.gmra.mxu0 %vm243_vm1, %v3938_v15  ;;  %3591 = vmatmul.mubr.msk.bf16.gmra.mxu1 %vm243_vm1, %v3939_v16 }
  0x3b   :  { %3474 = vmatprep.mubr.msk.bf16.mxu0 %vm4043_vm0, %v5468_v0  ;;  %3594 = vmatprep.mubr.msk.bf16.mxu1 %vm4043_vm0, %v5468_v0 }
  0x42   :  { %3475 = vmatmul.mubr.msk.bf16.gmra.mxu0 %vm243_vm1, %v3940_v17  ;;  %3595 = vmatmul.mubr.msk.bf16.gmra.mxu1 %vm243_vm1, %v3941_v18 }
  0x43   :  { %3478 = vmatprep.mubr.msk.bf16.mxu0 %vm4043_vm0, %v5468_v0  ;;  %3598 = vmatprep.mubr.msk.bf16.mxu1 %vm4043_vm0, %v5468_v0 }
  0x4a   :  { %3479 = vmatmul.mubr.msk.bf16.gmra.mxu0 %vm243_vm1, %v3942_v19  ;;  %3599 = vmatmul.mubr.msk.bf16.gmra.mxu1 %vm243_vm1, %v3943_v20 }
  0x4b   :  { %3482 = vmatprep.mubr.msk.bf16.mxu0 %vm4043_vm0, %v5468_v0  ;;  %3602 = vmatprep.mubr.msk.bf16.mxu1 %vm4043_vm0, %v5468_v0 }
  0x52   :  { %3483 = vmatmul.mubr.msk.bf16.gmra.mxu0 %vm243_vm1, %v3944_v21  ;;  %3603 = vmatmul.mubr.msk.bf16.gmra.mxu1 %vm243_vm1, %v3945_v22  ;;  %v3980_v21 = vld [vmem:[%s5462_s0 + $0xd8] sm:$0xff]  }
  0x53   :  { %3486 = vmatprep.mubr.msk.bf16.mxu0 %vm4043_vm0, %v5468_v0  ;;  %3606 = vmatprep.mubr.msk.bf16.mxu1 %vm4043_vm0, %v5468_v0  ;;  %v3981_v22 = vld [vmem:[%s5463_s1 + $0xd8] sm:$0xff]  }
  0x5a   :  { %3487 = vmatmul.mubr.msk.bf16.gmra.mxu0 %vm243_vm1, %v3946_v23  ;;  %3607 = vmatmul.mubr.msk.bf16.gmra.mxu1 %vm243_vm1, %v3947_v24 }
  0x5b   :  { %3490 = vmatprep.mubr.msk.bf16.mxu0 %vm4043_vm0, %v5468_v0  ;;  %3610 = vmatprep.mubr.msk.bf16.mxu1 %vm4043_vm0, %v5468_v0 }
  0x62   :  { %3491 = vmatmul.mubr.msk.bf16.gmra.mxu0 %vm243_vm1, %v3948_v25  ;;  %3611 = vmatmul.mubr.msk.bf16.gmra.mxu1 %vm243_vm1, %v3949_v26 }
  0x63   :  { %3494 = vmatprep.mubr.msk.bf16.mxu0 %vm4043_vm0, %v5468_v0  ;;  %3614 = vmatprep.mubr.msk.bf16.mxu1 %vm4043_vm0, %v5468_v0 }
  0x6a   :  { %3495 = vmatmul.mubr.msk.bf16.gmra.mxu0 %vm243_vm1, %v3950_v27  ;;  %3615 = vmatmul.mubr.msk.bf16.gmra.mxu1 %vm243_vm1, %v3951_v28 }
  0x6b   :  { %3498 = vmatprep.mubr.msk.bf16.mxu0 %vm4043_vm0, %v5468_v0  ;;  %3618 = vmatprep.mubr.msk.bf16.mxu1 %vm4043_vm0, %v5468_v0 }
  0x72   :  { %3499 = vmatmul.mubr.msk.bf16.gmra.mxu0 %vm243_vm1, %v3952_v29  ;;  %3619 = vmatmul.mubr.msk.bf16.gmra.mxu1 %vm243_vm1, %v3953_v30 }
  0x73   :  { %3502 = vmatprep.mubr.msk.bf16.mxu0 %vm4043_vm0, %v5468_v0  ;;  %3622 = vmatprep.mubr.msk.bf16.mxu1 %vm4043_vm0, %v5468_v0 }
  0x7a   :  { %3503 = vmatmul.mubr.msk.bf16.gmra.mxu0 %vm243_vm1, %v3954_v31  ;;  %3623 = vmatmul.mubr.msk.bf16.gmra.mxu1 %vm243_vm1, %v3955_v32 }
  0x7b   :  { %3506 = vmatprep.mubr.msk.bf16.mxu0 %vm4043_vm0, %v5468_v0  ;;  %3626 = vmatprep.mubr.msk.bf16.mxu1 %vm4043_vm0, %v5468_v0 }
  0x82   :  { %3507 = vmatmul.mubr.msk.bf16.gmra.mxu0 %vm243_vm1, %v3956_v33  ;;  %3627 = vmatmul.mubr.msk.bf16.gmra.mxu1 %vm243_vm1, %v3957_v34  ;;  %v3982_v33 = vld [vmem:[%s5462_s0 + $0xe0] sm:$0xff]  }
  0x83   :  { %3510 = vmatprep.mubr.msk.bf16.mxu0 %vm4043_vm0, %v5468_v0  ;;  %3630 = vmatprep.mubr.msk.bf16.mxu1 %vm4043_vm0, %v5468_v0  ;;  %v3983_v34 = vld [vmem:[%s5463_s1 + $0xe0] sm:$0xff]  }
  0x8a   :  { %3511 = vmatmul.mubr.msk.bf16.gmra.mxu0 %vm243_vm1, %v3958_v35  ;;  %3631 = vmatmul.mubr.msk.bf16.gmra.mxu1 %vm243_vm1, %v3959_v36 }
  0x8b   :  { %3514 = vmatprep.mubr.msk.bf16.mxu0 %vm4043_vm0, %v5468_v0  ;;  %3634 = vmatprep.mubr.msk.bf16.mxu1 %vm4043_vm0, %v5468_v0 }
  0x92   :  { %3515 = vmatmul.mubr.msk.bf16.gmra.mxu0 %vm243_vm1, %v3960_v37  ;;  %3635 = vmatmul.mubr.msk.bf16.gmra.mxu1 %vm243_vm1, %v3961_v38 }
  0x93   :  { %3518 = vmatprep.mubr.msk.bf16.mxu0 %vm4043_vm0, %v5468_v0  ;;  %3638 = vmatprep.mubr.msk.bf16.mxu1 %vm4043_vm0, %v5468_v0 }
  0x9a   :  { %3519 = vmatmul.mubr.msk.bf16.gmra.mxu0 %vm243_vm1, %v3962_v39  ;;  %3639 = vmatmul.mubr.msk.bf16.gmra.mxu1 %vm243_vm1, %v3963_v40 }
  0x9b   :  { %3522 = vmatprep.mubr.msk.bf16.mxu0 %vm4043_vm0, %v5468_v0  ;;  %3642 = vmatprep.mubr.msk.bf16.mxu1 %vm4043_vm0, %v5468_v0 }
  0xa2   :  { %3523 = vmatmul.mubr.msk.bf16.gmra.mxu0 %vm243_vm1, %v3964_v41  ;;  %3643 = vmatmul.mubr.msk.bf16.gmra.mxu1 %vm243_vm1, %v3965_v42 }
  0xa3   :  { %3526 = vmatprep.mubr.msk.bf16.mxu0 %vm4043_vm0, %v5468_v0  ;;  %3646 = vmatprep.mubr.msk.bf16.mxu1 %vm4043_vm0, %v5468_v0 }
  0xaa   :  { %3527 = vmatmul.mubr.msk.bf16.gmra.mxu0 %vm243_vm1, %v3966_v43  ;;  %3647 = vmatmul.mubr.msk.bf16.gmra.mxu1 %vm243_vm1, %v3967_v44 }
  0xab   :  { %3530 = vmatprep.mubr.msk.bf16.mxu0 %vm4043_vm0, %v5468_v0  ;;  %3650 = vmatprep.mubr.msk.bf16.mxu1 %vm4043_vm0, %v5468_v0 }
  0xb2   :  { %3531 = vmatmul.mubr.msk.bf16.gmra.mxu0 %vm243_vm1, %v3968_v45  ;;  %3651 = vmatmul.mubr.msk.bf16.gmra.mxu1 %vm243_vm1, %v3969_v46  ;;  %v3984_v45 = vld [vmem:[%s5464_s2] sm:$0xff]  }
  0xb3   :  { %3534 = vmatprep.mubr.msk.bf16.mxu0 %vm4043_vm0, %v5468_v0  ;;  %3654 = vmatprep.mubr.msk.bf16.mxu1 %vm4043_vm0, %v5468_v0  ;;  %v3985_v46 = vld [vmem:[%s5465_s3] sm:$0xff]  }
  0xba   :  { %3535 = vmatmul.mubr.msk.bf16.gmra.mxu0 %vm243_vm1, %v3970_v47  ;;  %3655 = vmatmul.mubr.msk.bf16.gmra.mxu1 %vm243_vm1, %v3971_v48 }
  0xbb   :  { %3538 = vmatprep.mubr.msk.bf16.mxu0 %vm4043_vm0, %v5468_v0  ;;  %3658 = vmatprep.mubr.msk.bf16.mxu1 %vm4043_vm0, %v5468_v0 }
  0xc2   :  { %3539 = vmatmul.mubr.msk.bf16.gmra.mxu0 %vm243_vm1, %v3972_v49  ;;  %3659 = vmatmul.mubr.msk.bf16.gmra.mxu1 %vm243_vm1, %v3973_v50 }
  0xc3   :  { %3542 = vmatprep.mubr.msk.bf16.mxu0 %vm4043_vm0, %v5468_v0  ;;  %3662 = vmatprep.mubr.msk.bf16.mxu1 %vm4043_vm0, %v5468_v0 }
  0xca   :  { %v4391_v53 = vpop.f32.mrf.mxu0  ;;  %3543 = vmatmul.mubr.msk.bf16.gmra.mxu0 %vm243_vm1, %v3974_v51  ;;  %v4394_v54 = vpop.f32.mrf.mxu1  ;;  %3663 = vmatmul.mubr.msk.bf16.gmra.mxu1 %vm243_vm1, %v3975_v52 }
  0xcb   :  { %3546 = vmatprep.mubr.msk.bf16.mxu0 %vm4043_vm0, %v5468_v0  ;;  %3666 = vmatprep.mubr.msk.bf16.mxu1 %vm4043_vm0, %v5468_v0 }
  0xcc   :  { %v3448_v56 = vpop.f32.mrf.mxu0  ;;  %v3568_v57 = vpop.f32.mrf.mxu1 }
  0xce   :  { %v4403_v58 = vpop.f32.mrf.mxu0  ;;  %v4405_v59 = vpop.f32.mrf.mxu1 }
  0xd0   :  { %v3449_v63 = vpop.f32.mrf.mxu0  ;;  %v3569_v1 = vpop.f32.mrf.mxu1 }
  0xd1   :  { %v3986_v63 = vld [vmem:[%s5464_s2 + $0x8] sm:$0xff]  }
  0xd2   :  { %v4415_v2 = vpop.f32.mrf.mxu0  ;;  %3547 = vmatmul.mubr.msk.bf16.gmra.mxu0 %vm243_vm1, %v3976_v60  ;;  %v4418_v3 = vpop.f32.mrf.mxu1  ;;  %3667 = vmatmul.mubr.msk.bf16.gmra.mxu1 %vm243_vm1, %v3977_v61  ;;  %v3987_v1 = vld [vmem:[%s5465_s3 + $0x8] sm:$0xff]  }
  0xd3   :  { %3550 = vmatprep.mubr.msk.bf16.mxu0 %vm4043_vm0, %v5468_v0  ;;  %3670 = vmatprep.mubr.msk.bf16.mxu1 %vm4043_vm0, %v5468_v0 }
  0xd4   :  { %v3452_v5 = vpop.f32.mrf.mxu0  ;;  %v3572_v6 = vpop.f32.mrf.mxu1 }
  0xd6   :  { %v4427_v7 = vpop.f32.mrf.mxu0  ;;  %v4429_v8 = vpop.f32.mrf.mxu1 }
  0xd8   :  { %v3453_v12 = vpop.f32.mrf.mxu0  ;;  %v3573_v13 = vpop.f32.mrf.mxu1 }
  0xda   :  { %v4439_v14 = vpop.f32.mrf.mxu0  ;;  %3551 = vmatmul.mubr.msk.bf16.gmra.mxu0 %vm243_vm1, %v3978_v9  ;;  %v4442_v15 = vpop.f32.mrf.mxu1  ;;  %3671 = vmatmul.mubr.msk.bf16.gmra.mxu1 %vm243_vm1, %v3979_v10 }
  0xdb   :  { %3554 = vmatprep.mubr.msk.bf16.mxu0 %vm4043_vm0, %v5468_v0  ;;  %3674 = vmatprep.mubr.msk.bf16.mxu1 %vm4043_vm0, %v5468_v0 }
  0xdc   :  { %v3456_v17 = vpop.f32.mrf.mxu0  ;;  %v3576_v18 = vpop.f32.mrf.mxu1 }
  0xde   :  { %v4451_v19 = vpop.f32.mrf.mxu0  ;;  %v4453_v20 = vpop.f32.mrf.mxu1 }
  0xe0   :  { %v3457_v24 = vpop.f32.mrf.mxu0  ;;  %v3577_v25 = vpop.f32.mrf.mxu1 }
  0xe1   :  { %v3988_v24 = vld [vmem:[%s5464_s2 + $0x10] sm:$0xff]  }
  0xe2   :  { %v4463_v26 = vpop.f32.mrf.mxu0  ;;  %3555 = vmatmul.mubr.msk.bf16.gmra.mxu0 %vm243_vm1, %v3980_v21  ;;  %v4466_v27 = vpop.f32.mrf.mxu1  ;;  %3675 = vmatmul.mubr.msk.bf16.gmra.mxu1 %vm243_vm1, %v3981_v22  ;;  %v3989_v25 = vld [vmem:[%s5465_s3 + $0x10] sm:$0xff]  }
  0xe3   :  { %3558 = vmatprep.mubr.msk.bf16.mxu0 %vm4043_vm0, %v5468_v0  ;;  %3678 = vmatprep.mubr.msk.bf16.mxu1 %vm4043_vm0, %v5468_v0 }
  0xe4   :  { %v3460_v29 = vpop.f32.mrf.mxu0  ;;  %v3580_v30 = vpop.f32.mrf.mxu1 }
  0xe6   :  { %v4475_v31 = vpop.f32.mrf.mxu0  ;;  %v4477_v32 = vpop.f32.mrf.mxu1 }
  0xe8   :  { %v3461_v36 = vpop.f32.mrf.mxu0  ;;  %v3581_v37 = vpop.f32.mrf.mxu1 }
  0xea   :  { %v4487_v38 = vpop.f32.mrf.mxu0  ;;  %3559 = vmatmul.mubr.msk.bf16.gmra.mxu0 %vm243_vm1, %v3982_v33  ;;  %v4490_v39 = vpop.f32.mrf.mxu1  ;;  %3679 = vmatmul.mubr.msk.bf16.gmra.mxu1 %vm243_vm1, %v3983_v34 }
  0xeb   :  { %3686 = vmatprep.mubr.msk.bf16.mxu0 %vm4043_vm0, %v5468_v0  ;;  %3806 = vmatprep.mubr.msk.bf16.mxu1 %vm4043_vm0, %v5468_v0 }
  0xec   :  { %v3464_v41 = vpop.f32.mrf.mxu0  ;;  %v3584_v42 = vpop.f32.mrf.mxu1 }
  0xee   :  { %v4499_v43 = vpop.f32.mrf.mxu0  ;;  %v4501_v44 = vpop.f32.mrf.mxu1 }
  0xf0   :  { %v3465_v48 = vpop.f32.mrf.mxu0  ;;  %v3585_v49 = vpop.f32.mrf.mxu1 }
  0xf1   :  { %v3990_v48 = vld [vmem:[%s5464_s2 + $0x18] sm:$0xff]  }
  0xf2   :  { %v4511_v50 = vpop.f32.mrf.mxu0  ;;  %v4513_v51 = vpop.f32.mrf.mxu1  ;;  %3687 = vmatmul.mubr.msk.bf16.vlgmr.msra.gmra.mxu0 %vm243_vm1, %v3984_v45  ;;  %3807 = vmatmul.mubr.msk.bf16.vlgmr.msra.gmra.mxu1 %vm243_vm1, %v3985_v46  ;;  %v3991_v49 = vld [vmem:[%s5465_s3 + $0x18] sm:$0xff]  }
  0xf3   :  { %3690 = vmatprep.mubr.msk.bf16.mxu0 %vm4043_vm0, %v5468_v0  ;;  %3810 = vmatprep.mubr.msk.bf16.mxu1 %vm4043_vm0, %v5468_v0 }
  0xf4   :  { %v3468_v56 = vpop.f32.mrf.mxu0  ;;  %v3588_v57 = vpop.f32.mrf.mxu1 }
  0xf6   :  { %v4523_v60 = vpop.f32.mrf.mxu0  ;;  %v4525_v61 = vpop.f32.mrf.mxu1 }
  0xf8   :  { %v3469_v6 = vpop.f32.mrf.mxu0  ;;  %v3589_v9 = vpop.f32.mrf.mxu1 }
  0xfa   :  { %v4535_v10 = vpop.f32.mrf.mxu0  ;;  %v4537_v12 = vpop.f32.mrf.mxu1  ;;  %3691 = vmatmul.mubr.msk.bf16.gmra.mxu0 %vm243_vm1, %v3986_v63  ;;  %3811 = vmatmul.mubr.msk.bf16.gmra.mxu1 %vm243_vm1, %v3987_v1 }
  0xfb   :  { %3694 = vmatprep.mubr.msk.bf16.mxu0 %vm4043_vm0, %v5468_v0  ;;  %3814 = vmatprep.mubr.msk.bf16.mxu1 %vm4043_vm0, %v5468_v0 }
  0xfc   :  { %v3472_v17 = vpop.f32.mrf.mxu0  ;;  %v3592_v18 = vpop.f32.mrf.mxu1 }
  0xfe   :  { %v4547_v21 = vpop.f32.mrf.mxu0  ;;  %v4549_v22 = vpop.f32.mrf.mxu1 }
 0x100   :  { %v3473_v30 = vpop.f32.mrf.mxu0  ;;  %v3593_v33 = vpop.f32.mrf.mxu1 }
 0x101   :  { %v3992_v30 = vld [vmem:[%s5464_s2 + $0x20] sm:$0xff]  }
 0x102   :  { %v4559_v34 = vpop.f32.mrf.mxu0  ;;  %v4561_v36 = vpop.f32.mrf.mxu1  ;;  %3695 = vmatmul.mubr.msk.bf16.gmra.mxu0 %vm243_vm1, %v3988_v24  ;;  %3815 = vmatmul.mubr.msk.bf16.gmra.mxu1 %vm243_vm1, %v3989_v25  ;;  %v3993_v33 = vld [vmem:[%s5465_s3 + $0x20] sm:$0xff]  }
 0x103   :  { %3698 = vmatprep.mubr.msk.bf16.mxu0 %vm4043_vm0, %v5468_v0  ;;  %3818 = vmatprep.mubr.msk.bf16.mxu1 %vm4043_vm0, %v5468_v0 }
 0x104   :  { %v3476_v41 = vpop.f32.mrf.mxu0  ;;  %v3596_v42 = vpop.f32.mrf.mxu1 }
 0x106   :  { %v4571_v45 = vpop.f32.mrf.mxu0  ;;  %v4573_v46 = vpop.f32.mrf.mxu1 }
 0x108   :  { %v3477_v57 = vpop.f32.mrf.mxu0  ;;  %v3597_v63 = vpop.f32.mrf.mxu1 }
 0x10a   :  { %v4583_v1 = vpop.f32.mrf.mxu0  ;;  %v4585_v6 = vpop.f32.mrf.mxu1  ;;  %3699 = vmatmul.mubr.msk.bf16.gmra.mxu0 %vm243_vm1, %v3990_v48  ;;  %3819 = vmatmul.mubr.msk.bf16.gmra.mxu1 %vm243_vm1, %v3991_v49 }
 0x10b   :  { %3702 = vmatprep.mubr.msk.bf16.mxu0 %vm4043_vm0, %v5468_v0  ;;  %3822 = vmatprep.mubr.msk.bf16.mxu1 %vm4043_vm0, %v5468_v0 }
 0x10c   :  { %v3480_v17 = vpop.f32.mrf.mxu0  ;;  %v3600_v18 = vpop.f32.mrf.mxu1 }
 0x10e   :  { %v4595_v24 = vpop.f32.mrf.mxu0  ;;  %v4597_v25 = vpop.f32.mrf.mxu1 }
 0x110   :  { %v3481_v42 = vpop.f32.mrf.mxu0  ;;  %v3601_v48 = vpop.f32.mrf.mxu1 }
 0x112   :  { %v4607_v49 = vpop.f32.mrf.mxu0  ;;  %v4609_v57 = vpop.f32.mrf.mxu1  ;;  %3703 = vmatmul.mubr.msk.bf16.gmra.mxu0 %vm243_vm1, %v3992_v30  ;;  %3823 = vmatmul.mubr.msk.bf16.gmra.mxu1 %vm243_vm1, %v3993_v33  ;;  %v3994_v30 = vld [vmem:[%s5464_s2 + $0x28] sm:$0xff]  }
 0x113   :  { %3706 = vmatprep.mubr.msk.bf16.mxu0 %vm4043_vm0, %v5468_v0  ;;  %3826 = vmatprep.mubr.msk.bf16.mxu1 %vm4043_vm0, %v5468_v0  ;;  %v3995_v33 = vld [vmem:[%s5465_s3 + $0x28] sm:$0xff]  }
 0x114   :  { %v3484_v17 = vpop.f32.mrf.mxu0  ;;  %v3604_v18 = vpop.f32.mrf.mxu1 }
 0x116   :  { %v4619_v42 = vpop.f32.mrf.mxu0  ;;  %v4621_v48 = vpop.f32.mrf.mxu1 }
 0x118   :  { %v3485_v41 = vpop.f32.mrf.mxu0  ;;  %v3605_v9 = vpop.f32.mrf.mxu1 }
 0x11a   :  { %v4631_v56 = vpop.f32.mrf.mxu0  ;;  %v4633_v17 = vpop.f32.mrf.mxu1  ;;  %3707 = vmatmul.mubr.msk.bf16.gmra.mxu0 %vm243_vm1, %v3994_v30  ;;  %3827 = vmatmul.mubr.msk.bf16.gmra.mxu1 %vm243_vm1, %v3995_v33  ;;  %v3996_v30 = vld [vmem:[%s5464_s2 + $0x30] sm:$0xff]  }
 0x11b   :  { %3710 = vmatprep.mubr.msk.bf16.mxu0 %vm4043_vm0, %v5468_v0  ;;  %3830 = vmatprep.mubr.msk.bf16.mxu1 %vm4043_vm0, %v5468_v0  ;;  %v3997_v33 = vld [vmem:[%s5465_s3 + $0x30] sm:$0xff]  }
 0x11c   :  { %v3488_v63 = vpop.f32.mrf.mxu0  ;;  %v3608_v41 = vpop.f32.mrf.mxu1 }
 0x11e   :  { %v4643_v9 = vpop.f32.mrf.mxu0  ;;  %v4645_v37 = vpop.f32.mrf.mxu1 }
 0x120   :  { %v3489_v29 = vpop.f32.mrf.mxu0  ;;  %v3609_v13 = vpop.f32.mrf.mxu1 }
 0x122   :  { %v4655_v5 = vpop.f32.mrf.mxu0  ;;  %v4657_v63 = vpop.f32.mrf.mxu1  ;;  %3711 = vmatmul.mubr.msk.bf16.gmra.mxu0 %vm243_vm1, %v3996_v30  ;;  %3831 = vmatmul.mubr.msk.bf16.gmra.mxu1 %vm243_vm1, %v3997_v33  ;;  %v3998_v30 = vld [vmem:[%s5464_s2 + $0x38] sm:$0xff]  }
 0x123   :  { %3714 = vmatprep.mubr.msk.bf16.mxu0 %vm4043_vm0, %v5468_v0  ;;  %3834 = vmatprep.mubr.msk.bf16.mxu1 %vm4043_vm0, %v5468_v0  ;;  %v3999_v33 = vld [vmem:[%s5465_s3 + $0x38] sm:$0xff]  }
 0x124   :  { %v3492_v18 = vpop.f32.mrf.mxu0  ;;  %v3612_v29 = vpop.f32.mrf.mxu1 }
 0x126   :  { %v4667_v13 = vpop.f32.mrf.mxu0  ;;  %v4669_v52 = vpop.f32.mrf.mxu1 }
 0x128   :  { %v3493_v47 = vpop.f32.mrf.mxu0  ;;  %v3613_v40 = vpop.f32.mrf.mxu1 }
 0x12a   :  { %v4679_v35 = vpop.f32.mrf.mxu0  ;;  %v4681_v18 = vpop.f32.mrf.mxu1  ;;  %3715 = vmatmul.mubr.msk.bf16.gmra.mxu0 %vm243_vm1, %v3998_v30  ;;  %3835 = vmatmul.mubr.msk.bf16.gmra.mxu1 %vm243_vm1, %v3999_v33  ;;  %v4000_v30 = vld [vmem:[%s5464_s2 + $0x40] sm:$0xff]  }
 0x12b   :  { %3718 = vmatprep.mubr.msk.bf16.mxu0 %vm4043_vm0, %v5468_v0  ;;  %3838 = vmatprep.mubr.msk.bf16.mxu1 %vm4043_vm0, %v5468_v0  ;;  %v4001_v33 = vld [vmem:[%s5465_s3 + $0x40] sm:$0xff]  }
 0x12c   :  { %v3496_v41 = vpop.f32.mrf.mxu0  ;;  %v3616_v47 = vpop.f32.mrf.mxu1 }
 0x12e   :  { %v4691_v40 = vpop.f32.mrf.mxu0  ;;  %v4693_v28 = vpop.f32.mrf.mxu1 }
 0x12f   :  { %5536 = vst [vmem:[#allocation2_spill] sm:$0xff] %v4691_v40  ;;  %5537 = vst [vmem:[#allocation3_spill] sm:$0xff] %v4693_v28 }
 0x130   :  { %v3497_v23 = vpop.f32.mrf.mxu0  ;;  %v3617_v16 = vpop.f32.mrf.mxu1 }
 0x132   :  { %v4703_v11 = vpop.f32.mrf.mxu0  ;;  %v4705_v41 = vpop.f32.mrf.mxu1  ;;  %3719 = vmatmul.mubr.msk.bf16.gmra.mxu0 %vm243_vm1, %v4000_v30  ;;  %3839 = vmatmul.mubr.msk.bf16.gmra.mxu1 %vm243_vm1, %v4001_v33  ;;  %v4002_v30 = vld [vmem:[%s5464_s2 + $0x48] sm:$0xff]  }
 0x133   :  { %5538 = vst [vmem:[#allocation4_spill] sm:$0xff] %v4703_v11  ;;  %5539 = vst [vmem:[#allocation5_spill] sm:$0xff] %v4705_v41  ;;  %3722 = vmatprep.mubr.msk.bf16.mxu0 %vm4043_vm0, %v5468_v0  ;;  %3842 = vmatprep.mubr.msk.bf16.mxu1 %vm4043_vm0, %v5468_v0  ;;  %v4003_v33 = vld [vmem:[%s5465_s3 + $0x48] sm:$0xff]   ;;  %v5544_v41 = vmov 0.0  }
 0x134   :  { %v3500_v29 = vpop.f32.mrf.mxu0  ;;  %v3620_v23 = vpop.f32.mrf.mxu1 }
 0x136   :  { %v4715_v16 = vpop.f32.mrf.mxu0  ;;  %v4717_v4 = vpop.f32.mrf.mxu1 }
 0x137   :  { %5540 = vst [vmem:[#allocation6_spill] sm:$0xff] %v4715_v16  ;;  %5541 = vst [vmem:[#allocation7_spill] sm:$0xff] %v4717_v4 }
 0x138   :  { %v3501_v62 = vpop.f32.mrf.mxu0  ;;  %v3621_v55 = vpop.f32.mrf.mxu1 }
 0x13a   :  { %v4727_v0 = vpop.f32.mrf.mxu0  ;;  %v4729_v29 = vpop.f32.mrf.mxu1  ;;  %3723 = vmatmul.mubr.msk.bf16.gmra.mxu0 %vm243_vm1, %v4002_v30  ;;  %3843 = vmatmul.mubr.msk.bf16.gmra.mxu1 %vm243_vm1, %v4003_v33  ;;  %v4004_v30 = vld [vmem:[%s5464_s2 + $0x50] sm:$0xff]  }
 0x13b   :  { %5542 = vst [vmem:[#allocation8_spill] sm:$0xff] %v4727_v0  ;;  %5543 = vst [vmem:[#allocation9_spill] sm:$0xff] %v4729_v29  ;;  %3726 = vmatprep.mubr.msk.bf16.mxu0 %vm4043_vm0, %v5544_v41  ;;  %3846 = vmatprep.mubr.msk.bf16.mxu1 %vm4043_vm0, %v5544_v41  ;;  %v4005_v33 = vld [vmem:[%s5465_s3 + $0x50] sm:$0xff]  }
 0x13c   :  { %v3504_v47 = vpop.f32.mrf.mxu0  ;;  %v3624_v62 = vpop.f32.mrf.mxu1 }
 0x13e   :  { %v4739_v55 = vpop.f32.mrf.mxu0  ;;  %v4741_v4 = vpop.f32.mrf.mxu1 }
 0x13f   :  { %5545 = vst [vmem:[#allocation10_spill] sm:$0xff] %v4739_v55  ;;  %5546 = vst [vmem:[#allocation11_spill] sm:$0xff] %v4741_v4 }
 0x140   :  { %v3505_v29 = vpop.f32.mrf.mxu0  ;;  %v3625_v0 = vpop.f32.mrf.mxu1 }
 0x142   :  { %v4751_v16 = vpop.f32.mrf.mxu0  ;;  %v4753_v47 = vpop.f32.mrf.mxu1  ;;  %3727 = vmatmul.mubr.msk.bf16.gmra.mxu0 %vm243_vm1, %v4004_v30  ;;  %3847 = vmatmul.mubr.msk.bf16.gmra.mxu1 %vm243_vm1, %v4005_v33  ;;  %v4006_v30 = vld [vmem:[%s5464_s2 + $0x58] sm:$0xff]  }
 0x143   :  { %5547 = vst [vmem:[#allocation12_spill] sm:$0xff] %v4751_v16  ;;  %5548 = vst [vmem:[#allocation13_spill] sm:$0xff] %v4753_v47  ;;  %3730 = vmatprep.mubr.msk.bf16.mxu0 %vm4043_vm0, %v5544_v41  ;;  %3850 = vmatprep.mubr.msk.bf16.mxu1 %vm4043_vm0, %v5544_v41  ;;  %v4007_v33 = vld [vmem:[%s5465_s3 + $0x58] sm:$0xff]  }
 0x144   :  { %v3508_v23 = vpop.f32.mrf.mxu0  ;;  %v3628_v29 = vpop.f32.mrf.mxu1 }
 0x146   :  { %v4763_v0 = vpop.f32.mrf.mxu0  ;;  %v4765_v4 = vpop.f32.mrf.mxu1 }
 0x147   :  { %5549 = vst [vmem:[#allocation14_spill] sm:$0xff] %v4763_v0  ;;  %5550 = vst [vmem:[#allocation15_spill] sm:$0xff] %v4765_v4 }
 0x148   :  { %v3509_v47 = vpop.f32.mrf.mxu0  ;;  %v3629_v16 = vpop.f32.mrf.mxu1 }
 0x14a   :  { %v4775_v55 = vpop.f32.mrf.mxu0  ;;  %v4777_v23 = vpop.f32.mrf.mxu1  ;;  %3731 = vmatmul.mubr.msk.bf16.gmra.mxu0 %vm243_vm1, %v4006_v30  ;;  %3851 = vmatmul.mubr.msk.bf16.gmra.mxu1 %vm243_vm1, %v4007_v33  ;;  %v4008_v30 = vld [vmem:[%s5464_s2 + $0x60] sm:$0xff]  }
 0x14b   :  { %5551 = vst [vmem:[#allocation16_spill] sm:$0xff] %v4775_v55  ;;  %5552 = vst [vmem:[#allocation17_spill] sm:$0xff] %v4777_v23  ;;  %3734 = vmatprep.mubr.msk.bf16.mxu0 %vm4043_vm0, %v5544_v41  ;;  %3854 = vmatprep.mubr.msk.bf16.mxu1 %vm4043_vm0, %v5544_v41  ;;  %v4009_v33 = vld [vmem:[%s5465_s3 + $0x60] sm:$0xff]  }
 0x14c   :  { %v3512_v62 = vpop.f32.mrf.mxu0  ;;  %v3632_v47 = vpop.f32.mrf.mxu1 }
 0x14e   :  { %v4787_v16 = vpop.f32.mrf.mxu0  ;;  %v4789_v4 = vpop.f32.mrf.mxu1 }
 0x14f   :  { %5553 = vst [vmem:[#allocation18_spill] sm:$0xff] %v4787_v16  ;;  %5554 = vst [vmem:[#allocation19_spill] sm:$0xff] %v4789_v4 }
 0x150   :  { %v3513_v23 = vpop.f32.mrf.mxu0  ;;  %v3633_v55 = vpop.f32.mrf.mxu1 }
 0x152   :  { %v4799_v0 = vpop.f32.mrf.mxu0  ;;  %v4801_v62 = vpop.f32.mrf.mxu1  ;;  %3735 = vmatmul.mubr.msk.bf16.gmra.mxu0 %vm243_vm1, %v4008_v30  ;;  %3855 = vmatmul.mubr.msk.bf16.gmra.mxu1 %vm243_vm1, %v4009_v33  ;;  %v4010_v30 = vld [vmem:[%s5464_s2 + $0x68] sm:$0xff]  }
 0x153   :  { %5555 = vst [vmem:[#allocation20_spill] sm:$0xff] %v4799_v0  ;;  %5556 = vst [vmem:[#allocation21_spill] sm:$0xff] %v4801_v62  ;;  %3738 = vmatprep.mubr.msk.bf16.mxu0 %vm4043_vm0, %v5544_v41  ;;  %3858 = vmatprep.mubr.msk.bf16.mxu1 %vm4043_vm0, %v5544_v41  ;;  %v4011_v33 = vld [vmem:[%s5465_s3 + $0x68] sm:$0xff]  }
 0x154   :  { %v3516_v29 = vpop.f32.mrf.mxu0  ;;  %v3636_v23 = vpop.f32.mrf.mxu1 }
 0x156   :  { %v4811_v55 = vpop.f32.mrf.mxu0  ;;  %v4813_v4 = vpop.f32.mrf.mxu1 }
 0x157   :  { %5557 = vst [vmem:[#allocation22_spill] sm:$0xff] %v4811_v55  ;;  %5558 = vst [vmem:[#allocation23_spill] sm:$0xff] %v4813_v4 }
 0x158   :  { %v3517_v62 = vpop.f32.mrf.mxu0  ;;  %v3637_v0 = vpop.f32.mrf.mxu1 }
 0x15a   :  { %v4823_v16 = vpop.f32.mrf.mxu0  ;;  %v4825_v29 = vpop.f32.mrf.mxu1  ;;  %3739 = vmatmul.mubr.msk.bf16.gmra.mxu0 %vm243_vm1, %v4010_v30  ;;  %3859 = vmatmul.mubr.msk.bf16.gmra.mxu1 %vm243_vm1, %v4011_v33  ;;  %v4012_v30 = vld [vmem:[%s5464_s2 + $0x70] sm:$0xff]  }
 0x15b   :  { %5559 = vst [vmem:[#allocation24_spill] sm:$0xff] %v4823_v16  ;;  %5560 = vst [vmem:[#allocation25_spill] sm:$0xff] %v4825_v29  ;;  %3742 = vmatprep.mubr.msk.bf16.mxu0 %vm4043_vm0, %v5544_v41  ;;  %3862 = vmatprep.mubr.msk.bf16.mxu1 %vm4043_vm0, %v5544_v41  ;;  %v4013_v33 = vld [vmem:[%s5465_s3 + $0x70] sm:$0xff]  }
 0x15c   :  { %v3520_v47 = vpop.f32.mrf.mxu0  ;;  %v3640_v62 = vpop.f32.mrf.mxu1 }
 0x15e   :  { %v4835_v0 = vpop.f32.mrf.mxu0  ;;  %v4837_v4 = vpop.f32.mrf.mxu1 }
 0x15f   :  { %5561 = vst [vmem:[#allocation26_spill] sm:$0xff] %v4835_v0  ;;  %5562 = vst [vmem:[#allocation27_spill] sm:$0xff] %v4837_v4 }
 0x160   :  { %v3521_v29 = vpop.f32.mrf.mxu0  ;;  %v3641_v16 = vpop.f32.mrf.mxu1 }
 0x162   :  { %v4847_v55 = vpop.f32.mrf.mxu0  ;;  %v4849_v47 = vpop.f32.mrf.mxu1  ;;  %3743 = vmatmul.mubr.msk.bf16.gmra.mxu0 %vm243_vm1, %v4012_v30  ;;  %3863 = vmatmul.mubr.msk.bf16.gmra.mxu1 %vm243_vm1, %v4013_v33  ;;  %v4014_v30 = vld [vmem:[%s5464_s2 + $0x78] sm:$0xff]  }
 0x163   :  { %5563 = vst [vmem:[#allocation28_spill] sm:$0xff] %v4847_v55  ;;  %5564 = vst [vmem:[#allocation29_spill] sm:$0xff] %v4849_v47  ;;  %3746 = vmatprep.mubr.msk.bf16.mxu0 %vm4043_vm0, %v5544_v41  ;;  %3866 = vmatprep.mubr.msk.bf16.mxu1 %vm4043_vm0, %v5544_v41  ;;  %v4015_v33 = vld [vmem:[%s5465_s3 + $0x78] sm:$0xff]  }
 0x164   :  { %v3524_v23 = vpop.f32.mrf.mxu0  ;;  %v3644_v29 = vpop.f32.mrf.mxu1 }
 0x166   :  { %v4859_v16 = vpop.f32.mrf.mxu0  ;;  %v4861_v4 = vpop.f32.mrf.mxu1 }
 0x167   :  { %5565 = vst [vmem:[#allocation30_spill] sm:$0xff] %v4859_v16  ;;  %5566 = vst [vmem:[#allocation31_spill] sm:$0xff] %v4861_v4 }
 0x168   :  { %v3525_v47 = vpop.f32.mrf.mxu0  ;;  %v3645_v55 = vpop.f32.mrf.mxu1 }
 0x16a   :  { %v4871_v0 = vpop.f32.mrf.mxu0  ;;  %v4873_v23 = vpop.f32.mrf.mxu1  ;;  %3747 = vmatmul.mubr.msk.bf16.gmra.mxu0 %vm243_vm1, %v4014_v30  ;;  %3867 = vmatmul.mubr.msk.bf16.gmra.mxu1 %vm243_vm1, %v4015_v33  ;;  %v4016_v30 = vld [vmem:[%s5464_s2 + $0x80] sm:$0xff]  }
 0x16b   :  { %5567 = vst [vmem:[#allocation32_spill] sm:$0xff] %v4871_v0  ;;  %5568 = vst [vmem:[#allocation33_spill] sm:$0xff] %v4873_v23  ;;  %3750 = vmatprep.mubr.msk.bf16.mxu0 %vm4043_vm0, %v5544_v41  ;;  %3870 = vmatprep.mubr.msk.bf16.mxu1 %vm4043_vm0, %v5544_v41  ;;  %v4017_v33 = vld [vmem:[%s5465_s3 + $0x80] sm:$0xff]  }
 0x16c   :  { %v3528_v62 = vpop.f32.mrf.mxu0  ;;  %v3648_v47 = vpop.f32.mrf.mxu1 }
 0x16e   :  { %v4883_v55 = vpop.f32.mrf.mxu0  ;;  %v4885_v4 = vpop.f32.mrf.mxu1 }
 0x16f   :  { %5569 = vst [vmem:[#allocation34_spill] sm:$0xff] %v4883_v55  ;;  %5570 = vst [vmem:[#allocation35_spill] sm:$0xff] %v4885_v4 }
 0x170   :  { %v3529_v23 = vpop.f32.mrf.mxu0  ;;  %v3649_v0 = vpop.f32.mrf.mxu1 }
 0x172   :  { %v4895_v16 = vpop.f32.mrf.mxu0  ;;  %v4897_v62 = vpop.f32.mrf.mxu1  ;;  %3751 = vmatmul.mubr.msk.bf16.gmra.mxu0 %vm243_vm1, %v4016_v30  ;;  %3871 = vmatmul.mubr.msk.bf16.gmra.mxu1 %vm243_vm1, %v4017_v33  ;;  %v4018_v30 = vld [vmem:[%s5464_s2 + $0x88] sm:$0xff]  }
 0x173   :  { %5571 = vst [vmem:[#allocation36_spill] sm:$0xff] %v4895_v16  ;;  %5572 = vst [vmem:[#allocation37_spill] sm:$0xff] %v4897_v62  ;;  %3754 = vmatprep.mubr.msk.bf16.mxu0 %vm4043_vm0, %v5544_v41  ;;  %3874 = vmatprep.mubr.msk.bf16.mxu1 %vm4043_vm0, %v5544_v41  ;;  %v4019_v33 = vld [vmem:[%s5465_s3 + $0x88] sm:$0xff]  }
 0x174   :  { %v3532_v29 = vpop.f32.mrf.mxu0  ;;  %v3652_v23 = vpop.f32.mrf.mxu1 }
 0x176   :  { %v4907_v0 = vpop.f32.mrf.mxu0  ;;  %v4909_v4 = vpop.f32.mrf.mxu1 }
 0x177   :  { %5573 = vst [vmem:[#allocation38_spill] sm:$0xff] %v4907_v0  ;;  %5574 = vst [vmem:[#allocation39_spill] sm:$0xff] %v4909_v4 }
 0x178   :  { %v3533_v62 = vpop.f32.mrf.mxu0  ;;  %v3653_v16 = vpop.f32.mrf.mxu1 }
 0x17a   :  { %v4919_v55 = vpop.f32.mrf.mxu0  ;;  %v4921_v29 = vpop.f32.mrf.mxu1  ;;  %3755 = vmatmul.mubr.msk.bf16.gmra.mxu0 %vm243_vm1, %v4018_v30  ;;  %3875 = vmatmul.mubr.msk.bf16.gmra.mxu1 %vm243_vm1, %v4019_v33  ;;  %v4020_v30 = vld [vmem:[%s5464_s2 + $0x90] sm:$0xff]  }
 0x17b   :  { %5575 = vst [vmem:[#allocation40_spill] sm:$0xff] %v4919_v55  ;;  %5576 = vst [vmem:[#allocation41_spill] sm:$0xff] %v4921_v29  ;;  %3758 = vmatprep.mubr.msk.bf16.mxu0 %vm4043_vm0, %v5544_v41  ;;  %3878 = vmatprep.mubr.msk.bf16.mxu1 %vm4043_vm0, %v5544_v41  ;;  %v4021_v33 = vld [vmem:[%s5465_s3 + $0x90] sm:$0xff]  }
 0x17c   :  { %v3536_v47 = vpop.f32.mrf.mxu0  ;;  %v3656_v62 = vpop.f32.mrf.mxu1 }
 0x17e   :  { %v4931_v16 = vpop.f32.mrf.mxu0  ;;  %v4933_v4 = vpop.f32.mrf.mxu1 }
 0x17f   :  { %5577 = vst [vmem:[#allocation42_spill] sm:$0xff] %v4931_v16  ;;  %5578 = vst [vmem:[#allocation43_spill] sm:$0xff] %v4933_v4 }
 0x180   :  { %v3537_v29 = vpop.f32.mrf.mxu0  ;;  %v3657_v55 = vpop.f32.mrf.mxu1 }
 0x182   :  { %v4943_v0 = vpop.f32.mrf.mxu0  ;;  %v4945_v47 = vpop.f32.mrf.mxu1  ;;  %3759 = vmatmul.mubr.msk.bf16.gmra.mxu0 %vm243_vm1, %v4020_v30  ;;  %3879 = vmatmul.mubr.msk.bf16.gmra.mxu1 %vm243_vm1, %v4021_v33  ;;  %v4022_v30 = vld [vmem:[%s5464_s2 + $0x98] sm:$0xff]  }
 0x183   :  { %5579 = vst [vmem:[#allocation44_spill] sm:$0xff] %v4943_v0  ;;  %5580 = vst [vmem:[#allocation45_spill] sm:$0xff] %v4945_v47  ;;  %3762 = vmatprep.mubr.msk.bf16.mxu0 %vm4043_vm0, %v5544_v41  ;;  %3882 = vmatprep.mubr.msk.bf16.mxu1 %vm4043_vm0, %v5544_v41  ;;  %v4023_v33 = vld [vmem:[%s5465_s3 + $0x98] sm:$0xff]  }
 0x184   :  { %v3540_v23 = vpop.f32.mrf.mxu0  ;;  %v3660_v29 = vpop.f32.mrf.mxu1 }
 0x186   :  { %v4955_v55 = vpop.f32.mrf.mxu0  ;;  %v4957_v4 = vpop.f32.mrf.mxu1 }
 0x187   :  { %5581 = vst [vmem:[#allocation46_spill] sm:$0xff] %v4955_v55  ;;  %5582 = vst [vmem:[#allocation47_spill] sm:$0xff] %v4957_v4 }
 0x188   :  { %v3541_v47 = vpop.f32.mrf.mxu0  ;;  %v3661_v0 = vpop.f32.mrf.mxu1 }
 0x18a   :  { %v4967_v16 = vpop.f32.mrf.mxu0  ;;  %v4969_v23 = vpop.f32.mrf.mxu1  ;;  %3763 = vmatmul.mubr.msk.bf16.gmra.mxu0 %vm243_vm1, %v4022_v30  ;;  %3883 = vmatmul.mubr.msk.bf16.gmra.mxu1 %vm243_vm1, %v4023_v33  ;;  %v4024_v30 = vld [vmem:[%s5464_s2 + $0xa0] sm:$0xff]  }
 0x18b   :  { %5583 = vst [vmem:[#allocation48_spill] sm:$0xff] %v4967_v16  ;;  %5584 = vst [vmem:[#allocation49_spill] sm:$0xff] %v4969_v23  ;;  %3766 = vmatprep.mubr.msk.bf16.mxu0 %vm4043_vm0, %v5544_v41  ;;  %3886 = vmatprep.mubr.msk.bf16.mxu1 %vm4043_vm0, %v5544_v41  ;;  %v4025_v33 = vld [vmem:[%s5465_s3 + $0xa0] sm:$0xff]  }
 0x18c   :  { %v3544_v62 = vpop.f32.mrf.mxu0  ;;  %v3664_v47 = vpop.f32.mrf.mxu1 }
 0x18e   :  { %v4979_v0 = vpop.f32.mrf.mxu0  ;;  %v4981_v4 = vpop.f32.mrf.mxu1 }
 0x18f   :  { %5585 = vst [vmem:[#allocation50_spill] sm:$0xff] %v4979_v0  ;;  %5586 = vst [vmem:[#allocation51_spill] sm:$0xff] %v4981_v4 }
 0x190   :  { %v3545_v23 = vpop.f32.mrf.mxu0  ;;  %v3665_v16 = vpop.f32.mrf.mxu1 }
 0x192   :  { %v4991_v55 = vpop.f32.mrf.mxu0  ;;  %v4993_v62 = vpop.f32.mrf.mxu1  ;;  %3767 = vmatmul.mubr.msk.bf16.gmra.mxu0 %vm243_vm1, %v4024_v30  ;;  %3887 = vmatmul.mubr.msk.bf16.gmra.mxu1 %vm243_vm1, %v4025_v33  ;;  %v4026_v30 = vld [vmem:[%s5464_s2 + $0xa8] sm:$0xff]  }
 0x193   :  { %5587 = vst [vmem:[#allocation52_spill] sm:$0xff] %v4991_v55  ;;  %5588 = vst [vmem:[#allocation53_spill] sm:$0xff] %v4993_v62  ;;  %3770 = vmatprep.mubr.msk.bf16.mxu0 %vm4043_vm0, %v5544_v41  ;;  %3890 = vmatprep.mubr.msk.bf16.mxu1 %vm4043_vm0, %v5544_v41  ;;  %v4027_v33 = vld [vmem:[%s5465_s3 + $0xa8] sm:$0xff]  }
 0x194   :  { %v3548_v29 = vpop.f32.mrf.mxu0  ;;  %v3668_v23 = vpop.f32.mrf.mxu1 }
 0x196   :  { %v5003_v16 = vpop.f32.mrf.mxu0  ;;  %v5005_v4 = vpop.f32.mrf.mxu1 }
 0x197   :  { %5589 = vst [vmem:[#allocation54_spill] sm:$0xff] %v5003_v16  ;;  %5590 = vst [vmem:[#allocation55_spill] sm:$0xff] %v5005_v4 }
 0x198   :  { %v3549_v62 = vpop.f32.mrf.mxu0  ;;  %v3669_v55 = vpop.f32.mrf.mxu1 }
 0x19a   :  { %v5015_v0 = vpop.f32.mrf.mxu0  ;;  %v5017_v29 = vpop.f32.mrf.mxu1  ;;  %3771 = vmatmul.mubr.msk.bf16.gmra.mxu0 %vm243_vm1, %v4026_v30  ;;  %3891 = vmatmul.mubr.msk.bf16.gmra.mxu1 %vm243_vm1, %v4027_v33  ;;  %v4028_v30 = vld [vmem:[%s5464_s2 + $0xb0] sm:$0xff]  }
 0x19b   :  { %5591 = vst [vmem:[#allocation56_spill] sm:$0xff] %v5015_v0  ;;  %5592 = vst [vmem:[#allocation57_spill] sm:$0xff] %v5017_v29  ;;  %3774 = vmatprep.mubr.msk.bf16.mxu0 %vm4043_vm0, %v5544_v41  ;;  %3894 = vmatprep.mubr.msk.bf16.mxu1 %vm4043_vm0, %v5544_v41  ;;  %v4029_v33 = vld [vmem:[%s5465_s3 + $0xb0] sm:$0xff]  }
 0x19c   :  { %v3552_v47 = vpop.f32.mrf.mxu0  ;;  %v3672_v62 = vpop.f32.mrf.mxu1 }
 0x19e   :  { %v5027_v55 = vpop.f32.mrf.mxu0  ;;  %v5029_v4 = vpop.f32.mrf.mxu1 }
 0x19f   :  { %5593 = vst [vmem:[#allocation58_spill] sm:$0xff] %v5027_v55  ;;  %5594 = vst [vmem:[#allocation59_spill] sm:$0xff] %v5029_v4 }
 0x1a0   :  { %v3553_v29 = vpop.f32.mrf.mxu0  ;;  %v3673_v0 = vpop.f32.mrf.mxu1 }
 0x1a2   :  { %v5039_v16 = vpop.f32.mrf.mxu0  ;;  %v5041_v47 = vpop.f32.mrf.mxu1  ;;  %3775 = vmatmul.mubr.msk.bf16.gmra.mxu0 %vm243_vm1, %v4028_v30  ;;  %3895 = vmatmul.mubr.msk.bf16.gmra.mxu1 %vm243_vm1, %v4029_v33  ;;  %v4030_v30 = vld [vmem:[%s5464_s2 + $0xb8] sm:$0xff]  }
 0x1a3   :  { %5595 = vst [vmem:[#allocation60_spill] sm:$0xff] %v5039_v16  ;;  %5596 = vst [vmem:[#allocation61_spill] sm:$0xff] %v5041_v47  ;;  %3778 = vmatprep.mubr.msk.bf16.mxu0 %vm4043_vm0, %v5544_v41  ;;  %3898 = vmatprep.mubr.msk.bf16.mxu1 %vm4043_vm0, %v5544_v41  ;;  %v4031_v33 = vld [vmem:[%s5465_s3 + $0xb8] sm:$0xff]  }
 0x1a4   :  { %v3556_v23 = vpop.f32.mrf.mxu0  ;;  %v3676_v29 = vpop.f32.mrf.mxu1 }
 0x1a6   :  { %v5051_v0 = vpop.f32.mrf.mxu0  ;;  %v5053_v4 = vpop.f32.mrf.mxu1 }
 0x1a7   :  { %5597 = vst [vmem:[#allocation62_spill] sm:$0xff] %v5051_v0  ;;  %5598 = vst [vmem:[#allocation63_spill] sm:$0xff] %v5053_v4 }
 0x1a8   :  { %v3557_v47 = vpop.f32.mrf.mxu0  ;;  %v3677_v16 = vpop.f32.mrf.mxu1 }
 0x1aa   :  { %v5063_v55 = vpop.f32.mrf.mxu0  ;;  %v5065_v23 = vpop.f32.mrf.mxu1  ;;  %3779 = vmatmul.mubr.msk.bf16.gmra.mxu0 %vm243_vm1, %v4030_v30  ;;  %3899 = vmatmul.mubr.msk.bf16.gmra.mxu1 %vm243_vm1, %v4031_v33  ;;  %v4032_v30 = vld [vmem:[%s5464_s2 + $0xc0] sm:$0xff]  }
 0x1ab   :  { %5599 = vst [vmem:[#allocation64_spill] sm:$0xff] %v5063_v55  ;;  %5600 = vst [vmem:[#allocation65_spill] sm:$0xff] %v5065_v23  ;;  %3782 = vmatprep.mubr.msk.bf16.mxu0 %vm4043_vm0, %v5544_v41  ;;  %3902 = vmatprep.mubr.msk.bf16.mxu1 %vm4043_vm0, %v5544_v41  ;;  %v4033_v33 = vld [vmem:[%s5465_s3 + $0xc0] sm:$0xff]  }
 0x1ac   :  { %v3560_v62 = vpop.f32.mrf.mxu0  ;;  %v3680_v47 = vpop.f32.mrf.mxu1 }
 0x1ad   :  { %v5603_v47 = vmax.f32 %v4391_v53, %v4394_v54  ;;  %v5604_v54 = vmax.f32 %v4403_v58, %v4405_v59  ;;  %v5605_v58 = vmax.f32 %v4415_v2, %v4418_v3  ;;  %v4037_v2 = vld [vmem:[%s5465_s3 + $0xd0] sm:$0xff]  }
 0x1ae   :  { %v5075_v16 = vpop.f32.mrf.mxu0  ;;  %v5077_v4 = vpop.f32.mrf.mxu1 }
 0x1af   :  { %5601 = vst [vmem:[#allocation66_spill] sm:$0xff] %v5075_v16  ;;  %5602 = vst [vmem:[#allocation67_spill] sm:$0xff] %v5077_v4 }
 0x1b0   :  { %v3561_v23 = vpop.f32.mrf.mxu0  ;;  %v3681_v55 = vpop.f32.mrf.mxu1 }
 0x1b2   :  { %v1533_v0 = vpop.f32.mrf.mxu0  ;;  %3783 = vmatmul.mubr.msk.bf16.gmra.mxu0 %vm243_vm1, %v4032_v30  ;;  %v2146_v62 = vpop.f32.mrf.mxu1  ;;  %3903 = vmatmul.mubr.msk.bf16.gmra.mxu1 %vm243_vm1, %v4033_v33  ;;  %v4034_v30 = vld [vmem:[%s5464_s2 + $0xc8] sm:$0xff]  }
 0x1b3   :  { %v1764_v11 = vmax.f32 %v5603_v47, %v1533_v0  ;;  %3786 = vmatprep.mubr.msk.bf16.mxu0 %vm4043_vm0, %v5544_v41  ;;  %3906 = vmatprep.mubr.msk.bf16.mxu1 %vm4043_vm0, %v5544_v41  ;;  %v4035_v33 = vld [vmem:[%s5465_s3 + $0xc8] sm:$0xff]  }
 0x1b4   :  { %v3688_v28 = vpop.f32.mrf.mxu0  ;;  %v3808_v29 = vpop.f32.mrf.mxu1 }
 0x1b5   :  { %v2377_v53 = vmax.f32 %v1764_v11, %v2146_v62  ;;  %v5108_v28 = vld [vmem:[%s5466_s5] ss:$0 sm:$0xff] }
 0x1b6   :  { %v1536_v23 = vpop.f32.mrf.mxu0  ;;  %v2149_v55 = vpop.f32.mrf.mxu1 }
 0x1b7   :  { %v1765_v0 = vmax.f32 %v5604_v54, %v1536_v23  ;;  %v2442_v11 = vadd.f32 %v5108_v28, %v2377_v53 }
 0x1b8   :  { %v3689_v29 = vpop.f32.mrf.mxu0  ;;  %v3809_v47 = vpop.f32.mrf.mxu1 }
 0x1b9   :  { %v2378_v4 = vmax.f32 %v1765_v0, %v2149_v55 }
 0x1ba   :  { %v1541_v16 = vpop.f32.mrf.mxu0  ;;  %3787 = vmatmul.mubr.msk.bf16.gmra.mxu0 %vm243_vm1, %v4034_v30  ;;  %v2154_v40 = vpop.f32.mrf.mxu1  ;;  %3907 = vmatmul.mubr.msk.bf16.gmra.mxu1 %vm243_vm1, %v4035_v33  ;;  %v4036_v33 = vld [vmem:[%s5464_s2 + $0xd0] sm:$0xff]  }
 0x1bb   :  { %v2443_v62 = vadd.f32 %v5108_v28, %v2378_v4  ;;  %v1766_v59 = vmax.f32 %v5605_v58, %v1541_v16  ;;  %3790 = vmatprep.mubr.msk.bf16.mxu0 %vm4043_vm0, %v5544_v41  ;;  %3910 = vmatprep.mubr.msk.bf16.mxu1 %vm4043_vm0, %v5544_v41  ;;  %v5606_v4 = vmax.f32 %v4427_v7, %v4429_v8 }
 0x1bc   :  { %v3692_v23 = vpop.f32.mrf.mxu0  ;;  %v3812_v55 = vpop.f32.mrf.mxu1 }
 0x1bd   :  { %v3148_v30 = vpack.c.bf16 %v2443_v62, %v2442_v11  ;;  %v2379_v3 = vmax.f32 %v1766_v59, %v2154_v40  ;;  %v5607_v40 = vmax.f32 %v4439_v14, %v4442_v15  ;;  %v4039_v14 = vld [vmem:[%s5465_s3 + $0xd8] sm:$0xff]  }
 0x1be   :  { %v1544_v54 = vpop.f32.mrf.mxu0  ;;  %v2157_v0 = vpop.f32.mrf.mxu1 }
 0x1bf   :  { %3149 = vst [vmem:[%s5467_s6] sm:$0xff] %v3148_v30   ;;  %v1767_v16 = vmax.f32 %v5606_v4, %v1544_v54  ;;  %v2444_v58 = vadd.f32 %v5108_v28, %v2379_v3 }
 0x1c0   :  { %v3693_v53 = vpop.f32.mrf.mxu0  ;;  %v3813_v29 = vpop.f32.mrf.mxu1 }
 0x1c1   :  { %v2380_v47 = vmax.f32 %v1767_v16, %v2157_v0  ;;  %v4038_v0 = vld [vmem:[%s5464_s2 + $0xd8] sm:$0xff]  }
 0x1c2   :  { %v1549_v11 = vpop.f32.mrf.mxu0  ;;  %3791 = vmatmul.mubr.msk.bf16.gmra.mxu0 %vm243_vm1, %v4036_v33  ;;  %v2162_v62 = vpop.f32.mrf.mxu1  ;;  %3911 = vmatmul.mubr.msk.bf16.gmra.mxu1 %vm243_vm1, %v4037_v2  ;;  %v5608_v33 = vmax.f32 %v4451_v19, %v4453_v20 }
 0x1c3   :  { %v2445_v23 = vadd.f32 %v5108_v28, %v2380_v47  ;;  %v1768_v59 = vmax.f32 %v5607_v40, %v1549_v11  ;;  %3794 = vmatprep.mubr.msk.bf16.mxu0 %vm4043_vm0, %v5544_v41  ;;  %3914 = vmatprep.mubr.msk.bf16.mxu1 %vm4043_vm0, %v5544_v41 }
 0x1c4   :  { %v3696_v7 = vpop.f32.mrf.mxu0  ;;  %v3816_v8 = vpop.f32.mrf.mxu1 }
 0x1c5   :  { %v3153_v55 = vpack.c.bf16 %v2445_v23, %v2444_v58  ;;  %v2381_v15 = vmax.f32 %v1768_v59, %v2162_v62  ;;  %v5609_v62 = vmax.f32 %v4463_v26, %v4466_v27  ;;  %v4040_v7 = vld [vmem:[%s5464_s2 + $0xe0] sm:$0xff]  }
 0x1c6   :  { %v1552_v30 = vpop.f32.mrf.mxu0  ;;  %v2165_v54 = vpop.f32.mrf.mxu1  ;;  %v4041_v26 = vld [vmem:[%s5465_s3 + $0xe0] sm:$0xff]  }
 0x1c7   :  { %3290 = vst [vmem:[%s5467_s6 + $0x8] sm:$0xff] %v3153_v55   ;;  %v1769_v2 = vmax.f32 %v5608_v33, %v1552_v30  ;;  %v2446_v47 = vadd.f32 %v5108_v28, %v2381_v15 }
 0x1c8   :  { %v3697_v3 = vpop.f32.mrf.mxu0  ;;  %v3817_v4 = vpop.f32.mrf.mxu1 }
 0x1c9   :  { %v2382_v16 = vmax.f32 %v1769_v2, %v2165_v54  ;;  %v5611_v2 = vmax.f32 %v4487_v38, %v4490_v39 }
 0x1ca   :  { %v1557_v53 = vpop.f32.mrf.mxu0  ;;  %3795 = vmatmul.mubr.msk.bf16.gmra.mxu0 %vm243_vm1, %v4038_v0  ;;  %v2170_v29 = vpop.f32.mrf.mxu1  ;;  %3915 = vmatmul.mubr.msk.bf16.gmra.mxu1 %vm243_vm1, %v4039_v14 }
 0x1cb   :  { %v2447_v11 = vadd.f32 %v5108_v28, %v2382_v16  ;;  %v1770_v58 = vmax.f32 %v5609_v62, %v1557_v53  ;;  %3798 = vmatprep.mubr.msk.bf16.mxu0 %vm4043_vm0, %v5544_v41  ;;  %3918 = vmatprep.mubr.msk.bf16.mxu1 %vm4043_vm0, %v5544_v41  ;;  %v5610_v41 = vmax.f32 %v4475_v31, %v4477_v32 }
 0x1cc   :  { %v3700_v19 = vpop.f32.mrf.mxu0  ;;  %v3820_v20 = vpop.f32.mrf.mxu1 }
 0x1cd   :  { %v3158_v23 = vpack.c.bf16 %v2447_v11, %v2446_v47  ;;  %v2383_v27 = vmax.f32 %v1770_v58, %v2170_v29  ;;  %v5612_v47 = vmax.f32 %v4499_v43, %v4501_v44  ;;  %v5614_v44 = vmax.f32 %v4523_v60, %v4525_v61 }
 0x1ce   :  { %v1560_v40 = vpop.f32.mrf.mxu0  ;;  %v2173_v59 = vpop.f32.mrf.mxu1  ;;  %v5616_v61 = vmax.f32 %v4547_v21, %v4549_v22  ;;  %v5618_v22 = vmax.f32 %v4571_v45, %v4573_v46  ;;  %v5620_v46 = vmax.f32 %v4595_v24, %v4597_v25  ;;  %v5622_v25 = vmax.f32 %v4619_v42, %v4621_v48 }
 0x1cf   :  { %3291 = vst [vmem:[%s5467_s6 + $0x10] sm:$0xff] %v3158_v23   ;;  %v1771_v8 = vmax.f32 %v5610_v41, %v1560_v40  ;;  %v2448_v15 = vadd.f32 %v5108_v28, %v2383_v27  ;;  %v5613_v40 = vmax.f32 %v4511_v50, %v4513_v51  ;;  %v5624_v48 = vmax.f32 %v4643_v9, %v4645_v37 }
 0x1d0   :  { %v3701_v55 = vpop.f32.mrf.mxu0  ;;  %v3821_v30 = vpop.f32.mrf.mxu1  ;;  %v5626_v9 = vmax.f32 %v4667_v13, %v4669_v52  ;;  %v5628_v13 = vld [vmem:[#allocation2_spill] sm:$0xff] }
 0x1d1   :  { %v2384_v54 = vmax.f32 %v1771_v8, %v2173_v59 }
 0x1d2   :  { %v1565_v0 = vpop.f32.mrf.mxu0  ;;  %3799 = vmatmul.mubr.msk.bf16.gmra.mxu0 %vm243_vm1, %v4040_v7  ;;  %v2178_v14 = vpop.f32.mrf.mxu1  ;;  %3919 = vmatmul.mubr.msk.bf16.gmra.mxu1 %vm243_vm1, %v4041_v26 }
 0x1d3   :  { %v2449_v33 = vadd.f32 %v5108_v28, %v2384_v54  ;;  %v1772_v3 = vmax.f32 %v5611_v2, %v1565_v0 }
 0x1d4   :  { %v3704_v4 = vpop.f32.mrf.mxu0  ;;  %v3824_v31 = vpop.f32.mrf.mxu1 }
 0x1d5   :  { %v3163_v32 = vpack.c.bf16 %v2449_v33, %v2448_v15  ;;  %v2385_v29 = vmax.f32 %v1772_v3, %v2178_v14  ;;  %v5615_v33 = vmax.f32 %v4535_v10, %v4537_v12 }
 0x1d6   :  { %v1568_v16 = vpop.f32.mrf.mxu0  ;;  %v2181_v53 = vpop.f32.mrf.mxu1 }
 0x1d7   :  { %3292 = vst [vmem:[%s5467_s6 + $0x18] sm:$0xff] %v3163_v32   ;;  %v1773_v11 = vmax.f32 %v5612_v47, %v1568_v16  ;;  %v2450_v39 = vadd.f32 %v5108_v28, %v2385_v29 }
 0x1d8   :  { %v3705_v62 = vpop.f32.mrf.mxu0  ;;  %v3825_v58 = vpop.f32.mrf.mxu1 }
 0x1d9   :  { %v2386_v19 = vmax.f32 %v1773_v11, %v2181_v53 }
 0x1da   :  { %v1573_v20 = vpop.f32.mrf.mxu0  ;;  %v2186_v38 = vpop.f32.mrf.mxu1 }
 0x1db   :  { %v2451_v23 = vadd.f32 %v5108_v28, %v2386_v19  ;;  %v1774_v59 = vmax.f32 %v5613_v40, %v1573_v20  ;;  %v5617_v19 = vmax.f32 %v4559_v34, %v4561_v36 }
 0x1dc   :  { %v3708_v7 = vpop.f32.mrf.mxu0  ;;  %v3828_v26 = vpop.f32.mrf.mxu1 }
 0x1dd   :  { %v3168_v27 = vpack.c.bf16 %v2451_v23, %v2450_v39  ;;  %v2387_v43 = vmax.f32 %v1774_v59, %v2186_v38 }
 0x1de   :  { %v1576_v41 = vpop.f32.mrf.mxu0  ;;  %v2189_v8 = vpop.f32.mrf.mxu1 }
 0x1df   :  { %3293 = vst [vmem:[%s5467_s6 + $0x20] sm:$0xff] %v3168_v27   ;;  %v1775_v55 = vmax.f32 %v5614_v44, %v1576_v41  ;;  %v2452_v51 = vadd.f32 %v5108_v28, %v2387_v43  ;;  %v5619_v44 = vmax.f32 %v4583_v1, %v4585_v6 }
 0x1e0   :  { %v3709_v30 = vpop.f32.mrf.mxu0  ;;  %v3829_v54 = vpop.f32.mrf.mxu1 }
 0x1e1   :  { %v2388_v0 = vmax.f32 %v1775_v55, %v2189_v8 }
 0x1e2   :  { %v1581_v14 = vpop.f32.mrf.mxu0  ;;  %v2194_v50 = vpop.f32.mrf.mxu1 }
 0x1e3   :  { %v2453_v15 = vadd.f32 %v5108_v28, %v2388_v0  ;;  %v1776_v2 = vmax.f32 %v5615_v33, %v1581_v14 }
 0x1e4   :  { %v3712_v3 = vpop.f32.mrf.mxu0  ;;  %v3832_v4 = vpop.f32.mrf.mxu1 }
 0x1e5   :  { %v3173_v31 = vpack.c.bf16 %v2453_v15, %v2452_v51  ;;  %v2389_v60 = vmax.f32 %v1776_v2, %v2194_v50 }
 0x1e6   :  { %v1584_v32 = vpop.f32.mrf.mxu0  ;;  %v2197_v16 = vpop.f32.mrf.mxu1 }
 0x1e7   :  { %3294 = vst [vmem:[%s5467_s6 + $0x28] sm:$0xff] %v3173_v31   ;;  %v1777_v53 = vmax.f32 %v5616_v61, %v1584_v32  ;;  %v2454_v12 = vadd.f32 %v5108_v28, %v2389_v60  ;;  %v5621_v31 = vmax.f32 %v4607_v49, %v4609_v57 }
 0x1e8   :  { %v3713_v29 = vpop.f32.mrf.mxu0  ;;  %v3833_v47 = vpop.f32.mrf.mxu1 }
 0x1e9   :  { %v2390_v11 = vmax.f32 %v1777_v53, %v2197_v16 }
 0x1ea   :  { %v1589_v62 = vpop.f32.mrf.mxu0  ;;  %v2202_v10 = vpop.f32.mrf.mxu1 }
 0x1eb   :  { %v2455_v58 = vadd.f32 %v5108_v28, %v2390_v11  ;;  %v1778_v20 = vmax.f32 %v5617_v19, %v1589_v62  ;;  %v5623_v19 = vmax.f32 %v4631_v56, %v4633_v17 }
 0x1ec   :  { %v3716_v38 = vpop.f32.mrf.mxu0  ;;  %v3836_v39 = vpop.f32.mrf.mxu1 }
 0x1ed   :  { %v3178_v23 = vpack.c.bf16 %v2455_v58, %v2454_v12  ;;  %v2391_v21 = vmax.f32 %v1778_v20, %v2202_v10 }
 0x1ee   :  { %v1592_v40 = vpop.f32.mrf.mxu0  ;;  %v2205_v59 = vpop.f32.mrf.mxu1 }
 0x1ef   :  { %3295 = vst [vmem:[%s5467_s6 + $0x30] sm:$0xff] %v3178_v23   ;;  %v1779_v7 = vmax.f32 %v5618_v22, %v1592_v40  ;;  %v2456_v36 = vadd.f32 %v5108_v28, %v2391_v21 }
 0x1f0   :  { %v3717_v26 = vpop.f32.mrf.mxu0  ;;  %v3837_v27 = vpop.f32.mrf.mxu1 }
 0x1f1   :  { %v2392_v41 = vmax.f32 %v1779_v7, %v2205_v59 }
 0x1f2   :  { %v1597_v8 = vpop.f32.mrf.mxu0  ;;  %v2210_v34 = vpop.f32.mrf.mxu1 }
 0x1f3   :  { %v2457_v43 = vadd.f32 %v5108_v28, %v2392_v41  ;;  %v1780_v55 = vmax.f32 %v5619_v44, %v1597_v8  ;;  %v5625_v8 = vmax.f32 %v4655_v5, %v4657_v63 }
 0x1f4   :  { %v3720_v30 = vpop.f32.mrf.mxu0  ;;  %v3840_v54 = vpop.f32.mrf.mxu1 }
 0x1f5   :  { %v3183_v0 = vpack.c.bf16 %v2457_v43, %v2456_v36  ;;  %v2393_v45 = vmax.f32 %v1780_v55, %v2210_v34 }
 0x1f6   :  { %v1600_v14 = vpop.f32.mrf.mxu0  ;;  %v2213_v50 = vpop.f32.mrf.mxu1 }
 0x1f7   :  { %3296 = vst [vmem:[%s5467_s6 + $0x38] sm:$0xff] %v3183_v0   ;;  %v1781_v51 = vmax.f32 %v5620_v46, %v1600_v14  ;;  %v2458_v6 = vadd.f32 %v5108_v28, %v2393_v45 }
 0x1f8   :  { %v3721_v15 = vpop.f32.mrf.mxu0  ;;  %v3841_v33 = vpop.f32.mrf.mxu1 }
 0x1f9   :  { %v2394_v2 = vmax.f32 %v1781_v51, %v2213_v50  ;;  %v5627_v51 = vmax.f32 %v4679_v35, %v4681_v18 }
 0x1fa   :  { %v1605_v3 = vpop.f32.mrf.mxu0  ;;  %v2218_v1 = vpop.f32.mrf.mxu1 }
 0x1fb   :  { %v2459_v4 = vadd.f32 %v5108_v28, %v2394_v2  ;;  %v1782_v32 = vmax.f32 %v5621_v31, %v1605_v3 }
 0x1fc   :  { %v3724_v16 = vpop.f32.mrf.mxu0  ;;  %v3844_v60 = vpop.f32.mrf.mxu1 }
 0x1fd   :  { %v3188_v61 = vpack.c.bf16 %v2459_v4, %v2458_v6  ;;  %v2395_v24 = vmax.f32 %v1782_v32, %v2218_v1  ;;  %v5629_v4 = vld [vmem:[#allocation3_spill] sm:$0xff] }
 0x1fe   :  { %v1608_v53 = vpop.f32.mrf.mxu0  ;;  %v2221_v29 = vpop.f32.mrf.mxu1  ;;  %v5630_v31 = vmax.f32 %v5628_v13, %v5629_v4  ;;  %v5646_v13 = vld [vmem:[#allocation14_spill] sm:$0xff]  ;;  %v5647_v4 = vld [vmem:[#allocation15_spill] sm:$0xff] }
 0x1ff   :  { %3297 = vst [vmem:[%s5467_s6 + $0x40] sm:$0xff] %v3188_v61   ;;  %v1783_v47 = vmax.f32 %v5622_v25, %v1608_v53  ;;  %v2460_v57 = vadd.f32 %v5108_v28, %v2395_v24  ;;  %v5631_v24 = vld [vmem:[#allocation4_spill] sm:$0xff]  ;;  %v5632_v25 = vld [vmem:[#allocation5_spill] sm:$0xff] }
 0x200   :  { %v3725_v11 = vpop.f32.mrf.mxu0  ;;  %v3845_v62 = vpop.f32.mrf.mxu1 }
 0x201   :  { %v2396_v10 = vmax.f32 %v1783_v47, %v2221_v29  ;;  %v5633_v47 = vmax.f32 %v5631_v24, %v5632_v25  ;;  %v5649_v24 = vld [vmem:[#allocation16_spill] sm:$0xff]  ;;  %v5650_v25 = vld [vmem:[#allocation17_spill] sm:$0xff] }
 0x202   :  { %v1613_v12 = vpop.f32.mrf.mxu0  ;;  %v2226_v49 = vpop.f32.mrf.mxu1 }
 0x203   :  { %v2461_v58 = vadd.f32 %v5108_v28, %v2396_v10  ;;  %v1784_v20 = vmax.f32 %v5623_v19, %v1613_v12  ;;  %v5634_v19 = vld [vmem:[#allocation6_spill] sm:$0xff] }
 0x204   :  { %v3728_v38 = vpop.f32.mrf.mxu0  ;;  %v3848_v39 = vpop.f32.mrf.mxu1 }
 0x205   :  { %v3193_v23 = vpack.c.bf16 %v2461_v58, %v2460_v57  ;;  %v2397_v42 = vmax.f32 %v1784_v20, %v2226_v49  ;;  %v5635_v20 = vld [vmem:[#allocation7_spill] sm:$0xff] }
 0x206   :  { %v1616_v40 = vpop.f32.mrf.mxu0  ;;  %v2229_v59 = vpop.f32.mrf.mxu1  ;;  %v5636_v38 = vmax.f32 %v5634_v19, %v5635_v20  ;;  %v5652_v19 = vld [vmem:[#allocation18_spill] sm:$0xff]  ;;  %v5653_v20 = vld [vmem:[#allocation19_spill] sm:$0xff] }
 0x207   :  { %3298 = vst [vmem:[%s5467_s6 + $0x48] sm:$0xff] %v3193_v23   ;;  %v1785_v21 = vmax.f32 %v5624_v48, %v1616_v40  ;;  %v2462_v17 = vadd.f32 %v5108_v28, %v2397_v42 }
 0x208   :  { %v3729_v22 = vpop.f32.mrf.mxu0  ;;  %v3849_v7 = vpop.f32.mrf.mxu1 }
 0x209   :  { %v2398_v26 = vmax.f32 %v1785_v21, %v2229_v59  ;;  %v5637_v7 = vld [vmem:[#allocation8_spill] sm:$0xff] }
 0x20a   :  { %v1621_v27 = vpop.f32.mrf.mxu0  ;;  %v2234_v56 = vpop.f32.mrf.mxu1 }
 0x20b   :  { %v2463_v41 = vadd.f32 %v5108_v28, %v2398_v26  ;;  %v1786_v34 = vmax.f32 %v5625_v8, %v1621_v27  ;;  %v5638_v26 = vld [vmem:[#allocation9_spill] sm:$0xff] }
 0x20c   :  { %v3732_v36 = vpop.f32.mrf.mxu0  ;;  %v3852_v43 = vpop.f32.mrf.mxu1  ;;  %v5639_v27 = vmax.f32 %v5637_v7, %v5638_v26  ;;  %v5655_v7 = vld [vmem:[#allocation20_spill] sm:$0xff]  ;;  %v5656_v26 = vld [vmem:[#allocation21_spill] sm:$0xff] }
 0x20d   :  { %v3198_v44 = vpack.c.bf16 %v2463_v41, %v2462_v17  ;;  %v2399_v37 = vmax.f32 %v1786_v34, %v2234_v56 }
 0x20e   :  { %v1624_v55 = vpop.f32.mrf.mxu0  ;;  %v2237_v30 = vpop.f32.mrf.mxu1 }
 0x20f   :  { %3299 = vst [vmem:[%s5467_s6 + $0x50] sm:$0xff] %v3198_v44   ;;  %v1787_v54 = vmax.f32 %v5626_v9, %v1624_v55  ;;  %v2464_v63 = vadd.f32 %v5108_v28, %v2399_v37  ;;  %v5640_v44 = vld [vmem:[#allocation10_spill] sm:$0xff]  ;;  %v5641_v55 = vld [vmem:[#allocation11_spill] sm:$0xff] }
 0x210   :  { %v3733_v0 = vpop.f32.mrf.mxu0  ;;  %v3853_v14 = vpop.f32.mrf.mxu1 }
 0x211   :  { %v2400_v50 = vmax.f32 %v1787_v54, %v2237_v30  ;;  %v5642_v30 = vmax.f32 %v5640_v44, %v5641_v55  ;;  %v5658_v44 = vld [vmem:[#allocation22_spill] sm:$0xff]  ;;  %v5659_v55 = vld [vmem:[#allocation23_spill] sm:$0xff] }
 0x212   :  { %v1629_v45 = vpop.f32.mrf.mxu0  ;;  %v2242_v5 = vpop.f32.mrf.mxu1 }
 0x213   :  { %v2465_v46 = vadd.f32 %v5108_v28, %v2400_v50  ;;  %v1788_v15 = vmax.f32 %v5627_v51, %v1629_v45 }
 0x214   :  { %v3736_v33 = vpop.f32.mrf.mxu0  ;;  %v3856_v2 = vpop.f32.mrf.mxu1 }
 0x215   :  { %v3203_v3 = vpack.c.bf16 %v2465_v46, %v2464_v63  ;;  %v2401_v52 = vmax.f32 %v1788_v15, %v2242_v5  ;;  %v5643_v63 = vld [vmem:[#allocation12_spill] sm:$0xff]  ;;  %v5644_v46 = vld [vmem:[#allocation13_spill] sm:$0xff] }
 0x216   :  { %v1632_v1 = vpop.f32.mrf.mxu0  ;;  %v2245_v6 = vpop.f32.mrf.mxu1  ;;  %v5645_v51 = vmax.f32 %v5643_v63, %v5644_v46  ;;  %v5661_v63 = vld [vmem:[#allocation24_spill] sm:$0xff]  ;;  %v5662_v46 = vld [vmem:[#allocation25_spill] sm:$0xff] }
 0x217   :  { %3300 = vst [vmem:[%s5467_s6 + $0x58] sm:$0xff] %v3203_v3   ;;  %v1789_v32 = vmax.f32 %v5630_v31, %v1632_v1  ;;  %v2466_v18 = vadd.f32 %v5108_v28, %v2401_v52  ;;  %v5648_v31 = vmax.f32 %v5646_v13, %v5647_v4  ;;  %v5664_v13 = vld [vmem:[#allocation26_spill] sm:$0xff]  ;;  %v5665_v4 = vld [vmem:[#allocation27_spill] sm:$0xff] }
 0x218   :  { %v3737_v16 = vpop.f32.mrf.mxu0  ;;  %v3857_v60 = vpop.f32.mrf.mxu1 }
 0x219   :  { %v2402_v61 = vmax.f32 %v1789_v32, %v2245_v6 }
 0x21a   :  { %v1637_v53 = vpop.f32.mrf.mxu0  ;;  %v2250_v35 = vpop.f32.mrf.mxu1 }
 0x21b   :  { %v2467_v29 = vadd.f32 %v5108_v28, %v2402_v61  ;;  %v1790_v11 = vmax.f32 %v5633_v47, %v1637_v53  ;;  %v5651_v47 = vmax.f32 %v5649_v24, %v5650_v25  ;;  %v5667_v24 = vld [vmem:[#allocation28_spill] sm:$0xff]  ;;  %v5668_v25 = vld [vmem:[#allocation29_spill] sm:$0xff] }
 0x21c   :  { %v3740_v62 = vpop.f32.mrf.mxu0  ;;  %v3860_v10 = vpop.f32.mrf.mxu1 }
 0x21d   :  { %v3208_v12 = vpack.c.bf16 %v2467_v29, %v2466_v18  ;;  %v2403_v58 = vmax.f32 %v1790_v11, %v2250_v35 }
 0x21e   :  { %v1640_v49 = vpop.f32.mrf.mxu0  ;;  %v2253_v57 = vpop.f32.mrf.mxu1 }
 0x21f   :  { %3301 = vst [vmem:[%s5467_s6 + $0x60] sm:$0xff] %v3208_v12   ;;  %v1791_v39 = vmax.f32 %v5636_v38, %v1640_v49  ;;  %v2468_v21 = vadd.f32 %v5108_v28, %v2403_v58  ;;  %v5654_v38 = vmax.f32 %v5652_v19, %v5653_v20  ;;  %v5670_v19 = vld [vmem:[#allocation30_spill] sm:$0xff]  ;;  %v5671_v20 = vld [vmem:[#allocation31_spill] sm:$0xff] }
 0x220   :  { %v3741_v23 = vpop.f32.mrf.mxu0  ;;  %v3861_v40 = vpop.f32.mrf.mxu1 }
 0x221   :  { %v2404_v59 = vmax.f32 %v1791_v39, %v2253_v57 }
 0x222   :  { %v1645_v42 = vpop.f32.mrf.mxu0  ;;  %v2258_v48 = vpop.f32.mrf.mxu1 }
 0x223   :  { %v2469_v22 = vadd.f32 %v5108_v28, %v2404_v59  ;;  %v1792_v56 = vmax.f32 %v5639_v27, %v1645_v42  ;;  %v5657_v27 = vmax.f32 %v5655_v7, %v5656_v26  ;;  %v5673_v7 = vld [vmem:[#allocation32_spill] sm:$0xff]  ;;  %v5674_v26 = vld [vmem:[#allocation33_spill] sm:$0xff] }
 0x224   :  { %v3744_v17 = vpop.f32.mrf.mxu0  ;;  %v3864_v41 = vpop.f32.mrf.mxu1 }
 0x225   :  { %v3213_v8 = vpack.c.bf16 %v2469_v22, %v2468_v21  ;;  %v2405_v43 = vmax.f32 %v1792_v56, %v2258_v48 }
 0x226   :  { %v1648_v34 = vpop.f32.mrf.mxu0  ;;  %v2261_v36 = vpop.f32.mrf.mxu1 }
 0x227   :  { %3302 = vst [vmem:[%s5467_s6 + $0x68] sm:$0xff] %v3213_v8   ;;  %v1793_v37 = vmax.f32 %v5642_v30, %v1648_v34  ;;  %v2470_v45 = vadd.f32 %v5108_v28, %v2405_v43  ;;  %v5660_v30 = vmax.f32 %v5658_v44, %v5659_v55  ;;  %v5676_v44 = vld [vmem:[#allocation34_spill] sm:$0xff]  ;;  %v5677_v55 = vld [vmem:[#allocation35_spill] sm:$0xff] }
 0x228   :  { %v3745_v9 = vpop.f32.mrf.mxu0  ;;  %v3865_v54 = vpop.f32.mrf.mxu1 }
 0x229   :  { %v2406_v0 = vmax.f32 %v1793_v37, %v2261_v36 }
 0x22a   :  { %v1653_v14 = vpop.f32.mrf.mxu0  ;;  %v2266_v50 = vpop.f32.mrf.mxu1 }
 0x22b   :  { %v2471_v5 = vadd.f32 %v5108_v28, %v2406_v0  ;;  %v1794_v15 = vmax.f32 %v5645_v51, %v1653_v14  ;;  %v5663_v51 = vmax.f32 %v5661_v63, %v5662_v46  ;;  %v5679_v63 = vld [vmem:[#allocation36_spill] sm:$0xff]  ;;  %v5680_v46 = vld [vmem:[#allocation37_spill] sm:$0xff] }
 0x22c   :  { %v3748_v33 = vpop.f32.mrf.mxu0  ;;  %v3868_v2 = vpop.f32.mrf.mxu1 }
 0x22d   :  { %v3218_v3 = vpack.c.bf16 %v2471_v5, %v2470_v45  ;;  %v2407_v52 = vmax.f32 %v1794_v15, %v2266_v50 }
 0x22e   :  { %v1656_v1 = vpop.f32.mrf.mxu0  ;;  %v2269_v6 = vpop.f32.mrf.mxu1 }
 0x22f   :  { %3303 = vst [vmem:[%s5467_s6 + $0x70] sm:$0xff] %v3218_v3   ;;  %v1795_v32 = vmax.f32 %v5648_v31, %v1656_v1  ;;  %v2472_v18 = vadd.f32 %v5108_v28, %v2407_v52  ;;  %v5666_v31 = vmax.f32 %v5664_v13, %v5665_v4  ;;  %v5682_v13 = vld [vmem:[#allocation38_spill] sm:$0xff]  ;;  %v5683_v4 = vld [vmem:[#allocation39_spill] sm:$0xff] }
 0x230   :  { %v3749_v16 = vpop.f32.mrf.mxu0  ;;  %v3869_v60 = vpop.f32.mrf.mxu1 }
 0x231   :  { %v2408_v61 = vmax.f32 %v1795_v32, %v2269_v6 }
 0x232   :  { %v1661_v53 = vpop.f32.mrf.mxu0  ;;  %v2274_v35 = vpop.f32.mrf.mxu1 }
 0x233   :  { %v2473_v29 = vadd.f32 %v5108_v28, %v2408_v61  ;;  %v1796_v11 = vmax.f32 %v5651_v47, %v1661_v53  ;;  %v5669_v47 = vmax.f32 %v5667_v24, %v5668_v25  ;;  %v5685_v24 = vld [vmem:[#allocation40_spill] sm:$0xff]  ;;  %v5686_v25 = vld [vmem:[#allocation41_spill] sm:$0xff] }
 0x234   :  { %v3752_v62 = vpop.f32.mrf.mxu0  ;;  %v3872_v10 = vpop.f32.mrf.mxu1 }
 0x235   :  { %v3223_v12 = vpack.c.bf16 %v2473_v29, %v2472_v18  ;;  %v2409_v58 = vmax.f32 %v1796_v11, %v2274_v35 }
 0x236   :  { %v1664_v49 = vpop.f32.mrf.mxu0  ;;  %v2277_v57 = vpop.f32.mrf.mxu1 }
 0x237   :  { %3304 = vst [vmem:[%s5467_s6 + $0x78] sm:$0xff] %v3223_v12   ;;  %v1797_v39 = vmax.f32 %v5654_v38, %v1664_v49  ;;  %v2474_v21 = vadd.f32 %v5108_v28, %v2409_v58  ;;  %v5672_v38 = vmax.f32 %v5670_v19, %v5671_v20  ;;  %v5688_v19 = vld [vmem:[#allocation42_spill] sm:$0xff]  ;;  %v5689_v20 = vld [vmem:[#allocation43_spill] sm:$0xff] }
 0x238   :  { %v3753_v23 = vpop.f32.mrf.mxu0  ;;  %v3873_v40 = vpop.f32.mrf.mxu1 }
 0x239   :  { %v2410_v59 = vmax.f32 %v1797_v39, %v2277_v57 }
 0x23a   :  { %v1669_v42 = vpop.f32.mrf.mxu0  ;;  %v2282_v48 = vpop.f32.mrf.mxu1 }
 0x23b   :  { %v2475_v22 = vadd.f32 %v5108_v28, %v2410_v59  ;;  %v1798_v56 = vmax.f32 %v5657_v27, %v1669_v42  ;;  %v5675_v27 = vmax.f32 %v5673_v7, %v5674_v26  ;;  %v5691_v7 = vld [vmem:[#allocation44_spill] sm:$0xff]  ;;  %v5692_v26 = vld [vmem:[#allocation45_spill] sm:$0xff] }
 0x23c   :  { %v3756_v17 = vpop.f32.mrf.mxu0  ;;  %v3876_v41 = vpop.f32.mrf.mxu1 }
 0x23d   :  { %v3228_v8 = vpack.c.bf16 %v2475_v22, %v2474_v21  ;;  %v2411_v43 = vmax.f32 %v1798_v56, %v2282_v48 }
 0x23e   :  { %v1672_v34 = vpop.f32.mrf.mxu0  ;;  %v2285_v36 = vpop.f32.mrf.mxu1 }
 0x23f   :  { %3305 = vst [vmem:[%s5467_s6 + $0x80] sm:$0xff] %v3228_v8   ;;  %v1799_v37 = vmax.f32 %v5660_v30, %v1672_v34  ;;  %v2476_v45 = vadd.f32 %v5108_v28, %v2411_v43  ;;  %v5678_v30 = vmax.f32 %v5676_v44, %v5677_v55  ;;  %v5694_v44 = vld [vmem:[#allocation46_spill] sm:$0xff]  ;;  %v5695_v55 = vld [vmem:[#allocation47_spill] sm:$0xff] }
 0x240   :  { %v3757_v9 = vpop.f32.mrf.mxu0  ;;  %v3877_v54 = vpop.f32.mrf.mxu1 }
 0x241   :  { %v2412_v0 = vmax.f32 %v1799_v37, %v2285_v36 }
 0x242   :  { %v1677_v14 = vpop.f32.mrf.mxu0  ;;  %v2290_v50 = vpop.f32.mrf.mxu1 }
 0x243   :  { %v2477_v5 = vadd.f32 %v5108_v28, %v2412_v0  ;;  %v1800_v15 = vmax.f32 %v5663_v51, %v1677_v14  ;;  %v5681_v51 = vmax.f32 %v5679_v63, %v5680_v46  ;;  %v5697_v63 = vld [vmem:[#allocation48_spill] sm:$0xff]  ;;  %v5698_v46 = vld [vmem:[#allocation49_spill] sm:$0xff] }
 0x244   :  { %v3760_v33 = vpop.f32.mrf.mxu0  ;;  %v3880_v2 = vpop.f32.mrf.mxu1 }
 0x245   :  { %v3233_v3 = vpack.c.bf16 %v2477_v5, %v2476_v45  ;;  %v2413_v52 = vmax.f32 %v1800_v15, %v2290_v50 }
 0x246   :  { %v1680_v1 = vpop.f32.mrf.mxu0  ;;  %v2293_v6 = vpop.f32.mrf.mxu1 }
 0x247   :  { %3306 = vst [vmem:[%s5467_s6 + $0x88] sm:$0xff] %v3233_v3   ;;  %v1801_v32 = vmax.f32 %v5666_v31, %v1680_v1  ;;  %v2478_v18 = vadd.f32 %v5108_v28, %v2413_v52  ;;  %v5684_v31 = vmax.f32 %v5682_v13, %v5683_v4  ;;  %v5700_v13 = vld [vmem:[#allocation50_spill] sm:$0xff]  ;;  %v5701_v4 = vld [vmem:[#allocation51_spill] sm:$0xff] }
 0x248   :  { %v3761_v16 = vpop.f32.mrf.mxu0  ;;  %v3881_v60 = vpop.f32.mrf.mxu1 }
 0x249   :  { %v2414_v61 = vmax.f32 %v1801_v32, %v2293_v6 }
 0x24a   :  { %v1685_v53 = vpop.f32.mrf.mxu0  ;;  %v2298_v35 = vpop.f32.mrf.mxu1 }
 0x24b   :  { %v2479_v29 = vadd.f32 %v5108_v28, %v2414_v61  ;;  %v1802_v11 = vmax.f32 %v5669_v47, %v1685_v53  ;;  %v5687_v47 = vmax.f32 %v5685_v24, %v5686_v25  ;;  %v5703_v24 = vld [vmem:[#allocation52_spill] sm:$0xff]  ;;  %v5704_v25 = vld [vmem:[#allocation53_spill] sm:$0xff] }
 0x24c   :  { %v3764_v62 = vpop.f32.mrf.mxu0  ;;  %v3884_v10 = vpop.f32.mrf.mxu1 }
 0x24d   :  { %v3238_v12 = vpack.c.bf16 %v2479_v29, %v2478_v18  ;;  %v2415_v58 = vmax.f32 %v1802_v11, %v2298_v35 }
 0x24e   :  { %v1688_v49 = vpop.f32.mrf.mxu0  ;;  %v2301_v57 = vpop.f32.mrf.mxu1 }
 0x24f   :  { %3307 = vst [vmem:[%s5467_s6 + $0x90] sm:$0xff] %v3238_v12   ;;  %v1803_v39 = vmax.f32 %v5672_v38, %v1688_v49  ;;  %v2480_v21 = vadd.f32 %v5108_v28, %v2415_v58  ;;  %v5690_v38 = vmax.f32 %v5688_v19, %v5689_v20  ;;  %v5706_v19 = vld [vmem:[#allocation54_spill] sm:$0xff]  ;;  %v5707_v20 = vld [vmem:[#allocation55_spill] sm:$0xff] }
 0x250   :  { %v3765_v23 = vpop.f32.mrf.mxu0  ;;  %v3885_v40 = vpop.f32.mrf.mxu1 }
 0x251   :  { %v2416_v59 = vmax.f32 %v1803_v39, %v2301_v57 }
 0x252   :  { %v1693_v42 = vpop.f32.mrf.mxu0  ;;  %v2306_v48 = vpop.f32.mrf.mxu1 }
 0x253   :  { %v2481_v22 = vadd.f32 %v5108_v28, %v2416_v59  ;;  %v1804_v56 = vmax.f32 %v5675_v27, %v1693_v42  ;;  %v5693_v27 = vmax.f32 %v5691_v7, %v5692_v26  ;;  %v5709_v7 = vld [vmem:[#allocation56_spill] sm:$0xff]  ;;  %v5710_v26 = vld [vmem:[#allocation57_spill] sm:$0xff] }
 0x254   :  { %v3768_v17 = vpop.f32.mrf.mxu0  ;;  %v3888_v41 = vpop.f32.mrf.mxu1 }
 0x255   :  { %v3243_v8 = vpack.c.bf16 %v2481_v22, %v2480_v21  ;;  %v2417_v43 = vmax.f32 %v1804_v56, %v2306_v48 }
 0x256   :  { %v1696_v34 = vpop.f32.mrf.mxu0  ;;  %v2309_v36 = vpop.f32.mrf.mxu1 }
 0x257   :  { %3308 = vst [vmem:[%s5467_s6 + $0x98] sm:$0xff] %v3243_v8   ;;  %v1805_v37 = vmax.f32 %v5678_v30, %v1696_v34  ;;  %v2482_v45 = vadd.f32 %v5108_v28, %v2417_v43  ;;  %v5696_v30 = vmax.f32 %v5694_v44, %v5695_v55  ;;  %v5712_v44 = vld [vmem:[#allocation58_spill] sm:$0xff]  ;;  %v5713_v55 = vld [vmem:[#allocation59_spill] sm:$0xff] }
 0x258   :  { %v3769_v9 = vpop.f32.mrf.mxu0  ;;  %v3889_v54 = vpop.f32.mrf.mxu1 }
 0x259   :  { %v2418_v0 = vmax.f32 %v1805_v37, %v2309_v36 }
 0x25a   :  { %v1701_v14 = vpop.f32.mrf.mxu0  ;;  %v2314_v50 = vpop.f32.mrf.mxu1 }
 0x25b   :  { %v2483_v5 = vadd.f32 %v5108_v28, %v2418_v0  ;;  %v1806_v15 = vmax.f32 %v5681_v51, %v1701_v14  ;;  %v5699_v51 = vmax.f32 %v5697_v63, %v5698_v46  ;;  %v5715_v63 = vld [vmem:[#allocation60_spill] sm:$0xff]  ;;  %v5716_v46 = vld [vmem:[#allocation61_spill] sm:$0xff] }
 0x25c   :  { %v3772_v33 = vpop.f32.mrf.mxu0  ;;  %v3892_v2 = vpop.f32.mrf.mxu1 }
 0x25d   :  { %v3248_v3 = vpack.c.bf16 %v2483_v5, %v2482_v45  ;;  %v2419_v52 = vmax.f32 %v1806_v15, %v2314_v50 }
 0x25e   :  { %v1704_v1 = vpop.f32.mrf.mxu0  ;;  %v2317_v6 = vpop.f32.mrf.mxu1 }
 0x25f   :  { %3309 = vst [vmem:[%s5467_s6 + $0xa0] sm:$0xff] %v3248_v3   ;;  %v1807_v32 = vmax.f32 %v5684_v31, %v1704_v1  ;;  %v2484_v18 = vadd.f32 %v5108_v28, %v2419_v52  ;;  %v5702_v31 = vmax.f32 %v5700_v13, %v5701_v4  ;;  %v5718_v13 = vld [vmem:[#allocation62_spill] sm:$0xff]  ;;  %v5719_v4 = vld [vmem:[#allocation63_spill] sm:$0xff] }
 0x260   :  { %v3773_v16 = vpop.f32.mrf.mxu0  ;;  %v3893_v60 = vpop.f32.mrf.mxu1 }
 0x261   :  { %v2420_v61 = vmax.f32 %v1807_v32, %v2317_v6 }
 0x262   :  { %v1709_v53 = vpop.f32.mrf.mxu0  ;;  %v2322_v35 = vpop.f32.mrf.mxu1 }
 0x263   :  { %v2485_v29 = vadd.f32 %v5108_v28, %v2420_v61  ;;  %v1808_v11 = vmax.f32 %v5687_v47, %v1709_v53  ;;  %v5705_v47 = vmax.f32 %v5703_v24, %v5704_v25  ;;  %v5721_v24 = vld [vmem:[#allocation64_spill] sm:$0xff]  ;;  %v5722_v25 = vld [vmem:[#allocation65_spill] sm:$0xff] }
 0x264   :  { %v3776_v62 = vpop.f32.mrf.mxu0  ;;  %v3896_v10 = vpop.f32.mrf.mxu1 }
 0x265   :  { %v3253_v12 = vpack.c.bf16 %v2485_v29, %v2484_v18  ;;  %v2421_v58 = vmax.f32 %v1808_v11, %v2322_v35 }
 0x266   :  { %v1712_v49 = vpop.f32.mrf.mxu0  ;;  %v2325_v57 = vpop.f32.mrf.mxu1 }
 0x267   :  { %3310 = vst [vmem:[%s5467_s6 + $0xa8] sm:$0xff] %v3253_v12   ;;  %v1809_v39 = vmax.f32 %v5690_v38, %v1712_v49  ;;  %v2486_v21 = vadd.f32 %v5108_v28, %v2421_v58  ;;  %v5708_v38 = vmax.f32 %v5706_v19, %v5707_v20  ;;  %v5724_v19 = vld [vmem:[#allocation66_spill] sm:$0xff]  ;;  %v5725_v20 = vld [vmem:[#allocation67_spill] sm:$0xff] }
 0x268   :  { %v3777_v23 = vpop.f32.mrf.mxu0  ;;  %v3897_v40 = vpop.f32.mrf.mxu1 }
 0x269   :  { %v2422_v59 = vmax.f32 %v1809_v39, %v2325_v57 }
 0x26a   :  { %v1717_v42 = vpop.f32.mrf.mxu0  ;;  %v2330_v48 = vpop.f32.mrf.mxu1 }
 0x26b   :  { %v2487_v22 = vadd.f32 %v5108_v28, %v2422_v59  ;;  %v1810_v56 = vmax.f32 %v5693_v27, %v1717_v42  ;;  %v5711_v27 = vmax.f32 %v5709_v7, %v5710_v26 }
 0x26c   :  { %v3780_v17 = vpop.f32.mrf.mxu0  ;;  %v3900_v41 = vpop.f32.mrf.mxu1 }
 0x26d   :  { %v3258_v8 = vpack.c.bf16 %v2487_v22, %v2486_v21  ;;  %v2423_v43 = vmax.f32 %v1810_v56, %v2330_v48 }
 0x26e   :  { %v1720_v34 = vpop.f32.mrf.mxu0  ;;  %v2333_v36 = vpop.f32.mrf.mxu1 }
 0x26f   :  { %3311 = vst [vmem:[%s5467_s6 + $0xb0] sm:$0xff] %v3258_v8   ;;  %v1811_v37 = vmax.f32 %v5696_v30, %v1720_v34  ;;  %v2488_v45 = vadd.f32 %v5108_v28, %v2423_v43  ;;  %v5714_v30 = vmax.f32 %v5712_v44, %v5713_v55 }
 0x270   :  { %v3781_v9 = vpop.f32.mrf.mxu0  ;;  %v3901_v54 = vpop.f32.mrf.mxu1 }
 0x271   :  { %v2424_v0 = vmax.f32 %v1811_v37, %v2333_v36 }
 0x272   :  { %v1725_v14 = vpop.f32.mrf.mxu0  ;;  %v2338_v50 = vpop.f32.mrf.mxu1 }
 0x273   :  { %v2489_v5 = vadd.f32 %v5108_v28, %v2424_v0  ;;  %v1812_v15 = vmax.f32 %v5699_v51, %v1725_v14  ;;  %v5717_v51 = vmax.f32 %v5715_v63, %v5716_v46 }
 0x274   :  { %v3784_v33 = vpop.f32.mrf.mxu0  ;;  %v3904_v2 = vpop.f32.mrf.mxu1 }
 0x275   :  { %v3263_v3 = vpack.c.bf16 %v2489_v5, %v2488_v45  ;;  %v2425_v52 = vmax.f32 %v1812_v15, %v2338_v50 }
 0x276   :  { %v1728_v1 = vpop.f32.mrf.mxu0  ;;  %v2341_v6 = vpop.f32.mrf.mxu1 }
 0x277   :  { %3312 = vst [vmem:[%s5467_s6 + $0xb8] sm:$0xff] %v3263_v3   ;;  %v1813_v32 = vmax.f32 %v5702_v31, %v1728_v1  ;;  %v2490_v18 = vadd.f32 %v5108_v28, %v2425_v52  ;;  %v5720_v31 = vmax.f32 %v5718_v13, %v5719_v4 }
 0x278   :  { %v3785_v16 = vpop.f32.mrf.mxu0  ;;  %v3905_v60 = vpop.f32.mrf.mxu1 }
 0x279   :  { %v2426_v61 = vmax.f32 %v1813_v32, %v2341_v6 }
 0x27a   :  { %v1733_v53 = vpop.f32.mrf.mxu0  ;;  %v2346_v35 = vpop.f32.mrf.mxu1 }
 0x27b   :  { %v2491_v29 = vadd.f32 %v5108_v28, %v2426_v61  ;;  %v1814_v11 = vmax.f32 %v5705_v47, %v1733_v53  ;;  %v5723_v47 = vmax.f32 %v5721_v24, %v5722_v25 }
 0x27c   :  { %v3788_v62 = vpop.f32.mrf.mxu0  ;;  %v3908_v10 = vpop.f32.mrf.mxu1 }
 0x27d   :  { %v3268_v12 = vpack.c.bf16 %v2491_v29, %v2490_v18  ;;  %v2427_v58 = vmax.f32 %v1814_v11, %v2346_v35 }
 0x27e   :  { %v1736_v49 = vpop.f32.mrf.mxu0  ;;  %v2349_v57 = vpop.f32.mrf.mxu1 }
 0x27f   :  { %3313 = vst [vmem:[%s5467_s6 + $0xc0] sm:$0xff] %v3268_v12   ;;  %v1815_v39 = vmax.f32 %v5708_v38, %v1736_v49  ;;  %v2492_v21 = vadd.f32 %v5108_v28, %v2427_v58  ;;  %v5726_v38 = vmax.f32 %v5724_v19, %v5725_v20 }
 0x280   :  { %v3789_v23 = vpop.f32.mrf.mxu0  ;;  %v3909_v40 = vpop.f32.mrf.mxu1 }
 0x281   :  { %v2428_v59 = vmax.f32 %v1815_v39, %v2349_v57 }
 0x282   :  { %v1741_v42 = vpop.f32.mrf.mxu0  ;;  %v2354_v48 = vpop.f32.mrf.mxu1 }
 0x283   :  { %v2493_v22 = vadd.f32 %v5108_v28, %v2428_v59  ;;  %v1816_v56 = vmax.f32 %v5711_v27, %v1741_v42 }
 0x284   :  { %v3792_v17 = vpop.f32.mrf.mxu0  ;;  %v3912_v41 = vpop.f32.mrf.mxu1 }
 0x285   :  { %v3273_v8 = vpack.c.bf16 %v2493_v22, %v2492_v21  ;;  %v2429_v43 = vmax.f32 %v1816_v56, %v2354_v48 }
 0x286   :  { %v1744_v34 = vpop.f32.mrf.mxu0  ;;  %v2357_v36 = vpop.f32.mrf.mxu1 }
 0x287   :  { %3314 = vst [vmem:[%s5467_s6 + $0xc8] sm:$0xff] %v3273_v8   ;;  %v1817_v37 = vmax.f32 %v5714_v30, %v1744_v34  ;;  %v2494_v45 = vadd.f32 %v5108_v28, %v2429_v43 }
 0x288   :  { %v3793_v9 = vpop.f32.mrf.mxu0  ;;  %v3913_v54 = vpop.f32.mrf.mxu1 }
 0x289   :  { %v2430_v0 = vmax.f32 %v1817_v37, %v2357_v36 }
 0x28a   :  { %v1749_v14 = vpop.f32.mrf.mxu0  ;;  %v2362_v50 = vpop.f32.mrf.mxu1 }
 0x28b   :  { %v2495_v5 = vadd.f32 %v5108_v28, %v2430_v0  ;;  %v1818_v15 = vmax.f32 %v5717_v51, %v1749_v14 }
 0x28c   :  { %v3796_v33 = vpop.f32.mrf.mxu0  ;;  %v3916_v2 = vpop.f32.mrf.mxu1 }
 0x28d   :  { %v3278_v3 = vpack.c.bf16 %v2495_v5, %v2494_v45  ;;  %v2431_v52 = vmax.f32 %v1818_v15, %v2362_v50 }
 0x28e   :  { %v1752_v1 = vpop.f32.mrf.mxu0  ;;  %v2365_v6 = vpop.f32.mrf.mxu1 }
 0x28f   :  { %3315 = vst [vmem:[%s5467_s6 + $0xd0] sm:$0xff] %v3278_v3   ;;  %v1819_v32 = vmax.f32 %v5720_v31, %v1752_v1  ;;  %v2496_v18 = vadd.f32 %v5108_v28, %v2431_v52 }
 0x290   :  { %v3797_v16 = vpop.f32.mrf.mxu0  ;;  %v3917_v60 = vpop.f32.mrf.mxu1 }
 0x291   :  { %v2432_v61 = vmax.f32 %v1819_v32, %v2365_v6 }
 0x292   :  { %v1757_v53 = vpop.f32.mrf.mxu0  ;;  %v2370_v35 = vpop.f32.mrf.mxu1 }
 0x293   :  { %v2497_v29 = vadd.f32 %v5108_v28, %v2432_v61  ;;  %v1820_v11 = vmax.f32 %v5723_v47, %v1757_v53 }
 0x294   :  { %v3800_v62 = vpop.f32.mrf.mxu0  ;;  %v3920_v10 = vpop.f32.mrf.mxu1 }
 0x295   :  { %v3283_v12 = vpack.c.bf16 %v2497_v29, %v2496_v18  ;;  %v2433_v58 = vmax.f32 %v1820_v11, %v2370_v35 }
 0x296   :  { %v1760_v49 = vpop.f32.mrf.mxu0  ;;  %v2373_v57 = vpop.f32.mrf.mxu1 }
 0x297   :  { %3316 = vst [vmem:[%s5467_s6 + $0xd8] sm:$0xff] %v3283_v12   ;;  %v1821_v39 = vmax.f32 %v5726_v38, %v1760_v49  ;;  %v2498_v42 = vadd.f32 %v5108_v28, %v2433_v58 }
 0x298   :  { %v3801_v23 = vpop.f32.mrf.mxu0  ;;  %v3921_v40 = vpop.f32.mrf.mxu1 }
 0x299   :  { %v2434_v59 = vmax.f32 %v1821_v39, %v2373_v57 }
 0x29b   :  { %v2499_v48 = vadd.f32 %v5108_v28, %v2434_v59 }
 0x29d   :  { %v3288_v21 = vpack.c.bf16 %v2499_v48, %v2498_v42 }
 0x29f   :  { %3317 = vst [vmem:[%s5467_s6 + $0xe0] sm:$0xff] %v3288_v21  }

// kernel: cifar10_cnn_forward.4
= control target key start
LH: loop header
LB: loop body
LE: loop exit
PB: predicated region body
PF: predicated region fallthrough
CT: control target
= control target key end

     0   :  { %v1854_v0 = vmov 0.0   ;;  %vm1855_vm0 = vmmov 0   ;;  %vm263_vm1 = vcmask 261120   ;;  %s2482_s4 = inlined_call_operand.vmem [shape: bf16[288,128], index: 4, kind: input, shape index: {}]   ;;  %s2483_s0 = inlined_call_operand.vmem [shape: bf16[80,288], index: 0, kind: input, shape index: {}]   ;;  %s2484_s1 = inlined_call_operand.vmem [shape: bf16[80,288], index: 1, kind: input, shape index: {}]   ;;  %s2485_s2 = inlined_call_operand.vmem [shape: bf16[80,288], index: 2, kind: input, shape index: {}]   ;;  %s2486_s3 = inlined_call_operand.vmem [shape: bf16[80,288], index: 3, kind: input, shape index: {}]   ;;  %s2487_s5 = inlined_call_operand.vmem [shape: f32[1,128], index: 5, kind: input, shape index: {}]   ;;  %s2488_s6 = inlined_call_operand.vmem [shape: bf16[80,128], index: 6, kind: output, shape index: {}]  }
   0x1   :  { %1654 = vmatprep.subr.bf16.mxu1 %v1854_v0  ;;  %v1895_v1 = vld [vmem:[%s2482_s4 + $0x78] sm:$0xff]   ;;  %1658 = vmatprep.mubr.msk.bf16.mxu1 %vm1855_vm0, %v1854_v0  ;;  %v1902_v2 = vld [vmem:[%s2482_s4 + $0x88] sm:$0xff]   ;;  %v1914_v4 = vld [vmem:[%s2482_s4 + $0x70] sm:$0xff]  }
   0x2   :  { %1442 = vmatprep.subr.bf16.mxu0 %v1895_v1  ;;  %v1908_v3 = vld [vmem:[%s2482_s4 + $0x38] sm:$0xff]   ;;  %1655 = vmatpush3.bf16.msra.mxu1 %v1902_v2  ;;  %v1921_v5 = vld [vmem:[%s2482_s4 + $0x80] sm:$0xff]   ;;  %v1927_v6 = vld [vmem:[%s2482_s4 + $0x30] sm:$0xff]  }
   0x3   :  { %1443 = vmatpush3.bf16.msra.mxu0 %v1908_v3  ;;  %1656 = vmatprep.subr.bf16.mxu1 %v1854_v0  ;;  %v1762_v7 = vld [vmem:[%s2483_s0 + $0x8] ss:$12 sps:$4 sm:$0xff]   ;;  %v1949_v10 = vld [vmem:[%s2482_s4 + $0x60] sm:$0xff]   ;;  %v1966_v12 = vld [vmem:[%s2482_s4 + $0x58] sm:$0xff]  }
   0x4   :  { %1444 = vmatprep.subr.bf16.mxu0 %v1914_v4  ;;  %v1936_v8 = vld [vmem:[%s2482_s4 + $0x68] sm:$0xff]   ;;  %v1959_v11 = vld [vmem:[%s2482_s4 + $0x20] sm:$0xff]   ;;  %v1976_v14 = vld [vmem:[%s2482_s4 + $0x18] sm:$0xff]  }
   0x5   :  { %v1942_v9 = vld [vmem:[%s2482_s4 + $0x28] sm:$0xff]   ;;  %v1983_v15 = vld [vmem:[%s2482_s4 + $0x50] sm:$0xff]   ;;  %v1772_v17 = vld [vmem:[%s2483_s0 + $0x38] ss:$12 sps:$4 sm:$0xff]  }
   0x6   :  { %1657 = vmatpush3.bf16.msra.mxu1 %v1921_v5  ;;  %v1767_v13 = vld [vmem:[%s2483_s0 + $0x20] ss:$12 sps:$4 sm:$0xff]   ;;  %v1989_v16 = vld [vmem:[%s2482_s4 + $0x10] sm:$0xff]   ;;  %v1781_v25 = vld [vmem:[%s2483_s0 + $0x1c] ss:$12 sps:$4 sm:$0xff]  }
   0x7   :  { %1445 = vmatpush3.bf16.msra.mxu0 %v1927_v6  ;;  %1495 = vmatprep.subr.bf16.mxu1 %v1895_v1  ;;  %v2003_v18 = vld [vmem:[%s2482_s4 + $0x48] sm:$0xff]   ;;  %v1779_v19 = vld [vmem:[%s2483_s0 + $0x4] ss:$12 sps:$4 sm:$0xff]   ;;  %v1788_v29 = vld [vmem:[%s2483_s0 + $0x34] ss:$12 sps:$4 sm:$0xff]  }
   0x8   :  { %1446 = vmatprep.subr.bf16.mxu0 %v1936_v8  ;;  %v2013_v20 = vld [vmem:[%s2482_s4 + $0x8] sm:$0xff]   ;;  %311 = vmatprep.mubr.bf16.mxu0 %v1779_v19  ;;  %v2019_v21 = vld [vmem:[%s2482_s4 + $0x40] sm:$0xff]   ;;  %v1780_v23 = vld [vmem:[%s2483_s0 + $0x50] ss:$12 sps:$4 sm:$0xff]  }
   0x9   :  { %1659 = vmatmul.mubr.msk.bf16.vlgmr.msra.gmra.mxu1 %vm263_vm1, %v1762_v7  ;;  %v2030_v22 = vld [vmem:[%s2482_s4] sm:$0xff]   ;;  %v1783_v26 = vld [vmem:[%s2483_s0 + $0x68] ss:$12 sps:$4 sm:$0xff]   ;;  %v1790_v31 = vld [vmem:[%s2483_s0 + $0x30] ss:$12 sps:$4 sm:$0xff]  }
   0xa   :  { %1662 = vmatprep.mubr.msk.bf16.mxu1 %vm1855_vm0, %v1854_v0  ;;  %1496 = vmatpush3.bf16.msra.mxu1 %v1908_v3  ;;  %v1777_v24 = vld [vmem:[%s2483_s0] ss:$12 sps:$4 sm:$0xff]   ;;  %v1784_v27 = vld [vmem:[%s2483_s0 + $0x18] ss:$12 sps:$4 sm:$0xff]   ;;  %v1791_v32 = vld [vmem:[%s2484_s1 + $0x1c] ss:$12 sps:$4 sm:$0xff]  }
   0xb   :  { %1447 = vmatpush3.bf16.msra.mxu0 %v1942_v9  ;;  %1497 = vmatprep.subr.bf16.mxu1 %v1914_v4  ;;  %v1787_v28 = vld [vmem:[%s2484_s1 + $0x4] ss:$12 sps:$4 sm:$0xff]   ;;  %v1785_v30 = vld [vmem:[%s2484_s1] ss:$12 sps:$4 sm:$0xff]   ;;  %v1796_v35 = vld [vmem:[%s2483_s0 + $0x48] ss:$12 sps:$4 sm:$0xff]  }
   0xc   :  { %1448 = vmatprep.subr.bf16.mxu0 %v1949_v10  ;;  %v1793_v33 = vld [vmem:[%s2483_s0 + $0x4c] ss:$12 sps:$4 sm:$0xff]   ;;  %v1797_v36 = vld [vmem:[%s2484_s1 + $0x34] ss:$12 sps:$4 sm:$0xff]   ;;  %v1799_v37 = vld [vmem:[%s2483_s0 + $0x64] ss:$12 sps:$4 sm:$0xff]  }
   0xd   :  { %v1795_v34 = vld [vmem:[%s2484_s1 + $0x18] ss:$12 sps:$4 sm:$0xff]   ;;  %v1801_v38 = vld [vmem:[%s2484_s1 + $0x30] ss:$12 sps:$4 sm:$0xff]   ;;  %v1802_v39 = vld [vmem:[%s2483_s0 + $0x60] ss:$12 sps:$4 sm:$0xff]  }
   0xe   :  { %1498 = vmatpush3.bf16.msra.mxu1 %v1927_v6  ;;  %v1803_v40 = vld [vmem:[%s2484_s1 + $0x4c] ss:$12 sps:$4 sm:$0xff]   ;;  %v1805_v41 = vld [vmem:[%s2484_s1 + $0x48] ss:$12 sps:$4 sm:$0xff]   ;;  %v1807_v43 = vld [vmem:[%s2484_s1 + $0x64] ss:$12 sps:$4 sm:$0xff]  }
   0xf   :  { %1449 = vmatpush3.bf16.msra.mxu0 %v1959_v11  ;;  %1499 = vmatprep.subr.bf16.mxu1 %v1936_v8  ;;  %v1806_v42 = vld [vmem:[%s2484_s1 + $0x8] ss:$12 sps:$4 sm:$0xff]   ;;  %v1809_v44 = vld [vmem:[%s2484_s1 + $0x60] ss:$12 sps:$4 sm:$0xff]   ;;  %v1813_v46 = vld [vmem:[%s2485_s2 + $0x4] ss:$12 sps:$4 sm:$0xff]  }
  0x10   :  { %1450 = vmatprep.subr.bf16.mxu0 %v1966_v12  ;;  %v1810_v45 = vld [vmem:[%s2484_s1 + $0x20] ss:$12 sps:$4 sm:$0xff]   ;;  %v1814_v48 = vld [vmem:[%s2484_s1 + $0x38] ss:$12 sps:$4 sm:$0xff]   ;;  %v1815_v49 = vld [vmem:[%s2485_s2 + $0x1c] ss:$12 sps:$4 sm:$0xff]  }
  0x11   :  { %1663 = vmatmul.mubr.msk.bf16.gmra.mxu1 %vm263_vm1, %v1767_v13  ;;  %v1811_v47 = vld [vmem:[%s2485_s2] ss:$12 sps:$4 sm:$0xff]   ;;  %v1817_v50 = vld [vmem:[%s2485_s2 + $0x18] ss:$12 sps:$4 sm:$0xff]   ;;  %v1818_v51 = vld [vmem:[%s2484_s1 + $0x50] ss:$12 sps:$4 sm:$0xff]  }
  0x12   :  { %1666 = vmatprep.mubr.msk.bf16.mxu1 %vm1855_vm0, %v1854_v0  ;;  %1500 = vmatpush3.bf16.msra.mxu1 %v1942_v9  ;;  %v1819_v52 = vld [vmem:[%s2485_s2 + $0x34] ss:$12 sps:$4 sm:$0xff]   ;;  %v1821_v53 = vld [vmem:[%s2485_s2 + $0x30] ss:$12 sps:$4 sm:$0xff]   ;;  %v1823_v55 = vld [vmem:[%s2485_s2 + $0x4c] ss:$12 sps:$4 sm:$0xff]  }
  0x13   :  { %1451 = vmatpush3.bf16.msra.mxu0 %v1976_v14  ;;  %1501 = vmatprep.subr.bf16.mxu1 %v1949_v10  ;;  %v1822_v54 = vld [vmem:[%s2484_s1 + $0x68] ss:$12 sps:$4 sm:$0xff]   ;;  %v1827_v58 = vld [vmem:[%s2485_s2 + $0x64] ss:$12 sps:$4 sm:$0xff]   ;;  %v1829_v59 = vld [vmem:[%s2485_s2 + $0x60] ss:$12 sps:$4 sm:$0xff]  }
  0x14   :  { %1452 = vmatprep.subr.bf16.mxu0 %v1983_v15  ;;  %v1825_v56 = vld [vmem:[%s2485_s2 + $0x48] ss:$12 sps:$4 sm:$0xff]   ;;  %v1830_v60 = vld [vmem:[%s2485_s2 + $0x20] ss:$12 sps:$4 sm:$0xff]   ;;  %v1833_v61 = vld [vmem:[%s2486_s3 + $0x4] ss:$12 sps:$4 sm:$0xff]  }
  0x15   :  { %v1826_v57 = vld [vmem:[%s2485_s2 + $0x8] ss:$12 sps:$4 sm:$0xff]   ;;  %v1831_v62 = vld [vmem:[%s2486_s3] ss:$12 sps:$4 sm:$0xff]   ;;  %v1834_v63 = vld [vmem:[%s2485_s2 + $0x38] ss:$12 sps:$4 sm:$0xff]  }
  0x16   :  { %1502 = vmatpush3.bf16.msra.mxu1 %v1959_v11  ;;  %v1842_v7 = vld [vmem:[%s2485_s2 + $0x68] ss:$12 sps:$4 sm:$0xff]  }
  0x17   :  { %1453 = vmatpush3.bf16.msra.mxu0 %v1989_v16  ;;  %1503 = vmatprep.subr.bf16.mxu1 %v1966_v12  ;;  %v1851_v13 = vld [vmem:[%s2486_s3 + $0x68] ss:$12 sps:$4 sm:$0xff]  }
  0x18   :  { %1454 = vmatprep.subr.bf16.mxu0 %v2003_v18 }
  0x19   :  { %1667 = vmatmul.mubr.msk.bf16.gmra.mxu1 %vm263_vm1, %v1772_v17 }
  0x1a   :  { %1670 = vmatprep.mubr.msk.bf16.mxu1 %vm1855_vm0, %v1854_v0  ;;  %1504 = vmatpush3.bf16.msra.mxu1 %v1976_v14 }
  0x1b   :  { %1455 = vmatpush3.bf16.msra.mxu0 %v2013_v20  ;;  %1505 = vmatprep.subr.bf16.mxu1 %v1983_v15 }
  0x1c   :  { %1456 = vmatprep.subr.bf16.mxu0 %v2019_v21 }
  0x1e   :  { %1506 = vmatpush3.bf16.msra.mxu1 %v1989_v16 }
  0x1f   :  { %1457 = vmatpush3.bf16.msra.mxu0 %v2030_v22  ;;  %1507 = vmatprep.subr.bf16.mxu1 %v2003_v18 }
  0x20   :  { %1678 = vmatprep.subr.bf16.mxu0 %v1854_v0 }
  0x21   :  { %1671 = vmatmul.mubr.msk.bf16.gmra.mxu1 %vm263_vm1, %v1780_v23 }
  0x22   :  { %312 = vmatmul.mubr.bf16.vlgmr.msra.gmra.mxu0 %v1777_v24  ;;  %1674 = vmatprep.mubr.msk.bf16.mxu1 %vm1855_vm0, %v1854_v0 }
  0x23   :  { %1679 = vmatpush3.bf16.msra.mxu0 %v1902_v2  ;;  %319 = vmatprep.mubr.bf16.mxu0 %v1781_v25 }
  0x24   :  { %1508 = vmatpush3.bf16.msra.mxu1 %v2013_v20  ;;  %1680 = vmatprep.subr.bf16.mxu0 %v1854_v0 }
  0x25   :  { %1509 = vmatprep.subr.bf16.mxu1 %v2019_v21 }
  0x27   :  { %1681 = vmatpush3.bf16.msra.mxu0 %v1921_v5 }
  0x28   :  { %1510 = vmatpush3.bf16.msra.mxu1 %v2030_v22  ;;  %1702 = vmatprep.subr.bf16.mxu0 %v1854_v0 }
  0x29   :  { %1675 = vmatmul.mubr.msk.bf16.gmra.mxu1 %vm263_vm1, %v1783_v26  ;;  %1548 = vmatprep.subr.bf16.mxu1 %v1895_v1 }
  0x2a   :  { %320 = vmatmul.mubr.bf16.gmra.mxu0 %v1784_v27  ;;  %567 = vmatprep.mubr.bf16.mxu1 %v1787_v28 }
  0x2b   :  { %327 = vmatprep.mubr.bf16.mxu0 %v1788_v29 }
  0x31   :  { %568 = vmatmul.mubr.bf16.vlgmr.msra.gmra.mxu1 %v1785_v30 }
  0x32   :  { %328 = vmatmul.mubr.bf16.gmra.mxu0 %v1790_v31  ;;  %575 = vmatprep.mubr.bf16.mxu1 %v1791_v32 }
  0x33   :  { %335 = vmatprep.mubr.bf16.mxu0 %v1793_v33  ;;  %1549 = vmatpush3.bf16.msra.mxu1 %v1908_v3 }
  0x34   :  { %1550 = vmatprep.subr.bf16.mxu1 %v1914_v4 }
  0x37   :  { %1551 = vmatpush3.bf16.msra.mxu1 %v1927_v6 }
  0x38   :  { %1552 = vmatprep.subr.bf16.mxu1 %v1936_v8 }
  0x39   :  { %576 = vmatmul.mubr.bf16.gmra.mxu1 %v1795_v34 }
  0x3a   :  { %336 = vmatmul.mubr.bf16.gmra.mxu0 %v1796_v35  ;;  %583 = vmatprep.mubr.bf16.mxu1 %v1797_v36 }
  0x3b   :  { %343 = vmatprep.mubr.bf16.mxu0 %v1799_v37  ;;  %1553 = vmatpush3.bf16.msra.mxu1 %v1942_v9 }
  0x3c   :  { %1554 = vmatprep.subr.bf16.mxu1 %v1949_v10 }
  0x3f   :  { %1555 = vmatpush3.bf16.msra.mxu1 %v1959_v11 }
  0x40   :  { %1556 = vmatprep.subr.bf16.mxu1 %v1966_v12 }
  0x41   :  { %584 = vmatmul.mubr.bf16.gmra.mxu1 %v1801_v38 }
  0x42   :  { %344 = vmatmul.mubr.bf16.gmra.mxu0 %v1802_v39  ;;  %591 = vmatprep.mubr.bf16.mxu1 %v1803_v40 }
  0x43   :  { %1682 = vmatprep.mubr.msk.bf16.mxu0 %vm1855_vm0, %v1854_v0  ;;  %1557 = vmatpush3.bf16.msra.mxu1 %v1976_v14 }
  0x44   :  { %1558 = vmatprep.subr.bf16.mxu1 %v1983_v15 }
  0x47   :  { %1559 = vmatpush3.bf16.msra.mxu1 %v1989_v16 }
  0x48   :  { %1560 = vmatprep.subr.bf16.mxu1 %v2003_v18 }
  0x49   :  { %592 = vmatmul.mubr.bf16.gmra.mxu1 %v1805_v41 }
  0x4a   :  { %1683 = vmatmul.mubr.msk.bf16.vlgmr.msra.gmra.mxu0 %vm263_vm1, %v1806_v42  ;;  %599 = vmatprep.mubr.bf16.mxu1 %v1807_v43 }
  0x4b   :  { %1703 = vmatpush3.bf16.msra.mxu0 %v1902_v2  ;;  %1686 = vmatprep.mubr.msk.bf16.mxu0 %vm1855_vm0, %v1854_v0 }
  0x4c   :  { %1561 = vmatpush3.bf16.msra.mxu1 %v2013_v20  ;;  %1704 = vmatprep.subr.bf16.mxu0 %v1854_v0 }
  0x4d   :  { %1562 = vmatprep.subr.bf16.mxu1 %v2019_v21 }
  0x4f   :  { %1705 = vmatpush3.bf16.msra.mxu0 %v1921_v5 }
  0x50   :  { %1563 = vmatpush3.bf16.msra.mxu1 %v2030_v22  ;;  %1726 = vmatprep.subr.bf16.mxu0 %v1854_v0 }
  0x51   :  { %600 = vmatmul.mubr.bf16.gmra.mxu1 %v1809_v44  ;;  %1601 = vmatprep.subr.bf16.mxu1 %v1895_v1  ;;  %v1835_v1 = vld [vmem:[%s2486_s3 + $0x1c] ss:$12 sps:$4 sm:$0xff]  }
  0x52   :  { %1687 = vmatmul.mubr.msk.bf16.gmra.mxu0 %vm263_vm1, %v1810_v45  ;;  %833 = vmatprep.mubr.bf16.mxu1 %v1813_v46 }
  0x53   :  { %1690 = vmatprep.mubr.msk.bf16.mxu0 %vm1855_vm0, %v1854_v0 }
  0x59   :  { %834 = vmatmul.mubr.bf16.vlgmr.msra.gmra.mxu1 %v1811_v47 }
  0x5a   :  { %1691 = vmatmul.mubr.msk.bf16.gmra.mxu0 %vm263_vm1, %v1814_v48  ;;  %841 = vmatprep.mubr.bf16.mxu1 %v1815_v49 }
  0x5b   :  { %1694 = vmatprep.mubr.msk.bf16.mxu0 %vm1855_vm0, %v1854_v0  ;;  %1602 = vmatpush3.bf16.msra.mxu1 %v1908_v3  ;;  %v1837_v3 = vld [vmem:[%s2486_s3 + $0x18] ss:$12 sps:$4 sm:$0xff]  }
  0x5c   :  { %1603 = vmatprep.subr.bf16.mxu1 %v1914_v4  ;;  %v1838_v4 = vld [vmem:[%s2485_s2 + $0x50] ss:$12 sps:$4 sm:$0xff]  }
  0x5f   :  { %1604 = vmatpush3.bf16.msra.mxu1 %v1927_v6  ;;  %v1839_v6 = vld [vmem:[%s2486_s3 + $0x34] ss:$12 sps:$4 sm:$0xff]  }
  0x60   :  { %1605 = vmatprep.subr.bf16.mxu1 %v1936_v8  ;;  %v1843_v8 = vld [vmem:[%s2486_s3 + $0x4c] ss:$12 sps:$4 sm:$0xff]  }
  0x61   :  { %842 = vmatmul.mubr.bf16.gmra.mxu1 %v1817_v50 }
  0x62   :  { %1695 = vmatmul.mubr.msk.bf16.gmra.mxu0 %vm263_vm1, %v1818_v51  ;;  %849 = vmatprep.mubr.bf16.mxu1 %v1819_v52 }
  0x63   :  { %1698 = vmatprep.mubr.msk.bf16.mxu0 %vm1855_vm0, %v1854_v0  ;;  %1606 = vmatpush3.bf16.msra.mxu1 %v1942_v9  ;;  %v1846_v9 = vld [vmem:[%s2486_s3 + $0x8] ss:$12 sps:$4 sm:$0xff]  }
  0x64   :  { %1607 = vmatprep.subr.bf16.mxu1 %v1949_v10  ;;  %v1847_v10 = vld [vmem:[%s2486_s3 + $0x64] ss:$12 sps:$4 sm:$0xff]  }
  0x67   :  { %1608 = vmatpush3.bf16.msra.mxu1 %v1959_v11  ;;  %v1849_v11 = vld [vmem:[%s2486_s3 + $0x60] ss:$12 sps:$4 sm:$0xff]  }
  0x68   :  { %1609 = vmatprep.subr.bf16.mxu1 %v1966_v12  ;;  %v1850_v12 = vld [vmem:[%s2486_s3 + $0x20] ss:$12 sps:$4 sm:$0xff]  }
  0x69   :  { %850 = vmatmul.mubr.bf16.gmra.mxu1 %v1821_v53 }
  0x6a   :  { %1699 = vmatmul.mubr.msk.bf16.gmra.mxu0 %vm263_vm1, %v1822_v54  ;;  %857 = vmatprep.mubr.bf16.mxu1 %v1823_v55 }
  0x6b   :  { %1706 = vmatprep.mubr.msk.bf16.mxu0 %vm1855_vm0, %v1854_v0  ;;  %1610 = vmatpush3.bf16.msra.mxu1 %v1976_v14  ;;  %v1852_v14 = vld [vmem:[%s2486_s3 + $0x38] ss:$12 sps:$4 sm:$0xff]  }
  0x6c   :  { %1611 = vmatprep.subr.bf16.mxu1 %v1983_v15  ;;  %v1853_v15 = vld [vmem:[%s2486_s3 + $0x50] ss:$12 sps:$4 sm:$0xff]  }
  0x6f   :  { %1612 = vmatpush3.bf16.msra.mxu1 %v1989_v16 }
  0x70   :  { %1613 = vmatprep.subr.bf16.mxu1 %v2003_v18 }
  0x71   :  { %858 = vmatmul.mubr.bf16.gmra.mxu1 %v1825_v56 }
  0x72   :  { %1707 = vmatmul.mubr.msk.bf16.vlgmr.msra.gmra.mxu0 %vm263_vm1, %v1826_v57  ;;  %865 = vmatprep.mubr.bf16.mxu1 %v1827_v58 }
  0x73   :  { %1727 = vmatpush3.bf16.msra.mxu0 %v1902_v2  ;;  %1710 = vmatprep.mubr.msk.bf16.mxu0 %vm1855_vm0, %v1854_v0 }
  0x74   :  { %1614 = vmatpush3.bf16.msra.mxu1 %v2013_v20  ;;  %1728 = vmatprep.subr.bf16.mxu0 %v1854_v0 }
  0x75   :  { %1615 = vmatprep.subr.bf16.mxu1 %v2019_v21 }
  0x77   :  { %1729 = vmatpush3.bf16.msra.mxu0 %v1921_v5 }
  0x78   :  { %1616 = vmatpush3.bf16.msra.mxu1 %v2030_v22 }
  0x79   :  { %866 = vmatmul.mubr.bf16.gmra.mxu1 %v1829_v59  ;;  %1750 = vmatprep.subr.bf16.mxu1 %v1854_v0 }
  0x7a   :  { %1711 = vmatmul.mubr.msk.bf16.gmra.mxu0 %vm263_vm1, %v1830_v60  ;;  %1099 = vmatprep.mubr.bf16.mxu1 %v1833_v61 }
  0x7b   :  { %1714 = vmatprep.mubr.msk.bf16.mxu0 %vm1855_vm0, %v1854_v0 }
  0x81   :  { %1100 = vmatmul.mubr.bf16.vlgmr.msra.gmra.mxu1 %v1831_v62 }
  0x82   :  { %1715 = vmatmul.mubr.msk.bf16.gmra.mxu0 %vm263_vm1, %v1834_v63  ;;  %1107 = vmatprep.mubr.bf16.mxu1 %v1835_v1 }
  0x83   :  { %1718 = vmatprep.mubr.msk.bf16.mxu0 %vm1855_vm0, %v1854_v0  ;;  %1752 = vmatpush3.bf16.msra.mxu1 %v1902_v2  ;;  %v1841_v2 = vld [vmem:[%s2486_s3 + $0x30] ss:$12 sps:$4 sm:$0xff]  }
  0x84   :  { %1751 = vmatprep.subr.bf16.mxu1 %v1854_v0 }
  0x87   :  { %1753 = vmatpush3.bf16.msra.mxu1 %v1921_v5  ;;  %v1845_v5 = vld [vmem:[%s2486_s3 + $0x48] ss:$12 sps:$4 sm:$0xff]  }
  0x89   :  { %1108 = vmatmul.mubr.bf16.gmra.mxu1 %v1837_v3 }
  0x8a   :  { %1719 = vmatmul.mubr.msk.bf16.gmra.mxu0 %vm263_vm1, %v1838_v4  ;;  %1115 = vmatprep.mubr.bf16.mxu1 %v1839_v6 }
  0x8b   :  { %1722 = vmatprep.mubr.msk.bf16.mxu0 %vm1855_vm0, %v1854_v0 }
  0x91   :  { %1116 = vmatmul.mubr.bf16.gmra.mxu1 %v1841_v2 }
  0x92   :  { %1723 = vmatmul.mubr.msk.bf16.gmra.mxu0 %vm263_vm1, %v1842_v7  ;;  %1123 = vmatprep.mubr.bf16.mxu1 %v1843_v8 }
  0x93   :  { %1730 = vmatprep.mubr.msk.bf16.mxu0 %vm1855_vm0, %v1854_v0 }
  0x99   :  { %1124 = vmatmul.mubr.bf16.gmra.mxu1 %v1845_v5 }
  0x9a   :  { %1731 = vmatmul.mubr.msk.bf16.vlgmr.msra.gmra.mxu0 %vm263_vm1, %v1846_v9  ;;  %1131 = vmatprep.mubr.bf16.mxu1 %v1847_v10 }
  0x9b   :  { %1734 = vmatprep.mubr.msk.bf16.mxu0 %vm1855_vm0, %v1854_v0 }
  0xa1   :  { %1132 = vmatmul.mubr.bf16.gmra.mxu1 %v1849_v11 }
  0xa2   :  { %1735 = vmatmul.mubr.msk.bf16.gmra.mxu0 %vm263_vm1, %v1850_v12  ;;  %1746 = vmatprep.mubr.msk.bf16.mxu1 %vm1855_vm0, %v1854_v0 }
  0xa3   :  { %1738 = vmatprep.mubr.msk.bf16.mxu0 %vm1855_vm0, %v1854_v0 }
  0xa9   :  { %1747 = vmatmul.mubr.msk.bf16.vlgmr.msra.gmra.mxu1 %vm263_vm1, %v1851_v13 }
  0xaa   :  { %1739 = vmatmul.mubr.msk.bf16.gmra.mxu0 %vm263_vm1, %v1852_v14 }
  0xab   :  { %1742 = vmatprep.mubr.msk.bf16.mxu0 %vm1855_vm0, %v1854_v0 }
  0xb2   :  { %1743 = vmatmul.mubr.msk.bf16.gmra.mxu0 %vm263_vm1, %v1853_v15 }
  0xc9   :  { %v386_v16 = vpop.f32.mrf.mxu1 }
  0xcb   :  { %v1660_v17 = vpop.f32.mrf.mxu1 }
  0xcd   :  { %v389_v18 = vpop.f32.mrf.mxu1 }
  0xcf   :  { %v1661_v19 = vpop.f32.mrf.mxu1 }
  0xd1   :  { %v394_v20 = vpop.f32.mrf.mxu1 }
  0xd3   :  { %v1664_v21 = vpop.f32.mrf.mxu1 }
  0xd5   :  { %v397_v22 = vpop.f32.mrf.mxu1 }
  0xd7   :  { %v1665_v23 = vpop.f32.mrf.mxu1 }
  0xd9   :  { %v402_v24 = vpop.f32.mrf.mxu1 }
  0xdb   :  { %v1668_v25 = vpop.f32.mrf.mxu1 }
  0xdd   :  { %v405_v26 = vpop.f32.mrf.mxu1 }
  0xdf   :  { %v1669_v27 = vpop.f32.mrf.mxu1 }
  0xe1   :  { %v410_v28 = vpop.f32.mrf.mxu1 }
  0xe2   :  { %v1458_v0 = vpop.f32.mrf.mxu0 }
  0xe3   :  { %v1672_v29 = vpop.f32.mrf.mxu1 }
  0xe4   :  { %v1459_v30 = vpop.f32.mrf.mxu0 }
  0xe5   :  { %v1460_v31 = vadd.f32 %v1459_v30, %v1458_v0  ;;  %v413_v32 = vpop.f32.mrf.mxu1 }
  0xe6   :  { %v1461_v33 = vpop.f32.mrf.mxu0 }
  0xe7   :  { %v2305_v34 = vadd.f32 %v1460_v31, %v386_v16  ;;  %v1673_v35 = vpop.f32.mrf.mxu1 }
  0xe8   :  { %v1462_v36 = vpop.f32.mrf.mxu0 }
  0xe9   :  { %v1463_v37 = vadd.f32 %v1462_v36, %v1461_v33  ;;  %v418_v38 = vpop.f32.mrf.mxu1 }
  0xea   :  { %v1464_v39 = vpop.f32.mrf.mxu0 }
  0xeb   :  { %v2307_v40 = vadd.f32 %v1463_v37, %v389_v18  ;;  %v1676_v41 = vpop.f32.mrf.mxu1 }
  0xec   :  { %v1465_v42 = vpop.f32.mrf.mxu0 }
  0xed   :  { %v1466_v43 = vadd.f32 %v1465_v42, %v1464_v39  ;;  %v421_v44 = vpop.f32.mrf.mxu1 }
  0xee   :  { %v1467_v45 = vpop.f32.mrf.mxu0 }
  0xef   :  { %v2309_v46 = vadd.f32 %v1466_v43, %v394_v20  ;;  %v1677_v47 = vpop.f32.mrf.mxu1 }
  0xf0   :  { %v1468_v48 = vpop.f32.mrf.mxu0 }
  0xf1   :  { %v1469_v49 = vadd.f32 %v1468_v48, %v1467_v45  ;;  %v1511_v50 = vpop.f32.mrf.mxu1 }
  0xf2   :  { %v1470_v51 = vpop.f32.mrf.mxu0 }
  0xf3   :  { %v2311_v52 = vadd.f32 %v1469_v49, %v397_v22  ;;  %v1512_v53 = vpop.f32.mrf.mxu1 }
  0xf4   :  { %v1513_v54 = vadd.f32 %v1512_v53, %v1511_v50  ;;  %v1471_v55 = vpop.f32.mrf.mxu0 }
  0xf5   :  { %v1472_v56 = vadd.f32 %v1471_v55, %v1470_v51  ;;  %v1514_v57 = vpop.f32.mrf.mxu1 }
  0xf6   :  { %v1473_v58 = vpop.f32.mrf.mxu0 }
  0xf7   :  { %v2313_v59 = vadd.f32 %v1472_v56, %v402_v24  ;;  %v1515_v60 = vpop.f32.mrf.mxu1 }
  0xf8   :  { %v1516_v61 = vadd.f32 %v1515_v60, %v1514_v57  ;;  %v1474_v62 = vpop.f32.mrf.mxu0 }
  0xf9   :  { %v1475_v63 = vadd.f32 %v1474_v62, %v1473_v58  ;;  %v1517_v1 = vpop.f32.mrf.mxu1 }
  0xfa   :  { %v1476_v3 = vpop.f32.mrf.mxu0 }
  0xfb   :  { %v2315_v4 = vadd.f32 %v1475_v63, %v405_v26  ;;  %v1518_v6 = vpop.f32.mrf.mxu1 }
  0xfc   :  { %v1519_v2 = vadd.f32 %v1518_v6, %v1517_v1  ;;  %v1477_v7 = vpop.f32.mrf.mxu0 }
  0xfd   :  { %v1478_v8 = vadd.f32 %v1477_v7, %v1476_v3  ;;  %v1520_v5 = vpop.f32.mrf.mxu1 }
  0xfe   :  { %v1479_v9 = vpop.f32.mrf.mxu0 }
  0xff   :  { %v2317_v10 = vadd.f32 %v1478_v8, %v410_v28  ;;  %v1521_v11 = vpop.f32.mrf.mxu1 }
 0x100   :  { %v1522_v12 = vadd.f32 %v1521_v11, %v1520_v5  ;;  %v1480_v13 = vpop.f32.mrf.mxu0 }
 0x101   :  { %v1481_v14 = vadd.f32 %v1480_v13, %v1479_v9  ;;  %v1523_v15 = vpop.f32.mrf.mxu1 }
 0x102   :  { %v1482_v16 = vpop.f32.mrf.mxu0 }
 0x103   :  { %v2319_v17 = vadd.f32 %v1481_v14, %v413_v32  ;;  %v1524_v18 = vpop.f32.mrf.mxu1 }
 0x104   :  { %v1525_v19 = vadd.f32 %v1524_v18, %v1523_v15  ;;  %v1483_v20 = vpop.f32.mrf.mxu0 }
 0x105   :  { %v1484_v21 = vadd.f32 %v1483_v20, %v1482_v16  ;;  %v1526_v22 = vpop.f32.mrf.mxu1 }
 0x106   :  { %v1485_v23 = vpop.f32.mrf.mxu0 }
 0x107   :  { %v2321_v24 = vadd.f32 %v1484_v21, %v418_v38  ;;  %v1527_v25 = vpop.f32.mrf.mxu1 }
 0x108   :  { %v1528_v26 = vadd.f32 %v1527_v25, %v1526_v22  ;;  %v1486_v27 = vpop.f32.mrf.mxu0 }
 0x109   :  { %v1487_v28 = vadd.f32 %v1486_v27, %v1485_v23  ;;  %v1529_v0 = vpop.f32.mrf.mxu1 }
 0x10a   :  { %v642_v29 = vpop.f32.mrf.mxu0 }
 0x10b   :  { %v2323_v30 = vadd.f32 %v1487_v28, %v421_v44  ;;  %v2325_v31 = vadd.f32 %v1513_v54, %v642_v29  ;;  %v1530_v32 = vpop.f32.mrf.mxu1 }
 0x10c   :  { %v1531_v33 = vadd.f32 %v1530_v32, %v1529_v0  ;;  %v1684_v35 = vpop.f32.mrf.mxu0 }
 0x10d   :  { %v681_v36 = vmax.f32 %v2305_v34, %v2325_v31  ;;  %v1532_v37 = vpop.f32.mrf.mxu1 }
 0x10e   :  { %v645_v39 = vpop.f32.mrf.mxu0 }
 0x10f   :  { %v2329_v38 = vadd.f32 %v1516_v61, %v645_v39  ;;  %v1533_v41 = vpop.f32.mrf.mxu1 }
 0x110   :  { %v1534_v42 = vadd.f32 %v1533_v41, %v1532_v37  ;;  %v1685_v43 = vpop.f32.mrf.mxu0 }
 0x111   :  { %v682_v45 = vmax.f32 %v2307_v40, %v2329_v38  ;;  %v1535_v44 = vpop.f32.mrf.mxu1 }
 0x112   :  { %v650_v47 = vpop.f32.mrf.mxu0 }
 0x113   :  { %v2333_v48 = vadd.f32 %v1519_v2, %v650_v47  ;;  %v1536_v49 = vpop.f32.mrf.mxu1 }
 0x114   :  { %v1537_v50 = vadd.f32 %v1536_v49, %v1535_v44  ;;  %v1688_v51 = vpop.f32.mrf.mxu0 }
 0x115   :  { %v683_v53 = vmax.f32 %v2309_v46, %v2333_v48  ;;  %v1538_v54 = vpop.f32.mrf.mxu1 }
 0x116   :  { %v653_v55 = vpop.f32.mrf.mxu0 }
 0x117   :  { %v2337_v56 = vadd.f32 %v1522_v12, %v653_v55  ;;  %v1539_v57 = vpop.f32.mrf.mxu1 }
 0x118   :  { %v1540_v58 = vadd.f32 %v1539_v57, %v1538_v54  ;;  %v1689_v60 = vpop.f32.mrf.mxu0 }
 0x119   :  { %v684_v61 = vmax.f32 %v2311_v52, %v2337_v56  ;;  %v1564_v62 = vpop.f32.mrf.mxu1 }
 0x11a   :  { %v658_v63 = vpop.f32.mrf.mxu0 }
 0x11b   :  { %v2341_v1 = vadd.f32 %v1525_v19, %v658_v63  ;;  %v1565_v3 = vpop.f32.mrf.mxu1 }
 0x11c   :  { %v1692_v6 = vpop.f32.mrf.mxu0  ;;  %v1566_v39 = vadd.f32 %v1565_v3, %v1564_v62 }
 0x11d   :  { %v685_v2 = vmax.f32 %v2313_v59, %v2341_v1  ;;  %v2345_v46 = vpop.f32.mrf.mxu1 }
 0x11e   :  { %v661_v7 = vpop.f32.mrf.mxu0 }
 0x11f   :  { %v2347_v8 = vadd.f32 %v1528_v26, %v661_v7  ;;  %v2349_v5 = vpop.f32.mrf.mxu1 }
 0x120   :  { %v1693_v9 = vpop.f32.mrf.mxu0 }
 0x121   :  { %v686_v11 = vmax.f32 %v2315_v4, %v2347_v8  ;;  %v1570_v12 = vpop.f32.mrf.mxu1 }
 0x122   :  { %v666_v13 = vpop.f32.mrf.mxu0 }
 0x123   :  { %v667_v14 = vadd.f32 %v1531_v33, %v666_v13  ;;  %v1571_v15 = vpop.f32.mrf.mxu1 }
 0x124   :  { %v1696_v16 = vpop.f32.mrf.mxu0  ;;  %v1572_v57 = vadd.f32 %v1571_v15, %v1570_v12 }
 0x125   :  { %v687_v18 = vmax.f32 %v2317_v10, %v667_v14  ;;  %v2354_v19 = vpop.f32.mrf.mxu1 }
 0x126   :  { %v669_v59 = vpop.f32.mrf.mxu0 }
 0x127   :  { %v2356_v20 = vadd.f32 %v1534_v42, %v669_v59  ;;  %v2358_v21 = vpop.f32.mrf.mxu1 }
 0x128   :  { %v1697_v22 = vpop.f32.mrf.mxu0 }
 0x129   :  { %v1576_v25 = vpop.f32.mrf.mxu1 }
 0x12a   :  { %v674_v26 = vpop.f32.mrf.mxu0 }
 0x12b   :  { %v2362_v27 = vadd.f32 %v1537_v50, %v674_v26  ;;  %v1577_v28 = vpop.f32.mrf.mxu1 }
 0x12c   :  { %v1700_v0 = vpop.f32.mrf.mxu0  ;;  %v1578_v7 = vadd.f32 %v1577_v28, %v1576_v25 }
 0x12d   :  { %v689_v10 = vmax.f32 %v2321_v24, %v2362_v27  ;;  %v2366_v29 = vpop.f32.mrf.mxu1 }
 0x12e   :  { %v677_v32 = vpop.f32.mrf.mxu0 }
 0x12f   :  { %v2368_v33 = vadd.f32 %v1540_v58, %v677_v32  ;;  %v2370_v35 = vpop.f32.mrf.mxu1 }
 0x130   :  { %v1701_v37 = vpop.f32.mrf.mxu0 }
 0x131   :  { %v690_v41 = vmax.f32 %v2323_v30, %v2368_v33  ;;  %v1582_v42 = vpop.f32.mrf.mxu1 }
 0x132   :  { %v908_v43 = vpop.f32.mrf.mxu0 }
 0x133   :  { %v909_v44 = vadd.f32 %v1566_v39, %v908_v43  ;;  %v1583_v47 = vpop.f32.mrf.mxu1 }
 0x134   :  { %v1708_v48 = vpop.f32.mrf.mxu0  ;;  %v1584_v0 = vadd.f32 %v1583_v47, %v1582_v42 }
 0x135   :  { %v2377_v49 = vmax.f32 %v681_v36, %v909_v44  ;;  %v2379_v50 = vpop.f32.mrf.mxu1 }
 0x136   :  { %v911_v51 = vpop.f32.mrf.mxu0 }
 0x137   :  { %v2381_v54 = vpop.f32.mrf.mxu1 }
 0x138   :  { %v1709_v55 = vpop.f32.mrf.mxu0  ;;  %v1587_v30 = vadd.f32 %v2381_v54, %v2379_v50 }
 0x139   :  { %v2383_v58 = vpop.f32.mrf.mxu1 }
 0x13a   :  { %v916_v60 = vpop.f32.mrf.mxu0 }
 0x13b   :  { %v917_v62 = vadd.f32 %v1572_v57, %v916_v60  ;;  %v2385_v63 = vpop.f32.mrf.mxu1 }
 0x13c   :  { %v1712_v1 = vpop.f32.mrf.mxu0 }
 0x13d   :  { %v2387_v3 = vmax.f32 %v683_v53, %v917_v62  ;;  %v2389_v6 = vpop.f32.mrf.mxu1 }
 0x13e   :  { %v919_v34 = vpop.f32.mrf.mxu0 }
 0x13f   :  { %v2391_v31 = vpop.f32.mrf.mxu1 }
 0x140   :  { %v1713_v36 = vpop.f32.mrf.mxu0 }
 0x141   :  { %v1617_v9 = vpop.f32.mrf.mxu1 }
 0x142   :  { %v924_v13 = vpop.f32.mrf.mxu0 }
 0x143   :  { %v925_v14 = vadd.f32 %v1578_v7, %v924_v13  ;;  %v1618_v12 = vpop.f32.mrf.mxu1  ;;  %v1569_v13 = vadd.f32 %v2349_v5, %v2345_v46 }
 0x144   :  { %v1716_v15 = vpop.f32.mrf.mxu0 }
 0x145   :  { %v2393_v16 = vmax.f32 %v685_v2, %v925_v14  ;;  %v1620_v59 = vpop.f32.mrf.mxu1  ;;  %v1619_v14 = vadd.f32 %v1618_v12, %v1617_v9  ;;  %v1575_v12 = vadd.f32 %v2358_v21, %v2354_v19 }
 0x146   :  { %v2395_v22 = vpop.f32.mrf.mxu0 }
 0x147   :  { %v1621_v26 = vpop.f32.mrf.mxu1  ;;  %v920_v40 = vadd.f32 %v1575_v12, %v919_v34 }
 0x148   :  { %v1717_v53 = vpop.f32.mrf.mxu0 }
 0x149   :  { %v1623_v32 = vpop.f32.mrf.mxu1  ;;  %v912_v53 = vadd.f32 %v1569_v13, %v911_v51  ;;  %v2420_v51 = vld [vmem:[%s2487_s5] ss:$0 sm:$0xff]  ;;  %v950_v21 = vmax.f32 %v684_v61, %v920_v40 }
 0x14a   :  { %v932_v37 = vpop.f32.mrf.mxu0 }
 0x14b   :  { %v933_v39 = vadd.f32 %v1584_v0, %v932_v37  ;;  %v1624_v43 = vpop.f32.mrf.mxu1 }
 0x14c   :  { %v1720_v44 = vpop.f32.mrf.mxu0 }
 0x14d   :  { %v2397_v48 = vmax.f32 %v687_v18, %v933_v39  ;;  %v1626_v25 = vpop.f32.mrf.mxu1  ;;  %v1622_v44 = vadd.f32 %v1621_v26, %v1620_v59  ;;  %v1625_v59 = vadd.f32 %v1624_v43, %v1623_v32  ;;  %v1593_v43 = vadd.f32 %v2391_v31, %v2389_v6 }
 0x14e   :  { %v2399_v28 = vpop.f32.mrf.mxu0 }
 0x14f   :  { %v1627_v55 = vpop.f32.mrf.mxu1 }
 0x150   :  { %v1721_v57 = vpop.f32.mrf.mxu0 }
 0x151   :  { %v1629_v2 = vpop.f32.mrf.mxu1 }
 0x152   :  { %v940_v60 = vpop.f32.mrf.mxu0 }
 0x153   :  { %v1630_v62 = vpop.f32.mrf.mxu1 }
 0x154   :  { %v1724_v1 = vpop.f32.mrf.mxu0 }
 0x155   :  { %v2401_v36 = vpop.f32.mrf.mxu1 }
 0x156   :  { %v943_v7 = vpop.f32.mrf.mxu0 }
 0x157   :  { %v1633_v42 = vpop.f32.mrf.mxu1  ;;  %v944_v56 = vadd.f32 %v1593_v43, %v943_v7 }
 0x158   :  { %v1725_v47 = vpop.f32.mrf.mxu0 }
 0x159   :  { %v2405_v18 = vpop.f32.mrf.mxu1  ;;  %v948_v47 = vmax.f32 %v682_v45, %v912_v53 }
 0x15a   :  { %v1174_v15 = vpop.f32.mrf.mxu0 }
 0x15b   :  { %v1175_v0 = vadd.f32 %v1619_v14, %v1174_v15  ;;  %v2407_v37 = vpop.f32.mrf.mxu1 }
 0x15c   :  { %v1732_v39 = vpop.f32.mrf.mxu0  ;;  %v1637_v33 = vadd.f32 %v2407_v37, %v2405_v18  ;;  %v2489_v37 = vmax.f32 %v2319_v17, %v2356_v20 }
 0x15d   :  { %v2409_v57 = vpop.f32.mrf.mxu1  ;;  %v1213_v23 = vmax.f32 %v2377_v49, %v1175_v0  ;;  %v1628_v0 = vadd.f32 %v1627_v55, %v1626_v25 }
 0x15e   :  { %v1177_v1 = vpop.f32.mrf.mxu0 }
 0x15f   :  { %v1178_v46 = vadd.f32 %v1622_v44, %v1177_v1  ;;  %v2415_v5 = vpop.f32.mrf.mxu1  ;;  %v1230_v38 = vadd.f32 %v2420_v51, %v1213_v23  ;;  %v1590_v1 = vadd.f32 %v2385_v63, %v2383_v58  ;;  %v1581_v58 = vadd.f32 %v2370_v35, %v2366_v29 }
 0x160   :  { %v1733_v9 = vpop.f32.mrf.mxu0  ;;  %v1631_v63 = vadd.f32 %v1630_v62, %v1629_v2  ;;  %v1634_v35 = vadd.f32 %v1633_v42, %v2401_v36  ;;  %v956_v62 = vmax.f32 %v690_v41, %v944_v56  ;;  %v1640_v50 = vadd.f32 %v2415_v5, %v2409_v57 }
 0x161   :  { %v1214_v26 = vmax.f32 %v948_v47, %v1178_v46  ;;  %v1641_v13 = vpop.f32.mrf.mxu1  ;;  %v941_v25 = vadd.f32 %v1590_v1, %v940_v60 }
 0x162   :  { %v1182_v14 = vpop.f32.mrf.mxu0 }
 0x163   :  { %v1231_v45 = vadd.f32 %v2420_v51, %v1214_v26  ;;  %v1183_v49 = vadd.f32 %v1625_v59, %v1182_v14  ;;  %v1642_v15 = vpop.f32.mrf.mxu1  ;;  %v928_v59 = vadd.f32 %v1581_v58, %v2395_v22  ;;  %v955_v31 = vmax.f32 %v689_v10, %v941_v25 }
 0x164   :  { %v1736_v53 = vpop.f32.mrf.mxu0  ;;  %v1643_v9 = vadd.f32 %v1642_v15, %v1641_v13 }
 0x165   :  { %v1416_v39 = vpack.c.bf16 %v1231_v45, %v1230_v38  ;;  %v1644_v44 = vpop.f32.mrf.mxu1  ;;  %v1215_v23 = vmax.f32 %v2387_v3, %v1183_v49  ;;  %v952_v40 = vmax.f32 %v686_v11, %v928_v59  ;;  %v936_v38 = vadd.f32 %v1587_v30, %v2399_v28 }
 0x166   :  { %v1185_v19 = vpop.f32.mrf.mxu0 }
 0x167   :  { %1417 = vst [vmem:[%s2488_s6] sm:$0xff] %v1416_v39   ;;  %v1186_v34 = vadd.f32 %v1628_v0, %v1185_v19  ;;  %v1645_v32 = vpop.f32.mrf.mxu1  ;;  %v1232_v3 = vadd.f32 %v2420_v51, %v1215_v23  ;;  %v954_v28 = vmax.f32 %v2489_v37, %v936_v38 }
 0x168   :  { %v1737_v55 = vpop.f32.mrf.mxu0  ;;  %v1646_v61 = vadd.f32 %v1645_v32, %v1644_v44 }
 0x169   :  { %v1216_v47 = vmax.f32 %v950_v21, %v1186_v34  ;;  %v1206_v52 = vpop.f32.mrf.mxu1 }
 0x16a   :  { %v1207_v46 = vadd.f32 %v1643_v9, %v1206_v52  ;;  %v1190_v12 = vpop.f32.mrf.mxu0 }
 0x16b   :  { %v1233_v26 = vadd.f32 %v2420_v51, %v1216_v47  ;;  %v1191_v13 = vadd.f32 %v1631_v63, %v1190_v12  ;;  %v1748_v6 = vpop.f32.mrf.mxu1 }
 0x16c   :  { %v1740_v29 = vpop.f32.mrf.mxu0  ;;  %v1221_v22 = vmax.f32 %v955_v31, %v1207_v46 }
 0x16d   :  { %v1421_v2 = vpack.c.bf16 %v1233_v26, %v1232_v3  ;;  %v1209_v60 = vpop.f32.mrf.mxu1  ;;  %v1217_v24 = vmax.f32 %v2393_v16, %v1191_v13 }
 0x16e   :  { %v1210_v7 = vadd.f32 %v1646_v61, %v1209_v60  ;;  %v1193_v14 = vpop.f32.mrf.mxu0  ;;  %v1238_v4 = vadd.f32 %v2420_v51, %v1221_v22 }
 0x16f   :  { %1438 = vst [vmem:[%s2488_s6 + $0x8] sm:$0xff] %v1421_v2   ;;  %v1194_v27 = vadd.f32 %v1634_v35, %v1193_v14  ;;  %v1749_v10 = vpop.f32.mrf.mxu1  ;;  %v1234_v16 = vadd.f32 %v2420_v51, %v1217_v24 }
 0x170   :  { %v1222_v36 = vmax.f32 %v956_v62, %v1210_v7  ;;  %v1741_v42 = vpop.f32.mrf.mxu0 }
 0x171   :  { %v1218_v41 = vmax.f32 %v952_v40, %v1194_v27 }
 0x172   :  { %v1239_v8 = vadd.f32 %v2420_v51, %v1222_v36  ;;  %v1198_v11 = vpop.f32.mrf.mxu0 }
 0x173   :  { %v1235_v45 = vadd.f32 %v2420_v51, %v1218_v41  ;;  %v1199_v49 = vadd.f32 %v1637_v33, %v1198_v11 }
 0x174   :  { %v1436_v15 = vpack.c.bf16 %v1239_v8, %v1238_v4  ;;  %v1744_v53 = vpop.f32.mrf.mxu0 }
 0x175   :  { %v1426_v54 = vpack.c.bf16 %v1235_v45, %v1234_v16  ;;  %v1219_v0 = vmax.f32 %v2397_v48, %v1199_v49 }
 0x176   :  { %1441 = vst [vmem:[%s2488_s6 + $0x20] sm:$0xff] %v1436_v15   ;;  %v1201_v18 = vpop.f32.mrf.mxu0 }
 0x177   :  { %1439 = vst [vmem:[%s2488_s6 + $0x10] sm:$0xff] %v1426_v54   ;;  %v1202_v39 = vadd.f32 %v1640_v50, %v1201_v18  ;;  %v1236_v57 = vadd.f32 %v2420_v51, %v1219_v0 }
 0x178   :  { %v1745_v44 = vpop.f32.mrf.mxu0 }
 0x179   :  { %v1220_v1 = vmax.f32 %v954_v28, %v1202_v39 }
 0x17b   :  { %v1237_v5 = vadd.f32 %v2420_v51, %v1220_v1 }
 0x17d   :  { %v1431_v9 = vpack.c.bf16 %v1237_v5, %v1236_v57 }
 0x17f   :  { %1440 = vst [vmem:[%s2488_s6 + $0x18] sm:$0xff] %v1431_v9  }

// kernel: cifar10_cnn_forward.5
= control target key start
LH: loop header
LB: loop body
LE: loop exit
PB: predicated region body
PF: predicated region fallthrough
CT: control target
= control target key end

     0   :  { %s2704_s1 = inlined_call_operand.vmem [shape: bf16[2304,128], index: 1, kind: input, shape index: {}]   ;;  %s2705_s0 = inlined_call_operand.vmem [shape: bf16[16,2304], index: 0, kind: input, shape index: {}]   ;;  %s2706_s2 = inlined_call_operand.vmem [shape: f32[1,128], index: 2, kind: input, shape index: {}]   ;;  %s2707_s3 = inlined_call_operand.vmem [shape: f32[16,128], index: 3, kind: output, shape index: {}]  }
   0x1   :  { %v2018_v0 = vld [vmem:[%s2704_s1 + $0x78] sm:$0xff]   ;;  %v2022_v4 = vld [vmem:[%s2704_s1 + $0x70] sm:$0xff]   ;;  %v2026_v8 = vld [vmem:[%s2704_s1 + $0x68] sm:$0xff]  }
   0x2   :  { %v2019_v1 = vld [vmem:[%s2704_s1 + $0x38] sm:$0xff]   ;;  %1820 = vmatprep.subr.bf16.mxu0 %v2018_v0  ;;  %v2023_v5 = vld [vmem:[%s2704_s1 + $0x30] sm:$0xff]   ;;  %v2027_v9 = vld [vmem:[%s2704_s1 + $0x28] sm:$0xff]  }
   0x3   :  { %v2020_v2 = vld [vmem:[%s2704_s1 + $0xf8] sm:$0xff]   ;;  %1821 = vmatpush3.bf16.msra.mxu0 %v2019_v1  ;;  %v2024_v6 = vld [vmem:[%s2704_s1 + $0xf0] sm:$0xff]   ;;  %v2028_v10 = vld [vmem:[%s2704_s1 + $0xe8] sm:$0xff]  }
   0x4   :  { %v2021_v3 = vld [vmem:[%s2704_s1 + $0xb8] sm:$0xff]   ;;  %1842 = vmatprep.subr.bf16.mxu1 %v2020_v2  ;;  %1822 = vmatprep.subr.bf16.mxu0 %v2022_v4  ;;  %v2025_v7 = vld [vmem:[%s2704_s1 + $0xb0] sm:$0xff]   ;;  %v2029_v11 = vld [vmem:[%s2704_s1 + $0xa8] sm:$0xff]  }
   0x5   :  { %1843 = vmatpush3.bf16.msra.mxu1 %v2021_v3  ;;  %v2030_v12 = vld [vmem:[%s2704_s1 + $0x60] sm:$0xff]   ;;  %v2034_v16 = vld [vmem:[%s2704_s1 + $0x58] sm:$0xff]   ;;  %v2038_v20 = vld [vmem:[%s2704_s1 + $0x50] sm:$0xff]  }
   0x6   :  { %1844 = vmatprep.subr.bf16.mxu1 %v2024_v6  ;;  %v2031_v13 = vld [vmem:[%s2704_s1 + $0x20] sm:$0xff]   ;;  %v2035_v17 = vld [vmem:[%s2704_s1 + $0x18] sm:$0xff]   ;;  %v2039_v21 = vld [vmem:[%s2704_s1 + $0x10] sm:$0xff]  }
   0x7   :  { %1823 = vmatpush3.bf16.msra.mxu0 %v2023_v5  ;;  %v2032_v14 = vld [vmem:[%s2704_s1 + $0xe0] sm:$0xff]   ;;  %v2036_v18 = vld [vmem:[%s2704_s1 + $0xd8] sm:$0xff]   ;;  %v2040_v22 = vld [vmem:[%s2704_s1 + $0xd0] sm:$0xff]  }
   0x8   :  { %1824 = vmatprep.subr.bf16.mxu0 %v2026_v8  ;;  %v2033_v15 = vld [vmem:[%s2704_s1 + $0xa0] sm:$0xff]   ;;  %v2037_v19 = vld [vmem:[%s2704_s1 + $0x98] sm:$0xff]   ;;  %v2041_v23 = vld [vmem:[%s2704_s1 + $0x90] sm:$0xff]  }
   0x9   :  { %1845 = vmatpush3.bf16.msra.mxu1 %v2025_v7  ;;  %v2042_v24 = vld [vmem:[%s2704_s1 + $0x48] sm:$0xff]   ;;  %v2046_v28 = vld [vmem:[%s2704_s1 + $0x40] sm:$0xff]   ;;  %v2053_v34 = vld [vmem:[%s2704_s1 + $0x178] sm:$0xff]  }
   0xa   :  { %1846 = vmatprep.subr.bf16.mxu1 %v2028_v10  ;;  %v2043_v25 = vld [vmem:[%s2704_s1 + $0x8] sm:$0xff]   ;;  %v2047_v29 = vld [vmem:[%s2704_s1] sm:$0xff]   ;;  %v2057_v37 = vld [vmem:[%s2704_s1 + $0x138] sm:$0xff]  }
   0xb   :  { %1825 = vmatpush3.bf16.msra.mxu0 %v2027_v9  ;;  %v2044_v26 = vld [vmem:[%s2704_s1 + $0xc8] sm:$0xff]   ;;  %v2048_v30 = vld [vmem:[%s2704_s1 + $0xc0] sm:$0xff]   ;;  %v2058_v38 = vld [vmem:[%s2704_s1 + $0x1f8] sm:$0xff]  }
   0xc   :  { %1826 = vmatprep.subr.bf16.mxu0 %v2030_v12  ;;  %v2045_v27 = vld [vmem:[%s2704_s1 + $0x88] sm:$0xff]   ;;  %v2052_v33 = vld [vmem:[%s2704_s1 + $0x80] sm:$0xff]   ;;  %v2059_v39 = vld [vmem:[%s2704_s1 + $0x1b8] sm:$0xff]  }
   0xd   :  { %1847 = vmatpush3.bf16.msra.mxu1 %v2029_v11  ;;  %v2049_v31 = vld [vmem:[%s2705_s0] ss:$72 sps:$4 sm:$0xff]   ;;  %v2051_v32 = vld [vmem:[%s2705_s0 + $0x4] ss:$72 sps:$4 sm:$0xff]   ;;  %v2060_v40 = vld [vmem:[%s2704_s1 + $0x170] sm:$0xff]  }
   0xe   :  { %1848 = vmatprep.subr.bf16.mxu1 %v2032_v14  ;;  %1314 = vmatprep.mubr.bf16.mxu0 %v2051_v32  ;;  %v2054_v35 = vld [vmem:[%s2705_s0 + $0x8] ss:$72 sps:$4 sm:$0xff]   ;;  %v2056_v36 = vld [vmem:[%s2705_s0 + $0xc] ss:$72 sps:$4 sm:$0xff]   ;;  %v2068_v48 = vld [vmem:[%s2704_s1 + $0x160] sm:$0xff]  }
   0xf   :  { %1827 = vmatpush3.bf16.msra.mxu0 %v2031_v13  ;;  %1355 = vmatprep.mubr.bf16.mxu1 %v2056_v36  ;;  %v2061_v41 = vld [vmem:[%s2704_s1 + $0x130] sm:$0xff]   ;;  %v2064_v44 = vld [vmem:[%s2704_s1 + $0x168] sm:$0xff]   ;;  %v2069_v49 = vld [vmem:[%s2704_s1 + $0x120] sm:$0xff]  }
  0x10   :  { %1828 = vmatprep.subr.bf16.mxu0 %v2034_v16  ;;  %v2062_v42 = vld [vmem:[%s2704_s1 + $0x1f0] sm:$0xff]   ;;  %v2065_v45 = vld [vmem:[%s2704_s1 + $0x128] sm:$0xff]   ;;  %v2070_v50 = vld [vmem:[%s2704_s1 + $0x1e0] sm:$0xff]  }
  0x11   :  { %1849 = vmatpush3.bf16.msra.mxu1 %v2033_v15  ;;  %v2063_v43 = vld [vmem:[%s2704_s1 + $0x1b0] sm:$0xff]   ;;  %v2066_v46 = vld [vmem:[%s2704_s1 + $0x1e8] sm:$0xff]   ;;  %v2071_v51 = vld [vmem:[%s2704_s1 + $0x1a0] sm:$0xff]  }
  0x12   :  { %1850 = vmatprep.subr.bf16.mxu1 %v2036_v18  ;;  %v2067_v47 = vld [vmem:[%s2704_s1 + $0x1a8] sm:$0xff]   ;;  %v2072_v52 = vld [vmem:[%s2704_s1 + $0x158] sm:$0xff]   ;;  %v2076_v56 = vld [vmem:[%s2704_s1 + $0x150] sm:$0xff]  }
  0x13   :  { %1829 = vmatpush3.bf16.msra.mxu0 %v2035_v17  ;;  %v2073_v53 = vld [vmem:[%s2704_s1 + $0x118] sm:$0xff]   ;;  %v2077_v57 = vld [vmem:[%s2704_s1 + $0x110] sm:$0xff]   ;;  %v2080_v60 = vld [vmem:[%s2704_s1 + $0x148] sm:$0xff]  }
  0x14   :  { %1830 = vmatprep.subr.bf16.mxu0 %v2038_v20  ;;  %v2074_v54 = vld [vmem:[%s2704_s1 + $0x1d8] sm:$0xff]   ;;  %v2078_v58 = vld [vmem:[%s2704_s1 + $0x1d0] sm:$0xff]   ;;  %v2081_v61 = vld [vmem:[%s2704_s1 + $0x108] sm:$0xff]  }
  0x15   :  { %1851 = vmatpush3.bf16.msra.mxu1 %v2037_v19  ;;  %v2075_v55 = vld [vmem:[%s2704_s1 + $0x198] sm:$0xff]   ;;  %v2079_v59 = vld [vmem:[%s2704_s1 + $0x190] sm:$0xff]   ;;  %v2082_v62 = vld [vmem:[%s2704_s1 + $0x1c8] sm:$0xff]  }
  0x16   :  { %1852 = vmatprep.subr.bf16.mxu1 %v2040_v22  ;;  %v2083_v63 = vld [vmem:[%s2704_s1 + $0x188] sm:$0xff]   ;;  %v2084_v0 = vld [vmem:[%s2704_s1 + $0x140] sm:$0xff]   ;;  %v2087_v3 = vld [vmem:[%s2705_s0 + $0x10] ss:$72 sps:$4 sm:$0xff]  }
  0x17   :  { %1831 = vmatpush3.bf16.msra.mxu0 %v2039_v21  ;;  %v2085_v1 = vld [vmem:[%s2704_s1 + $0x100] sm:$0xff]   ;;  %v2089_v4 = vld [vmem:[%s2705_s0 + $0x14] ss:$72 sps:$4 sm:$0xff]   ;;  %v2102_v16 = vld [vmem:[%s2704_s1 + $0x268] sm:$0xff]  }
  0x18   :  { %1832 = vmatprep.subr.bf16.mxu0 %v2042_v24  ;;  %v2086_v2 = vld [vmem:[%s2704_s1 + $0x1c0] sm:$0xff]   ;;  %v2091_v6 = vld [vmem:[%s2704_s1 + $0x278] sm:$0xff]   ;;  %v2098_v12 = vld [vmem:[%s2704_s1 + $0x270] sm:$0xff]  }
  0x19   :  { %1853 = vmatpush3.bf16.msra.mxu1 %v2041_v23  ;;  %v2090_v5 = vld [vmem:[%s2704_s1 + $0x180] sm:$0xff]   ;;  %v2095_v9 = vld [vmem:[%s2704_s1 + $0x238] sm:$0xff]   ;;  %v2099_v13 = vld [vmem:[%s2704_s1 + $0x230] sm:$0xff]  }
  0x1a   :  { %1854 = vmatprep.subr.bf16.mxu1 %v2044_v26  ;;  %v2092_v7 = vld [vmem:[%s2705_s0 + $0x18] ss:$72 sps:$4 sm:$0xff]   ;;  %v2094_v8 = vld [vmem:[%s2705_s0 + $0x1c] ss:$72 sps:$4 sm:$0xff]   ;;  %v2100_v14 = vld [vmem:[%s2704_s1 + $0x2f0] sm:$0xff]  }
  0x1b   :  { %1833 = vmatpush3.bf16.msra.mxu0 %v2043_v25  ;;  %v2096_v10 = vld [vmem:[%s2704_s1 + $0x2f8] sm:$0xff]   ;;  %v2101_v15 = vld [vmem:[%s2704_s1 + $0x2b0] sm:$0xff]   ;;  %v2103_v17 = vld [vmem:[%s2704_s1 + $0x228] sm:$0xff]  }
  0x1c   :  { %1834 = vmatprep.subr.bf16.mxu0 %v2046_v28  ;;  %v2097_v11 = vld [vmem:[%s2704_s1 + $0x2b8] sm:$0xff]   ;;  %v2104_v18 = vld [vmem:[%s2704_s1 + $0x2e8] sm:$0xff]   ;;  %v2106_v20 = vld [vmem:[%s2704_s1 + $0x260] sm:$0xff]  }
  0x1d   :  { %1855 = vmatpush3.bf16.msra.mxu1 %v2045_v27  ;;  %v2105_v19 = vld [vmem:[%s2704_s1 + $0x2a8] sm:$0xff]   ;;  %v2107_v21 = vld [vmem:[%s2704_s1 + $0x220] sm:$0xff]   ;;  %v2110_v24 = vld [vmem:[%s2704_s1 + $0x258] sm:$0xff]  }
  0x1e   :  { %1856 = vmatprep.subr.bf16.mxu1 %v2048_v30  ;;  %v2108_v22 = vld [vmem:[%s2704_s1 + $0x2e0] sm:$0xff]   ;;  %v2111_v25 = vld [vmem:[%s2704_s1 + $0x218] sm:$0xff]   ;;  %v2114_v28 = vld [vmem:[%s2704_s1 + $0x250] sm:$0xff]  }
  0x1f   :  { %1835 = vmatpush3.bf16.msra.mxu0 %v2047_v29  ;;  %v2109_v23 = vld [vmem:[%s2704_s1 + $0x2a0] sm:$0xff]   ;;  %v2112_v26 = vld [vmem:[%s2704_s1 + $0x2d8] sm:$0xff]   ;;  %v2115_v29 = vld [vmem:[%s2704_s1 + $0x210] sm:$0xff]  }
  0x20   :  { %1864 = vmatprep.subr.bf16.mxu0 %v2053_v34  ;;  %v2113_v27 = vld [vmem:[%s2704_s1 + $0x298] sm:$0xff]   ;;  %v2116_v30 = vld [vmem:[%s2704_s1 + $0x2d0] sm:$0xff]   ;;  %v2118_v32 = vld [vmem:[%s2704_s1 + $0x248] sm:$0xff]  }
  0x21   :  { %1857 = vmatpush3.bf16.msra.mxu1 %v2052_v33  ;;  %v2119_v33 = vld [vmem:[%s2704_s1 + $0x208] sm:$0xff]   ;;  %v2122_v36 = vld [vmem:[%s2704_s1 + $0x240] sm:$0xff]  }
  0x22   :  { %1315 = vmatmul.mubr.bf16.vlgmr.msra.gmra.mxu0 %v2049_v31  ;;  %1886 = vmatprep.subr.bf16.mxu1 %v2058_v38  ;;  %v2117_v31 = vld [vmem:[%s2704_s1 + $0x290] sm:$0xff]   ;;  %v2120_v34 = vld [vmem:[%s2704_s1 + $0x2c8] sm:$0xff]   ;;  %v2124_v38 = vld [vmem:[%s2704_s1 + $0x2c0] sm:$0xff]  }
  0x23   :  { %1865 = vmatpush3.bf16.msra.mxu0 %v2057_v37  ;;  %1396 = vmatprep.mubr.bf16.mxu0 %v2089_v4  ;;  %v2123_v37 = vld [vmem:[%s2704_s1 + $0x200] sm:$0xff]   ;;  %v2156_v4 = vld [vmem:[%s2704_s1 + $0x348] sm:$0xff]  }
  0x24   :  { %1356 = vmatmul.mubr.bf16.vlgmr.msra.gmra.mxu1 %v2054_v35  ;;  %1866 = vmatprep.subr.bf16.mxu0 %v2060_v40  ;;  %v2121_v35 = vld [vmem:[%s2704_s1 + $0x288] sm:$0xff]  }
  0x25   :  { %1887 = vmatpush3.bf16.msra.mxu1 %v2059_v39  ;;  %1437 = vmatprep.mubr.bf16.mxu1 %v2094_v8  ;;  %v2125_v39 = vld [vmem:[%s2705_s0 + $0x20] ss:$72 sps:$4 sm:$0xff]   ;;  %v2127_v40 = vld [vmem:[%s2705_s0 + $0x24] ss:$72 sps:$4 sm:$0xff]  }
  0x26   :  { %1888 = vmatprep.subr.bf16.mxu1 %v2062_v42  ;;  %v2129_v42 = vld [vmem:[%s2704_s1 + $0x378] sm:$0xff]   ;;  %v2160_v8 = vld [vmem:[%s2704_s1 + $0x340] sm:$0xff]  }
  0x27   :  { %1867 = vmatpush3.bf16.msra.mxu0 %v2061_v41  ;;  %v2128_v41 = vld [vmem:[%s2704_s1 + $0x280] sm:$0xff]  }
  0x28   :  { %1868 = vmatprep.subr.bf16.mxu0 %v2064_v44  ;;  %v2132_v44 = vld [vmem:[%s2705_s0 + $0x2c] ss:$72 sps:$4 sm:$0xff]  }
  0x29   :  { %1889 = vmatpush3.bf16.msra.mxu1 %v2063_v43  ;;  %v2130_v43 = vld [vmem:[%s2705_s0 + $0x28] ss:$72 sps:$4 sm:$0xff]  }
  0x2a   :  { %1890 = vmatprep.subr.bf16.mxu1 %v2066_v46  ;;  %v2134_v46 = vld [vmem:[%s2704_s1 + $0x3f8] sm:$0xff]  }
  0x2b   :  { %1869 = vmatpush3.bf16.msra.mxu0 %v2065_v45  ;;  %v2133_v45 = vld [vmem:[%s2704_s1 + $0x338] sm:$0xff]  }
  0x2c   :  { %1870 = vmatprep.subr.bf16.mxu0 %v2068_v48  ;;  %v2136_v48 = vld [vmem:[%s2704_s1 + $0x370] sm:$0xff]  }
  0x2d   :  { %1891 = vmatpush3.bf16.msra.mxu1 %v2067_v47  ;;  %v2135_v47 = vld [vmem:[%s2704_s1 + $0x3b8] sm:$0xff]  }
  0x2e   :  { %1892 = vmatprep.subr.bf16.mxu1 %v2070_v50  ;;  %v2138_v50 = vld [vmem:[%s2704_s1 + $0x3f0] sm:$0xff]  }
  0x2f   :  { %1871 = vmatpush3.bf16.msra.mxu0 %v2069_v49  ;;  %v2137_v49 = vld [vmem:[%s2704_s1 + $0x330] sm:$0xff]  }
  0x30   :  { %1872 = vmatprep.subr.bf16.mxu0 %v2072_v52  ;;  %v2140_v52 = vld [vmem:[%s2704_s1 + $0x368] sm:$0xff]  }
  0x31   :  { %1893 = vmatpush3.bf16.msra.mxu1 %v2071_v51  ;;  %v2139_v51 = vld [vmem:[%s2704_s1 + $0x3b0] sm:$0xff]  }
  0x32   :  { %1894 = vmatprep.subr.bf16.mxu1 %v2074_v54  ;;  %v2142_v54 = vld [vmem:[%s2704_s1 + $0x3e8] sm:$0xff]  }
  0x33   :  { %1873 = vmatpush3.bf16.msra.mxu0 %v2073_v53  ;;  %v2141_v53 = vld [vmem:[%s2704_s1 + $0x328] sm:$0xff]  }
  0x34   :  { %1874 = vmatprep.subr.bf16.mxu0 %v2076_v56  ;;  %v2144_v56 = vld [vmem:[%s2704_s1 + $0x360] sm:$0xff]  }
  0x35   :  { %1895 = vmatpush3.bf16.msra.mxu1 %v2075_v55  ;;  %v2143_v55 = vld [vmem:[%s2704_s1 + $0x3a8] sm:$0xff]  }
  0x36   :  { %1896 = vmatprep.subr.bf16.mxu1 %v2078_v58  ;;  %v2146_v58 = vld [vmem:[%s2704_s1 + $0x3e0] sm:$0xff]  }
  0x37   :  { %1875 = vmatpush3.bf16.msra.mxu0 %v2077_v57  ;;  %v2145_v57 = vld [vmem:[%s2704_s1 + $0x320] sm:$0xff]  }
  0x38   :  { %1876 = vmatprep.subr.bf16.mxu0 %v2080_v60  ;;  %v2148_v60 = vld [vmem:[%s2704_s1 + $0x358] sm:$0xff]  }
  0x39   :  { %1897 = vmatpush3.bf16.msra.mxu1 %v2079_v59  ;;  %v2147_v59 = vld [vmem:[%s2704_s1 + $0x3a0] sm:$0xff]  }
  0x3a   :  { %1898 = vmatprep.subr.bf16.mxu1 %v2082_v62  ;;  %v2150_v62 = vld [vmem:[%s2704_s1 + $0x3d8] sm:$0xff]  }
  0x3b   :  { %1877 = vmatpush3.bf16.msra.mxu0 %v2081_v61  ;;  %v2149_v61 = vld [vmem:[%s2704_s1 + $0x318] sm:$0xff]  }
  0x3c   :  { %1878 = vmatprep.subr.bf16.mxu0 %v2084_v0  ;;  %v2152_v0 = vld [vmem:[%s2704_s1 + $0x350] sm:$0xff]  }
  0x3d   :  { %1899 = vmatpush3.bf16.msra.mxu1 %v2083_v63  ;;  %v2151_v63 = vld [vmem:[%s2704_s1 + $0x398] sm:$0xff]  }
  0x3e   :  { %1900 = vmatprep.subr.bf16.mxu1 %v2086_v2  ;;  %v2154_v2 = vld [vmem:[%s2704_s1 + $0x3d0] sm:$0xff]  }
  0x3f   :  { %1879 = vmatpush3.bf16.msra.mxu0 %v2085_v1  ;;  %v2153_v1 = vld [vmem:[%s2704_s1 + $0x310] sm:$0xff]  }
  0x40   :  { %1908 = vmatprep.subr.bf16.mxu0 %v2091_v6  ;;  %v2158_v6 = vld [vmem:[%s2704_s1 + $0x3c8] sm:$0xff]  }
  0x41   :  { %1901 = vmatpush3.bf16.msra.mxu1 %v2090_v5  ;;  %v2157_v5 = vld [vmem:[%s2704_s1 + $0x308] sm:$0xff]  }
  0x42   :  { %1397 = vmatmul.mubr.bf16.vlgmr.msra.gmra.mxu0 %v2087_v3  ;;  %1930 = vmatprep.subr.bf16.mxu1 %v2096_v10  ;;  %v2155_v3 = vld [vmem:[%s2704_s1 + $0x390] sm:$0xff]   ;;  %v2162_v10 = vld [vmem:[%s2704_s1 + $0x3c0] sm:$0xff]  }
  0x43   :  { %1909 = vmatpush3.bf16.msra.mxu0 %v2095_v9  ;;  %1478 = vmatprep.mubr.bf16.mxu0 %v2127_v40  ;;  %v2161_v9 = vld [vmem:[%s2704_s1 + $0x300] sm:$0xff]  }
  0x44   :  { %1438 = vmatmul.mubr.bf16.vlgmr.msra.gmra.mxu1 %v2092_v7  ;;  %1910 = vmatprep.subr.bf16.mxu0 %v2098_v12  ;;  %v2159_v7 = vld [vmem:[%s2704_s1 + $0x388] sm:$0xff]   ;;  %v2165_v12 = vld [vmem:[%s2705_s0 + $0x34] ss:$72 sps:$4 sm:$0xff]  }
  0x45   :  { %1931 = vmatpush3.bf16.msra.mxu1 %v2097_v11  ;;  %1519 = vmatprep.mubr.bf16.mxu1 %v2132_v44  ;;  %v2163_v11 = vld [vmem:[%s2705_s0 + $0x30] ss:$72 sps:$4 sm:$0xff]  }
  0x46   :  { %1932 = vmatprep.subr.bf16.mxu1 %v2100_v14  ;;  %v2167_v14 = vld [vmem:[%s2704_s1 + $0x478] sm:$0xff]  }
  0x47   :  { %1911 = vmatpush3.bf16.msra.mxu0 %v2099_v13  ;;  %v2166_v13 = vld [vmem:[%s2704_s1 + $0x380] sm:$0xff]  }
  0x48   :  { %1912 = vmatprep.subr.bf16.mxu0 %v2102_v16  ;;  %v2170_v16 = vld [vmem:[%s2705_s0 + $0x3c] ss:$72 sps:$4 sm:$0xff]  }
  0x49   :  { %1933 = vmatpush3.bf16.msra.mxu1 %v2101_v15  ;;  %v2168_v15 = vld [vmem:[%s2705_s0 + $0x38] ss:$72 sps:$4 sm:$0xff]  }
  0x4a   :  { %1934 = vmatprep.subr.bf16.mxu1 %v2104_v18  ;;  %v2172_v18 = vld [vmem:[%s2704_s1 + $0x470] sm:$0xff]  }
  0x4b   :  { %1913 = vmatpush3.bf16.msra.mxu0 %v2103_v17  ;;  %v2171_v17 = vld [vmem:[%s2704_s1 + $0x438] sm:$0xff]  }
  0x4c   :  { %1914 = vmatprep.subr.bf16.mxu0 %v2106_v20  ;;  %v2174_v20 = vld [vmem:[%s2704_s1 + $0x468] sm:$0xff]  }
  0x4d   :  { %1935 = vmatpush3.bf16.msra.mxu1 %v2105_v19  ;;  %v2173_v19 = vld [vmem:[%s2704_s1 + $0x430] sm:$0xff]  }
  0x4e   :  { %1936 = vmatprep.subr.bf16.mxu1 %v2108_v22  ;;  %v2176_v22 = vld [vmem:[%s2704_s1 + $0x460] sm:$0xff]  }
  0x4f   :  { %1915 = vmatpush3.bf16.msra.mxu0 %v2107_v21  ;;  %v2175_v21 = vld [vmem:[%s2704_s1 + $0x428] sm:$0xff]  }
  0x50   :  { %1916 = vmatprep.subr.bf16.mxu0 %v2110_v24  ;;  %v2178_v24 = vld [vmem:[%s2704_s1 + $0x458] sm:$0xff]  }
  0x51   :  { %1937 = vmatpush3.bf16.msra.mxu1 %v2109_v23  ;;  %v2177_v23 = vld [vmem:[%s2704_s1 + $0x420] sm:$0xff]  }
  0x52   :  { %1938 = vmatprep.subr.bf16.mxu1 %v2112_v26  ;;  %v2180_v26 = vld [vmem:[%s2704_s1 + $0x450] sm:$0xff]  }
  0x53   :  { %1917 = vmatpush3.bf16.msra.mxu0 %v2111_v25  ;;  %v2179_v25 = vld [vmem:[%s2704_s1 + $0x418] sm:$0xff]  }
  0x54   :  { %1918 = vmatprep.subr.bf16.mxu0 %v2114_v28  ;;  %v2181_v28 = vld [vmem:[%s2704_s1 + $0x410] sm:$0xff]  }
  0x55   :  { %1939 = vmatpush3.bf16.msra.mxu1 %v2113_v27  ;;  %v2188_v27 = vld [vmem:[%s2705_s0 + $0x44] ss:$72 sps:$4 sm:$0xff]  }
  0x56   :  { %1940 = vmatprep.subr.bf16.mxu1 %v2116_v30  ;;  %v2183_v30 = vld [vmem:[%s2704_s1 + $0x408] sm:$0xff]  }
  0x57   :  { %1919 = vmatpush3.bf16.msra.mxu0 %v2115_v29  ;;  %v2182_v29 = vld [vmem:[%s2704_s1 + $0x448] sm:$0xff]  }
  0x58   :  { %1920 = vmatprep.subr.bf16.mxu0 %v2118_v32  ;;  %v2185_v32 = vld [vmem:[%s2704_s1 + $0x400] sm:$0xff]  }
  0x59   :  { %1941 = vmatpush3.bf16.msra.mxu1 %v2117_v31  ;;  %v2184_v31 = vld [vmem:[%s2704_s1 + $0x440] sm:$0xff]  }
  0x5a   :  { %1942 = vmatprep.subr.bf16.mxu1 %v2120_v34 }
  0x5b   :  { %1921 = vmatpush3.bf16.msra.mxu0 %v2119_v33  ;;  %v2186_v33 = vld [vmem:[%s2705_s0 + $0x40] ss:$72 sps:$4 sm:$0xff]  }
  0x5c   :  { %1922 = vmatprep.subr.bf16.mxu0 %v2122_v36 }
  0x5d   :  { %1943 = vmatpush3.bf16.msra.mxu1 %v2121_v35 }
  0x5e   :  { %1944 = vmatprep.subr.bf16.mxu1 %v2124_v38 }
  0x5f   :  { %1923 = vmatpush3.bf16.msra.mxu0 %v2123_v37 }
  0x60   :  { %1952 = vmatprep.subr.bf16.mxu0 %v2129_v42 }
  0x61   :  { %1945 = vmatpush3.bf16.msra.mxu1 %v2128_v41 }
  0x62   :  { %1479 = vmatmul.mubr.bf16.vlgmr.msra.gmra.mxu0 %v2125_v39  ;;  %1974 = vmatprep.subr.bf16.mxu1 %v2134_v46 }
  0x63   :  { %1953 = vmatpush3.bf16.msra.mxu0 %v2133_v45  ;;  %1560 = vmatprep.mubr.bf16.mxu0 %v2165_v12 }
  0x64   :  { %1520 = vmatmul.mubr.bf16.vlgmr.msra.gmra.mxu1 %v2130_v43  ;;  %1954 = vmatprep.subr.bf16.mxu0 %v2136_v48 }
  0x65   :  { %1975 = vmatpush3.bf16.msra.mxu1 %v2135_v47  ;;  %1601 = vmatprep.mubr.bf16.mxu1 %v2170_v16 }
  0x66   :  { %1976 = vmatprep.subr.bf16.mxu1 %v2138_v50 }
  0x67   :  { %1955 = vmatpush3.bf16.msra.mxu0 %v2137_v49 }
  0x68   :  { %1956 = vmatprep.subr.bf16.mxu0 %v2140_v52 }
  0x69   :  { %1977 = vmatpush3.bf16.msra.mxu1 %v2139_v51 }
  0x6a   :  { %1978 = vmatprep.subr.bf16.mxu1 %v2142_v54  ;;  %v1657_v54 = vld [vmem:[%s2706_s2] ss:$0 sm:$0xff] }
  0x6b   :  { %1957 = vmatpush3.bf16.msra.mxu0 %v2141_v53 }
  0x6c   :  { %1958 = vmatprep.subr.bf16.mxu0 %v2144_v56 }
  0x6d   :  { %1979 = vmatpush3.bf16.msra.mxu1 %v2143_v55 }
  0x6e   :  { %1980 = vmatprep.subr.bf16.mxu1 %v2146_v58 }
  0x6f   :  { %1959 = vmatpush3.bf16.msra.mxu0 %v2145_v57 }
  0x70   :  { %1960 = vmatprep.subr.bf16.mxu0 %v2148_v60 }
  0x71   :  { %1981 = vmatpush3.bf16.msra.mxu1 %v2147_v59 }
  0x72   :  { %1982 = vmatprep.subr.bf16.mxu1 %v2150_v62 }
  0x73   :  { %1961 = vmatpush3.bf16.msra.mxu0 %v2149_v61 }
  0x74   :  { %1962 = vmatprep.subr.bf16.mxu0 %v2152_v0 }
  0x75   :  { %1983 = vmatpush3.bf16.msra.mxu1 %v2151_v63 }
  0x76   :  { %1984 = vmatprep.subr.bf16.mxu1 %v2154_v2 }
  0x77   :  { %1963 = vmatpush3.bf16.msra.mxu0 %v2153_v1 }
  0x78   :  { %1964 = vmatprep.subr.bf16.mxu0 %v2156_v4 }
  0x79   :  { %1985 = vmatpush3.bf16.msra.mxu1 %v2155_v3 }
  0x7a   :  { %1986 = vmatprep.subr.bf16.mxu1 %v2158_v6 }
  0x7b   :  { %1965 = vmatpush3.bf16.msra.mxu0 %v2157_v5 }
  0x7c   :  { %1966 = vmatprep.subr.bf16.mxu0 %v2160_v8 }
  0x7d   :  { %1987 = vmatpush3.bf16.msra.mxu1 %v2159_v7 }
  0x7e   :  { %1988 = vmatprep.subr.bf16.mxu1 %v2162_v10 }
  0x7f   :  { %1967 = vmatpush3.bf16.msra.mxu0 %v2161_v9 }
  0x80   :  { %1996 = vmatprep.subr.bf16.mxu0 %v2167_v14 }
  0x81   :  { %1989 = vmatpush3.bf16.msra.mxu1 %v2166_v13 }
  0x82   :  { %1561 = vmatmul.mubr.bf16.vlgmr.msra.gmra.mxu0 %v2163_v11 }
  0x83   :  { %1997 = vmatpush3.bf16.msra.mxu0 %v2171_v17  ;;  %1642 = vmatprep.mubr.bf16.mxu0 %v2188_v27 }
  0x84   :  { %1602 = vmatmul.mubr.bf16.vlgmr.msra.gmra.mxu1 %v2168_v15  ;;  %1998 = vmatprep.subr.bf16.mxu0 %v2172_v18 }
  0x87   :  { %1999 = vmatpush3.bf16.msra.mxu0 %v2173_v19 }
  0x88   :  { %2000 = vmatprep.subr.bf16.mxu0 %v2174_v20 }
  0x8b   :  { %2001 = vmatpush3.bf16.msra.mxu0 %v2175_v21 }
  0x8c   :  { %2002 = vmatprep.subr.bf16.mxu0 %v2176_v22 }
  0x8f   :  { %2003 = vmatpush3.bf16.msra.mxu0 %v2177_v23 }
  0x90   :  { %2004 = vmatprep.subr.bf16.mxu0 %v2178_v24 }
  0x93   :  { %2005 = vmatpush3.bf16.msra.mxu0 %v2179_v25 }
  0x94   :  { %2006 = vmatprep.subr.bf16.mxu0 %v2180_v26 }
  0x97   :  { %2007 = vmatpush3.bf16.msra.mxu0 %v2181_v28 }
  0x98   :  { %2008 = vmatprep.subr.bf16.mxu0 %v2182_v29 }
  0x9b   :  { %2009 = vmatpush3.bf16.msra.mxu0 %v2183_v30 }
  0x9c   :  { %2010 = vmatprep.subr.bf16.mxu0 %v2184_v31 }
  0x9f   :  { %2011 = vmatpush3.bf16.msra.mxu0 %v2185_v32 }
  0xa2   :  { %1643 = vmatmul.mubr.bf16.vlgmr.msra.gmra.mxu0 %v2186_v33 }
  0xe2   :  { %v1836_v34 = vpop.f32.mrf.mxu0 }
  0xe4   :  { %v1837_v35 = vpop.f32.mrf.mxu0  ;;  %v1858_v36 = vpop.f32.mrf.mxu1 }
  0xe5   :  { %v1838_v53 = vadd.f32 %v1837_v35, %v1836_v34 }
  0xe6   :  { %v1839_v37 = vpop.f32.mrf.mxu0  ;;  %v1859_v38 = vpop.f32.mrf.mxu1 }
  0xe7   :  { %v1317_v57 = vadd.f32 %v1838_v53, %v1657_v54  ;;  %v1860_v58 = vadd.f32 %v1859_v38, %v1858_v36 }
  0xe8   :  { %v1840_v39 = vpop.f32.mrf.mxu0  ;;  %v1861_v40 = vpop.f32.mrf.mxu1 }
  0xe9   :  { %v1841_v59 = vadd.f32 %v1840_v39, %v1839_v37  ;;  %v1358_v0 = vadd.f32 %v1860_v58, %v1317_v57 }
  0xea   :  { %v1862_v42 = vpop.f32.mrf.mxu1 }
  0xeb   :  { %v1320_v1 = vadd.f32 %v1841_v59, %v1657_v54  ;;  %v1863_v2 = vadd.f32 %v1862_v42, %v1861_v40 }
  0xed   :  { %v1361_v9 = vadd.f32 %v1863_v2, %v1320_v1 }
 0x102   :  { %v1880_v41 = vpop.f32.mrf.mxu0 }
 0x104   :  { %v1881_v43 = vpop.f32.mrf.mxu0  ;;  %v1902_v44 = vpop.f32.mrf.mxu1 }
 0x105   :  { %v1882_v62 = vadd.f32 %v1881_v43, %v1880_v41 }
 0x106   :  { %v1883_v45 = vpop.f32.mrf.mxu0  ;;  %v1903_v46 = vpop.f32.mrf.mxu1 }
 0x107   :  { %v1399_v4 = vadd.f32 %v1882_v62, %v1358_v0  ;;  %v1904_v5 = vadd.f32 %v1903_v46, %v1902_v44 }
 0x108   :  { %v1884_v47 = vpop.f32.mrf.mxu0  ;;  %v1905_v48 = vpop.f32.mrf.mxu1 }
 0x109   :  { %v1885_v6 = vadd.f32 %v1884_v47, %v1883_v45  ;;  %v1440_v11 = vadd.f32 %v1904_v5, %v1399_v4 }
 0x10a   :  { %v1906_v50 = vpop.f32.mrf.mxu1 }
 0x10b   :  { %v1402_v12 = vadd.f32 %v1885_v6, %v1361_v9  ;;  %v1907_v13 = vadd.f32 %v1906_v50, %v1905_v48 }
 0x10d   :  { %v1443_v19 = vadd.f32 %v1907_v13, %v1402_v12 }
 0x122   :  { %v1924_v49 = vpop.f32.mrf.mxu0 }
 0x124   :  { %v1925_v51 = vpop.f32.mrf.mxu0  ;;  %v1946_v52 = vpop.f32.mrf.mxu1 }
 0x125   :  { %v1926_v10 = vadd.f32 %v1925_v51, %v1924_v49 }
 0x126   :  { %v1927_v55 = vpop.f32.mrf.mxu0  ;;  %v1947_v56 = vpop.f32.mrf.mxu1 }
 0x127   :  { %v1481_v16 = vadd.f32 %v1926_v10, %v1440_v11  ;;  %v1948_v17 = vadd.f32 %v1947_v56, %v1946_v52 }
 0x128   :  { %v1928_v60 = vpop.f32.mrf.mxu0  ;;  %v1949_v61 = vpop.f32.mrf.mxu1 }
 0x129   :  { %v1929_v18 = vadd.f32 %v1928_v60, %v1927_v55  ;;  %v1522_v23 = vadd.f32 %v1948_v17, %v1481_v16 }
 0x12a   :  { %v1950_v3 = vpop.f32.mrf.mxu1 }
 0x12b   :  { %v1484_v24 = vadd.f32 %v1929_v18, %v1443_v19  ;;  %v1951_v25 = vadd.f32 %v1950_v3, %v1949_v61 }
 0x12d   :  { %v1525_v31 = vadd.f32 %v1951_v25, %v1484_v24 }
 0x142   :  { %v1968_v63 = vpop.f32.mrf.mxu0 }
 0x144   :  { %v1969_v7 = vpop.f32.mrf.mxu0  ;;  %v1990_v8 = vpop.f32.mrf.mxu1 }
 0x145   :  { %v1970_v20 = vadd.f32 %v1969_v7, %v1968_v63 }
 0x146   :  { %v1971_v14 = vpop.f32.mrf.mxu0  ;;  %v1991_v15 = vpop.f32.mrf.mxu1 }
 0x147   :  { %v1563_v26 = vadd.f32 %v1970_v20, %v1522_v23  ;;  %v1992_v27 = vadd.f32 %v1991_v15, %v1990_v8 }
 0x148   :  { %v1972_v21 = vpop.f32.mrf.mxu0  ;;  %v1993_v22 = vpop.f32.mrf.mxu1 }
 0x149   :  { %v1973_v28 = vadd.f32 %v1972_v21, %v1971_v14  ;;  %v1604_v33 = vadd.f32 %v1992_v27, %v1563_v26 }
 0x14a   :  { %v1994_v29 = vpop.f32.mrf.mxu1 }
 0x14b   :  { %v1566_v34 = vadd.f32 %v1973_v28, %v1525_v31  ;;  %v1995_v35 = vadd.f32 %v1994_v29, %v1993_v22 }
 0x14d   :  { %v1607_v40 = vadd.f32 %v1995_v35, %v1566_v34 }
 0x162   :  { %v2012_v30 = vpop.f32.mrf.mxu0 }
 0x164   :  { %v2013_v32 = vpop.f32.mrf.mxu0 }
 0x165   :  { %v2014_v36 = vadd.f32 %v2013_v32, %v2012_v30 }
 0x166   :  { %v2015_v37 = vpop.f32.mrf.mxu0 }
 0x167   :  { %v1645_v38 = vadd.f32 %v2014_v36, %v1604_v33 }
 0x168   :  { %v2016_v39 = vpop.f32.mrf.mxu0 }
 0x169   :  { %1651 = vst [vmem:[%s2707_s3] sm:$0xff] %v1645_v38  ;;  %v2017_v41 = vadd.f32 %v2016_v39, %v2015_v37 }
 0x16b   :  { %v1648_v42 = vadd.f32 %v2017_v41, %v1607_v40 }
 0x16d   :  { %1652 = vst [vmem:[%s2707_s3 + $0x8] sm:$0xff] %v1648_v42 }

</bundles_post_ra>
